<compile_context>
chip_gen: v5e
topology: v5e:2x2
jax: 0.10.0
libtpu: 0.0.40
codegen_flags: <defaults>
</compile_context>

<pallas_src>
import jax
import jax.numpy as jnp
from jax import lax
from jax.experimental import pallas as pl
from jax.experimental.pallas import tpu as pltpu


def _basic_block_kernel(x_ref, w1_ref, s1_ref, b1_ref, w2_ref, s2_ref, b2_ref,
                        out_ref, ybuf, acc_ref):
    # x_ref   : (1, H+4, W+2, Cp) bf16  whole spatially zero-padded image
    # w*_ref  : (3, 3*Cp, Cp)     bf16  column-tap-major stacked conv weights
    # s*/b*   : (1, Cp)           f32   folded BN scale / bias
    # out_ref : (1, TH, W, Cp)    bf16  one TH-row tile of the output
    # ybuf    : (TH+2, W+2, Cp)   bf16  conv1 output (+1 halo ring) scratch
    # acc_ref : ((TH+2)*W, Cp)    f32   matmul accumulator scratch
    _, TH, W, Cp = out_ref.shape
    t = pl.program_id(1)
    n_t = pl.num_programs(1)
    r0 = pl.multiple_of(t * TH, TH)          # first output row of this tile

    def conv3x3(slab, n_rows, wk_ref):
        # slab(dw) -> ((n_rows+2)*W, Cp) bf16 flattened column slab.
        # Row taps become sublane-aligned row windows of the flattened slab and
        # are fused along K via a lane-axis concat -> 3 matmuls with K=3*Cp.
        for dw in range(3):
            flat = slab(dw)
            kop = jnp.concatenate(
                [flat[dh * W:dh * W + n_rows * W] for dh in range(3)], axis=-1)
            part = jnp.dot(kop, wk_ref[dw], preferred_element_type=jnp.float32)
            if dw == 0:
                acc_ref[0:n_rows * W, :] = part
            else:
                acc_ref[0:n_rows * W, :] += part
        return acc_ref[0:n_rows * W, :]

    # ---- conv1 + bn1 + relu on TH+2 rows (1-row halo for conv2) ----
    def x_slab(dw):
        s = x_ref[0, pl.ds(r0, TH + 4), dw:dw + W, :]     # (TH+4, W, Cp) bf16
        return s.reshape((TH + 4) * W, Cp)

    y1 = jnp.maximum(conv3x3(x_slab, TH + 2, w1_ref) * s1_ref[0] + b1_ref[0],
                     0.0)
    ybuf[:, 1:W + 1, :] = y1.reshape(TH + 2, W, Cp).astype(ybuf.dtype)

    # conv2 halo: 1-wide column borders are never written by the interior
    # store, so zero them each step (tiny); the out-of-image halo rows are
    # zeroed only on the first / last row tile of the image.
    ybuf[:, 0:1, :] = jnp.zeros((TH + 2, 1, Cp), ybuf.dtype)
    ybuf[:, W + 1:W + 2, :] = jnp.zeros((TH + 2, 1, Cp), ybuf.dtype)

    @pl.when(t == 0)
    def _():
        ybuf[0:1, :, :] = jnp.zeros((1, W + 2, Cp), ybuf.dtype)

    @pl.when(t == n_t - 1)
    def _():
        ybuf[TH + 1:TH + 2, :, :] = jnp.zeros((1, W + 2, Cp), ybuf.dtype)

    # ---- conv2 + bn2 on the TH output rows ----
    def y_slab(dw):
        s = ybuf[:, dw:dw + W, :]                         # (TH+2, W, Cp) bf16
        return s.reshape((TH + 2) * W, Cp)

    y2 = conv3x3(y_slab, TH, w2_ref) * s2_ref[0] + b2_ref[0]

    # ---- residual add (f32) + relu, single bf16 output store ----
    iden = x_ref[0, pl.ds(r0 + 2, TH), 1:W + 1, :].astype(jnp.float32)
    out = jnp.maximum(y2 + iden.reshape(TH * W, Cp), 0.0)
    out_ref[0] = out.reshape(TH, W, Cp).astype(out_ref.dtype)


def _pick_row_tile(H):
    # Prefer >= 2 row tiles per image for pipeline depth / core balance while
    # keeping the 2-row halo-recompute overhead small.
    for th in (32, 28, 16, 14, 8, 7):
        if th < H and H % th == 0:
            return th
    return H


def basic_block(x_nchw, w1_hwio, s1, b1, w2_hwio, s2, b2, *, row_tile=None):
    """BasicBlock forward (stride=1, downsample=None), inference-mode BN.

    x_nchw: (N, C, H, W) like PyTorch.  s*/b* are folded BN scale/bias (C,).
    Conv weights are HWIO.  NOTE: the identity path is carried in bf16 (like
    the conv operands), a documented precision delta vs. a pure-f32 block.
    """
    N, C, H, W = x_nchw.shape
    Cout = w1_hwio.shape[-1]
    assert C == Cout, "downsample=None path requires in_channels == out_channels"

    Cp = max(128, ((C + 127) // 128) * 128)      # lane-dense channel pad
    pc = Cp - C

    TH = row_tile if row_tile is not None else _pick_row_tile(H)
    assert H % TH == 0
    n_t = H // TH

    x = jnp.transpose(x_nchw, (0, 2, 3, 1))                       # NCHW -> NHWC
    # 2-row / 1-col zero halo: every row tile (and its conv1 halo rows) reads
    # in-bounds; padded channels stay exactly zero (zero weights/scale/bias).
    x_p = jnp.pad(x, ((0, 0), (2, 2), (1, 1), (0, pc))).astype(jnp.bfloat16)

    def pack_w(w):
        wp = jnp.pad(w, ((0, 0), (0, 0), (0, pc), (0, pc)))       # (3,3,Cp,Cp)
        wp = jnp.transpose(wp, (1, 0, 2, 3))                      # (dw,dh,Ci,Co)
        return wp.reshape(3, 3 * Cp, Cp).astype(jnp.bfloat16)

    def pack_v(v):
        return jnp.pad(v.reshape(1, C), ((0, 0), (0, pc))).astype(jnp.float32)

    w1_p, w2_p = pack_w(w1_hwio), pack_w(w2_hwio)
    s1_p, b1_p, s2_p, b2_p = pack_v(s1), pack_v(b1), pack_v(s2), pack_v(b2)

    # Per-generation VMEM limit: 64 MiB where physical VMEM is 128 MiB
    # (v5e/v6e), 32 MiB headroom on 64-MiB-class chips (v7x).
    try:
        vmem_cap = pltpu.get_tpu_info().vmem_capacity_bytes
    except Exception:
        vmem_cap = 64 * 1024 * 1024
    vmem_limit = (64 if vmem_cap >= 128 * 1024 * 1024 else 32) * 1024 * 1024

    flops = 2 * 9 * Cp * Cp * W * N * n_t * ((TH + 2) + TH)       # two 3x3 convs
    bytes_accessed = (x_p.size * 2 + (w1_p.size + w2_p.size) * 2
                      + 4 * Cp * 4 + N * H * W * Cp * 2)

    out_nhwc = pl.pallas_call(
        _basic_block_kernel,
        out_shape=jax.ShapeDtypeStruct((N, H, W, Cp), jnp.bfloat16),
        grid_spec=pltpu.PrefetchScalarGridSpec(
            num_scalar_prefetch=0,
            grid=(N, n_t),
            in_specs=[
                # whole padded image; block index constant over the row axis ->
                # fetched once per image, revisited across row tiles.
                pl.BlockSpec((1, H + 4, W + 2, Cp), lambda n, t: (n, 0, 0, 0)),
                pl.BlockSpec((3, 3 * Cp, Cp), lambda n, t: (0, 0, 0)),   # w1
                pl.BlockSpec((1, Cp), lambda n, t: (0, 0)),              # s1
                pl.BlockSpec((1, Cp), lambda n, t: (0, 0)),              # b1
                pl.BlockSpec((3, 3 * Cp, Cp), lambda n, t: (0, 0, 0)),   # w2
                pl.BlockSpec((1, Cp), lambda n, t: (0, 0)),              # s2
                pl.BlockSpec((1, Cp), lambda n, t: (0, 0)),              # b2
            ],
            out_specs=pl.BlockSpec((1, TH, W, Cp), lambda n, t: (n, t, 0, 0)),
            scratch_shapes=[
                pltpu.VMEM((TH + 2, W + 2, Cp), jnp.bfloat16),    # conv2 input
                pltpu.VMEM(((TH + 2) * W, Cp), jnp.float32),      # accumulator
            ]),
        compiler_params=pltpu.CompilerParams(
            dimension_semantics=("parallel", "arbitrary"),
            vmem_limit_bytes=vmem_limit),
        cost_estimate=pl.CostEstimate(
            flops=flops, transcendentals=0, bytes_accessed=bytes_accessed),
    )(x_p, w1_p, s1_p, b1_p, w2_p, s2_p, b2_p)

    # Kernel emits bf16 (halves writeback); restore the caller's dtype here.
    out = out_nhwc[..., :C].astype(x_nchw.dtype)
    return jnp.transpose(out, (0, 3, 1, 2))                       # NHWC -> NCHW


if __name__ == "__main__":
    key = jax.random.PRNGKey(0)
    ks = jax.random.split(key, 11)

    N, C, H, W = 2, 4, 16, 16       # small NCHW input, in_channels == out_channels
    eps = 1e-5

    x = jax.random.normal(ks[0], (N, C, H, W), jnp.float32)

    # conv weights (HWIO), deterministic
    w1 = 0.1 * jax.random.normal(ks[1], (3, 3, C, C), jnp.float32)
    w2 = 0.1 * jax.random.normal(ks[2], (3, 3, C, C), jnp.float32)

    # batchnorm params (inference mode), deterministic
    g1 = 1.0 + 0.1 * jax.random.normal(ks[3], (C,), jnp.float32)
    be1 = 0.1 * jax.random.normal(ks[4], (C,), jnp.float32)
    m1 = 0.1 * jax.random.normal(ks[5], (C,), jnp.float32)
    v1 = 1.0 + 0.5 * jax.random.uniform(ks[6], (C,), jnp.float32)

    g2 = 1.0 + 0.1 * jax.random.normal(ks[7], (C,), jnp.float32)
    be2 = 0.1 * jax.random.normal(ks[8], (C,), jnp.float32)
    m2 = 0.1 * jax.random.normal(ks[9], (C,), jnp.float32)
    v2 = 1.0 + 0.5 * jax.random.uniform(ks[10], (C,), jnp.float32)

    # fold BN into per-channel scale/bias: y = x*scale + bias
    s1 = g1 / jnp.sqrt(v1 + eps)
    b1 = be1 - m1 * s1
    s2 = g2 / jnp.sqrt(v2 + eps)
    b2 = be2 - m2 * s2

    out = jax.block_until_ready(basic_block(x, w1, s1, b1, w2, s2, b2))

    # ---- plain-JAX reference mirroring the kernel's bf16/f32 precision ----
    def conv_ref(a, w):
        return lax.conv_general_dilated(
            a.astype(jnp.bfloat16), w.astype(jnp.bfloat16), (1, 1), 'SAME',
            dimension_numbers=('NHWC', 'HWIO', 'NHWC'),
            preferred_element_type=jnp.float32)

    xb = jnp.transpose(x, (0, 2, 3, 1)).astype(jnp.bfloat16)
    y1 = jnp.maximum(conv_ref(xb, w1) * s1 + b1, 0.0)
    y2 = conv_ref(y1, w2) * s2 + b2
    ref = jnp.maximum(y2 + xb.astype(jnp.float32), 0.0)
    ref = ref.astype(jnp.bfloat16).astype(jnp.float32)   # kernel stores bf16
    ref = jnp.transpose(ref, (0, 3, 1, 2))

    err = float(jnp.max(jnp.abs(out - ref)))
    assert jnp.allclose(out, ref, atol=5e-2, rtol=5e-2), f"max abs err = {err}"
    print("KERNEL_OK")
</pallas_src>

<mosaic_0001>
module attributes {stable_mosaic.version = 11 : i64} {
  func.func @_basic_block_kernel(%arg0: i32, %arg1: i32, %arg2: memref<1x20x18x128xbf16, #tpu.memory_space<vmem>>, %arg3: memref<3x384x128xbf16, #tpu.memory_space<vmem>>, %arg4: memref<1x128xf32, #tpu.memory_space<vmem>>, %arg5: memref<1x128xf32, #tpu.memory_space<vmem>>, %arg6: memref<3x384x128xbf16, #tpu.memory_space<vmem>>, %arg7: memref<1x128xf32, #tpu.memory_space<vmem>>, %arg8: memref<1x128xf32, #tpu.memory_space<vmem>>, %arg9: memref<1x8x16x128xbf16, #tpu.memory_space<vmem>>, %arg10: memref<10x18x128xbf16, #tpu.memory_space<vmem>>, %arg11: memref<160x128xf32, #tpu.memory_space<vmem>>) attributes {dimension_semantics = [#tpu.dimension_semantics<parallel>, #tpu.dimension_semantics<arbitrary>], iteration_bounds = array<i64: 2, 2>, scalar_prefetch = 0 : i64, scratch_operands = 2 : i64, tpu.core_type = #tpu.core_type<tc>, window_params = [{transform_indices = @transform_0, window_bounds = array<i64: 1, 20, 18, 128>}, {pipeline_mode = #tpu.pipeline_mode<synchronous>, transform_indices = @transform_1, window_bounds = array<i64: 3, 384, 128>}, {pipeline_mode = #tpu.pipeline_mode<synchronous>, transform_indices = @transform_2, window_bounds = array<i64: 1, 128>}, {pipeline_mode = #tpu.pipeline_mode<synchronous>, transform_indices = @transform_3, window_bounds = array<i64: 1, 128>}, {pipeline_mode = #tpu.pipeline_mode<synchronous>, transform_indices = @transform_4, window_bounds = array<i64: 3, 384, 128>}, {pipeline_mode = #tpu.pipeline_mode<synchronous>, transform_indices = @transform_5, window_bounds = array<i64: 1, 128>}, {pipeline_mode = #tpu.pipeline_mode<synchronous>, transform_indices = @transform_6, window_bounds = array<i64: 1, 128>}, {transform_indices = @transform_7, window_bounds = array<i64: 1, 8, 16, 128>}]} {
    %c8_i32 = arith.constant 8 : i32
    %0 = arith.muli %arg1, %c8_i32 : i32
    %1 = tpu.assume_multiple %0, 8 : i32
    %c0 = arith.constant 0 : index
    %2 = arith.index_cast %1 : i32 to index
    %c0_0 = arith.constant 0 : index
    %c0_1 = arith.constant 0 : index
    %3 = vector.load %arg2[%c0, %2, %c0_0, %c0_1] : memref<1x20x18x128xbf16, #tpu.memory_space<vmem>>, vector<1x12x16x128xbf16>
    %4 = vector.shape_cast %3 : vector<1x12x16x128xbf16> to vector<12x16x128xbf16>
    %5 = vector.shape_cast %4 : vector<12x16x128xbf16> to vector<192x128xbf16>
    %6 = vector.extract_strided_slice %5 {offsets = [0, 0], sizes = [160, 128], strides = [1, 1]} : vector<192x128xbf16> to vector<160x128xbf16>
    %7 = vector.extract_strided_slice %5 {offsets = [16, 0], sizes = [160, 128], strides = [1, 1]} : vector<192x128xbf16> to vector<160x128xbf16>
    %8 = vector.extract_strided_slice %5 {offsets = [32, 0], sizes = [160, 128], strides = [1, 1]} : vector<192x128xbf16> to vector<160x128xbf16>
    %9 = tpu.concatenate %6, %7, %8 in 1 : vector<160x128xbf16>, vector<160x128xbf16>, vector<160x128xbf16> -> vector<160x384xbf16>
    %c0_2 = arith.constant 0 : index
    %c0_3 = arith.constant 0 : index
    %c0_4 = arith.constant 0 : index
    %10 = vector.load %arg3[%c0_2, %c0_3, %c0_4] : memref<3x384x128xbf16, #tpu.memory_space<vmem>>, vector<1x384x128xbf16>
    %11 = vector.shape_cast %10 : vector<1x384x128xbf16> to vector<384x128xbf16>
    %cst = arith.constant dense<0.000000e+00> : vector<160x128xf32>
    %12 = tpu.matmul %9, %11, %cst {dimension_numbers = #tpu.dot_dimension_numbers<[1], [0], [0], [1], [0, 0, 1, 1], [], []>} : vector<160x384xbf16>, vector<384x128xbf16>, vector<160x128xf32> -> vector<160x128xf32>
    %c0_5 = arith.constant 0 : index
    %c0_6 = arith.constant 0 : index
    %13 = vector.load %arg11[%c0_5, %c0_6] : memref<160x128xf32, #tpu.memory_space<vmem>>, vector<160x128xf32>
    tpu.vector_store %arg11[%c0_5, %c0_6], %12 {strides = array<i32>} : memref<160x128xf32, #tpu.memory_space<vmem>>, vector<160x128xf32>,
    %c0_7 = arith.constant 0 : index
    %14 = arith.index_cast %1 : i32 to index
    %c1 = arith.constant 1 : index
    %c0_8 = arith.constant 0 : index
    %15 = vector.load %arg2[%c0_7, %14, %c1, %c0_8] : memref<1x20x18x128xbf16, #tpu.memory_space<vmem>>, vector<1x12x16x128xbf16>
    %16 = vector.shape_cast %15 : vector<1x12x16x128xbf16> to vector<12x16x128xbf16>
    %17 = vector.shape_cast %16 : vector<12x16x128xbf16> to vector<192x128xbf16>
    %18 = vector.extract_strided_slice %17 {offsets = [0, 0], sizes = [160, 128], strides = [1, 1]} : vector<192x128xbf16> to vector<160x128xbf16>
    %19 = vector.extract_strided_slice %17 {offsets = [16, 0], sizes = [160, 128], strides = [1, 1]} : vector<192x128xbf16> to vector<160x128xbf16>
    %20 = vector.extract_strided_slice %17 {offsets = [32, 0], sizes = [160, 128], strides = [1, 1]} : vector<192x128xbf16> to vector<160x128xbf16>
    %21 = tpu.concatenate %18, %19, %20 in 1 : vector<160x128xbf16>, vector<160x128xbf16>, vector<160x128xbf16> -> vector<160x384xbf16>
    %c1_9 = arith.constant 1 : index
    %c0_10 = arith.constant 0 : index
    %c0_11 = arith.constant 0 : index
    %22 = vector.load %arg3[%c1_9, %c0_10, %c0_11] : memref<3x384x128xbf16, #tpu.memory_space<vmem>>, vector<1x384x128xbf16>
    %23 = vector.shape_cast %22 : vector<1x384x128xbf16> to vector<384x128xbf16>
    %cst_12 = arith.constant dense<0.000000e+00> : vector<160x128xf32>
    %24 = tpu.matmul %21, %23, %cst_12 {dimension_numbers = #tpu.dot_dimension_numbers<[1], [0], [0], [1], [0, 0, 1, 1], [], []>} : vector<160x384xbf16>, vector<384x128xbf16>, vector<160x128xf32> -> vector<160x128xf32>
    %c0_13 = arith.constant 0 : index
    %c0_14 = arith.constant 0 : index
    %25 = vector.load %arg11[%c0_13, %c0_14] : memref<160x128xf32, #tpu.memory_space<vmem>>, vector<160x128xf32>
    %26 = arith.addf %25, %24 : vector<160x128xf32>
    %c0_15 = arith.constant 0 : index
    %c0_16 = arith.constant 0 : index
    %27 = vector.load %arg11[%c0_15, %c0_16] : memref<160x128xf32, #tpu.memory_space<vmem>>, vector<160x128xf32>
    tpu.vector_store %arg11[%c0_15, %c0_16], %26 {strides = array<i32>} : memref<160x128xf32, #tpu.memory_space<vmem>>, vector<160x128xf32>,
    %c0_17 = arith.constant 0 : index
    %28 = arith.index_cast %1 : i32 to index
    %c2 = arith.constant 2 : index
    %c0_18 = arith.constant 0 : index
    %29 = vector.load %arg2[%c0_17, %28, %c2, %c0_18] : memref<1x20x18x128xbf16, #tpu.memory_space<vmem>>, vector<1x12x16x128xbf16>
    %30 = vector.shape_cast %29 : vector<1x12x16x128xbf16> to vector<12x16x128xbf16>
    %31 = vector.shape_cast %30 : vector<12x16x128xbf16> to vector<192x128xbf16>
    %32 = vector.extract_strided_slice %31 {offsets = [0, 0], sizes = [160, 128], strides = [1, 1]} : vector<192x128xbf16> to vector<160x128xbf16>
    %33 = vector.extract_strided_slice %31 {offsets = [16, 0], sizes = [160, 128], strides = [1, 1]} : vector<192x128xbf16> to vector<160x128xbf16>
    %34 = vector.extract_strided_slice %31 {offsets = [32, 0], sizes = [160, 128], strides = [1, 1]} : vector<192x128xbf16> to vector<160x128xbf16>
    %35 = tpu.concatenate %32, %33, %34 in 1 : vector<160x128xbf16>, vector<160x128xbf16>, vector<160x128xbf16> -> vector<160x384xbf16>
    %c2_19 = arith.constant 2 : index
    %c0_20 = arith.constant 0 : index
    %c0_21 = arith.constant 0 : index
    %36 = vector.load %arg3[%c2_19, %c0_20, %c0_21] : memref<3x384x128xbf16, #tpu.memory_space<vmem>>, vector<1x384x128xbf16>
    %37 = vector.shape_cast %36 : vector<1x384x128xbf16> to vector<384x128xbf16>
    %cst_22 = arith.constant dense<0.000000e+00> : vector<160x128xf32>
    %38 = tpu.matmul %35, %37, %cst_22 {dimension_numbers = #tpu.dot_dimension_numbers<[1], [0], [0], [1], [0, 0, 1, 1], [], []>} : vector<160x384xbf16>, vector<384x128xbf16>, vector<160x128xf32> -> vector<160x128xf32>
    %c0_23 = arith.constant 0 : index
    %c0_24 = arith.constant 0 : index
    %39 = vector.load %arg11[%c0_23, %c0_24] : memref<160x128xf32, #tpu.memory_space<vmem>>, vector<160x128xf32>
    %40 = arith.addf %39, %38 : vector<160x128xf32>
    %c0_25 = arith.constant 0 : index
    %c0_26 = arith.constant 0 : index
    %41 = vector.load %arg11[%c0_25, %c0_26] : memref<160x128xf32, #tpu.memory_space<vmem>>, vector<160x128xf32>
    tpu.vector_store %arg11[%c0_25, %c0_26], %40 {strides = array<i32>} : memref<160x128xf32, #tpu.memory_space<vmem>>, vector<160x128xf32>,
    %c0_27 = arith.constant 0 : index
    %c0_28 = arith.constant 0 : index
    %42 = vector.load %arg11[%c0_27, %c0_28] : memref<160x128xf32, #tpu.memory_space<vmem>>, vector<160x128xf32>
    %c0_29 = arith.constant 0 : index
    %c0_30 = arith.constant 0 : index
    %43 = vector.load %arg4[%c0_29, %c0_30] : memref<1x128xf32, #tpu.memory_space<vmem>>, vector<1x128xf32>
    %44 = vector.shape_cast %43 : vector<1x128xf32> to vector<128xf32>
    %45 = vector.shape_cast %44 : vector<128xf32> to vector<1x128xf32>
    %46 = vector.broadcast %45 : vector<1x128xf32> to vector<160x128xf32>
    %47 = arith.mulf %42, %46 : vector<160x128xf32>
    %c0_31 = arith.constant 0 : index
    %c0_32 = arith.constant 0 : index
    %48 = vector.load %arg5[%c0_31, %c0_32] : memref<1x128xf32, #tpu.memory_space<vmem>>, vector<1x128xf32>
    %49 = vector.shape_cast %48 : vector<1x128xf32> to vector<128xf32>
    %50 = vector.shape_cast %49 : vector<128xf32> to vector<1x128xf32>
    %51 = vector.broadcast %50 : vector<1x128xf32> to vector<160x128xf32>
    %52 = arith.addf %47, %51 : vector<160x128xf32>
    %cst_33 = arith.constant 0.000000e+00 : f32
    %53 = vector.broadcast %cst_33 : f32 to vector<160x128xf32>
    %54 = arith.maximumf %52, %53 : vector<160x128xf32>
    %55 = vector.shape_cast %54 : vector<160x128xf32> to vector<10x16x128xf32>
    %56 = arith.truncf %55 : vector<10x16x128xf32> to vector<10x16x128xbf16>
    %c0_34 = arith.constant 0 : index
    %c1_35 = arith.constant 1 : index
    %c0_36 = arith.constant 0 : index
    %57 = vector.load %arg10[%c0_34, %c1_35, %c0_36] : memref<10x18x128xbf16, #tpu.memory_space<vmem>>, vector<10x16x128xbf16>
    tpu.vector_store %arg10[%c0_34, %c1_35, %c0_36], %56 {strides = array<i32>} : memref<10x18x128xbf16, #tpu.memory_space<vmem>>, vector<10x16x128xbf16>,
    %cst_37 = arith.constant 0.000000e+00 : bf16
    %58 = vector.broadcast %cst_37 : bf16 to vector<10x1x128xbf16>
    %c0_38 = arith.constant 0 : index
    %c0_39 = arith.constant 0 : index
    %c0_40 = arith.constant 0 : index
    %59 = vector.load %arg10[%c0_38, %c0_39, %c0_40] : memref<10x18x128xbf16, #tpu.memory_space<vmem>>, vector<10x1x128xbf16>
    tpu.vector_store %arg10[%c0_38, %c0_39, %c0_40], %58 {strides = array<i32>} : memref<10x18x128xbf16, #tpu.memory_space<vmem>>, vector<10x1x128xbf16>,
    %cst_41 = arith.constant 0.000000e+00 : bf16
    %60 = vector.broadcast %cst_41 : bf16 to vector<10x1x128xbf16>
    %c0_42 = arith.constant 0 : index
    %c17 = arith.constant 17 : index
    %c0_43 = arith.constant 0 : index
    %61 = vector.load %arg10[%c0_42, %c17, %c0_43] : memref<10x18x128xbf16, #tpu.memory_space<vmem>>, vector<10x1x128xbf16>
    tpu.vector_store %arg10[%c0_42, %c17, %c0_43], %60 {strides = array<i32>} : memref<10x18x128xbf16, #tpu.memory_space<vmem>>, vector<10x1x128xbf16>,
    %c0_i32 = arith.constant 0 : i32
    %62 = arith.cmpi eq, %arg1, %c0_i32 : i32
    %63 = arith.extui %62 : i1 to i32
    %c0_i32_44 = arith.constant 0 : i32
    %64 = arith.cmpi ne, %63, %c0_i32_44 : i32
    scf.if %64 {
      %cst_91 = arith.constant 0.000000e+00 : bf16
      %127 = vector.broadcast %cst_91 : bf16 to vector<1x18x128xbf16>
      %c0_92 = arith.constant 0 : index
      %c0_93 = arith.constant 0 : index
      %c0_94 = arith.constant 0 : index
      %128 = vector.load %arg10[%c0_92, %c0_93, %c0_94] : memref<10x18x128xbf16, #tpu.memory_space<vmem>>, vector<1x18x128xbf16>
      tpu.vector_store %arg10[%c0_92, %c0_93, %c0_94], %127 {strides = array<i32>} : memref<10x18x128xbf16, #tpu.memory_space<vmem>>, vector<1x18x128xbf16>,
    } else {
    }
    %c1_i32 = arith.constant 1 : i32
    %65 = arith.cmpi eq, %arg1, %c1_i32 : i32
    %66 = arith.extui %65 : i1 to i32
    %c0_i32_45 = arith.constant 0 : i32
    %67 = arith.cmpi ne, %66, %c0_i32_45 : i32
    scf.if %67 {
      %cst_91 = arith.constant 0.000000e+00 : bf16
      %127 = vector.broadcast %cst_91 : bf16 to vector<1x18x128xbf16>
      %c9 = arith.constant 9 : index
      %c0_92 = arith.constant 0 : index
      %c0_93 = arith.constant 0 : index
      %128 = vector.load %arg10[%c9, %c0_92, %c0_93] : memref<10x18x128xbf16, #tpu.memory_space<vmem>>, vector<1x18x128xbf16>
      tpu.vector_store %arg10[%c9, %c0_92, %c0_93], %127 {strides = array<i32>} : memref<10x18x128xbf16, #tpu.memory_space<vmem>>, vector<1x18x128xbf16>,
    } else {
    }
    %c0_46 = arith.constant 0 : index
    %c0_47 = arith.constant 0 : index
    %c0_48 = arith.constant 0 : index
    %68 = vector.load %arg10[%c0_46, %c0_47, %c0_48] : memref<10x18x128xbf16, #tpu.memory_space<vmem>>, vector<10x16x128xbf16>
    %69 = vector.shape_cast %68 : vector<10x16x128xbf16> to vector<160x128xbf16>
    %70 = vector.extract_strided_slice %69 {offsets = [0, 0], sizes = [128, 128], strides = [1, 1]} : vector<160x128xbf16> to vector<128x128xbf16>
    %71 = vector.extract_strided_slice %69 {offsets = [16, 0], sizes = [128, 128], strides = [1, 1]} : vector<160x128xbf16> to vector<128x128xbf16>
    %72 = vector.extract_strided_slice %69 {offsets = [32, 0], sizes = [128, 128], strides = [1, 1]} : vector<160x128xbf16> to vector<128x128xbf16>
    %73 = tpu.concatenate %70, %71, %72 in 1 : vector<128x128xbf16>, vector<128x128xbf16>, vector<128x128xbf16> -> vector<128x384xbf16>
    %c0_49 = arith.constant 0 : index
    %c0_50 = arith.constant 0 : index
    %c0_51 = arith.constant 0 : index
    %74 = vector.load %arg6[%c0_49, %c0_50, %c0_51] : memref<3x384x128xbf16, #tpu.memory_space<vmem>>, vector<1x384x128xbf16>
    %75 = vector.shape_cast %74 : vector<1x384x128xbf16> to vector<384x128xbf16>
    %cst_52 = arith.constant dense<0.000000e+00> : vector<128x128xf32>
    %76 = tpu.matmul %73, %75, %cst_52 {dimension_numbers = #tpu.dot_dimension_numbers<[1], [0], [0], [1], [0, 0, 1, 1], [], []>} : vector<128x384xbf16>, vector<384x128xbf16>, vector<128x128xf32> -> vector<128x128xf32>
    %c0_53 = arith.constant 0 : index
    %c0_54 = arith.constant 0 : index
    %77 = vector.load %arg11[%c0_53, %c0_54] : memref<160x128xf32, #tpu.memory_space<vmem>>, vector<128x128xf32>
    tpu.vector_store %arg11[%c0_53, %c0_54], %76 {strides = array<i32>} : memref<160x128xf32, #tpu.memory_space<vmem>>, vector<128x128xf32>,
    %c0_55 = arith.constant 0 : index
    %c1_56 = arith.constant 1 : index
    %c0_57 = arith.constant 0 : index
    %78 = vector.load %arg10[%c0_55, %c1_56, %c0_57] : memref<10x18x128xbf16, #tpu.memory_space<vmem>>, vector<10x16x128xbf16>
    %79 = vector.shape_cast %78 : vector<10x16x128xbf16> to vector<160x128xbf16>
    %80 = vector.extract_strided_slice %79 {offsets = [0, 0], sizes = [128, 128], strides = [1, 1]} : vector<160x128xbf16> to vector<128x128xbf16>
    %81 = vector.extract_strided_slice %79 {offsets = [16, 0], sizes = [128, 128], strides = [1, 1]} : vector<160x128xbf16> to vector<128x128xbf16>
    %82 = vector.extract_strided_slice %79 {offsets = [32, 0], sizes = [128, 128], strides = [1, 1]} : vector<160x128xbf16> to vector<128x128xbf16>
    %83 = tpu.concatenate %80, %81, %82 in 1 : vector<128x128xbf16>, vector<128x128xbf16>, vector<128x128xbf16> -> vector<128x384xbf16>
    %c1_58 = arith.constant 1 : index
    %c0_59 = arith.constant 0 : index
    %c0_60 = arith.constant 0 : index
    %84 = vector.load %arg6[%c1_58, %c0_59, %c0_60] : memref<3x384x128xbf16, #tpu.memory_space<vmem>>, vector<1x384x128xbf16>
    %85 = vector.shape_cast %84 : vector<1x384x128xbf16> to vector<384x128xbf16>
    %cst_61 = arith.constant dense<0.000000e+00> : vector<128x128xf32>
    %86 = tpu.matmul %83, %85, %cst_61 {dimension_numbers = #tpu.dot_dimension_numbers<[1], [0], [0], [1], [0, 0, 1, 1], [], []>} : vector<128x384xbf16>, vector<384x128xbf16>, vector<128x128xf32> -> vector<128x128xf32>
    %c0_62 = arith.constant 0 : index
    %c0_63 = arith.constant 0 : index
    %87 = vector.load %arg11[%c0_62, %c0_63] : memref<160x128xf32, #tpu.memory_space<vmem>>, vector<128x128xf32>
    %88 = arith.addf %87, %86 : vector<128x128xf32>
    %c0_64 = arith.constant 0 : index
    %c0_65 = arith.constant 0 : index
    %89 = vector.load %arg11[%c0_64, %c0_65] : memref<160x128xf32, #tpu.memory_space<vmem>>, vector<128x128xf32>
    tpu.vector_store %arg11[%c0_64, %c0_65], %88 {strides = array<i32>} : memref<160x128xf32, #tpu.memory_space<vmem>>, vector<128x128xf32>,
    %c0_66 = arith.constant 0 : index
    %c2_67 = arith.constant 2 : index
    %c0_68 = arith.constant 0 : index
    %90 = vector.load %arg10[%c0_66, %c2_67, %c0_68] : memref<10x18x128xbf16, #tpu.memory_space<vmem>>, vector<10x16x128xbf16>
    %91 = vector.shape_cast %90 : vector<10x16x128xbf16> to vector<160x128xbf16>
    %92 = vector.extract_strided_slice %91 {offsets = [0, 0], sizes = [128, 128], strides = [1, 1]} : vector<160x128xbf16> to vector<128x128xbf16>
    %93 = vector.extract_strided_slice %91 {offsets = [16, 0], sizes = [128, 128], strides = [1, 1]} : vector<160x128xbf16> to vector<128x128xbf16>
    %94 = vector.extract_strided_slice %91 {offsets = [32, 0], sizes = [128, 128], strides = [1, 1]} : vector<160x128xbf16> to vector<128x128xbf16>
    %95 = tpu.concatenate %92, %93, %94 in 1 : vector<128x128xbf16>, vector<128x128xbf16>, vector<128x128xbf16> -> vector<128x384xbf16>
    %c2_69 = arith.constant 2 : index
    %c0_70 = arith.constant 0 : index
    %c0_71 = arith.constant 0 : index
    %96 = vector.load %arg6[%c2_69, %c0_70, %c0_71] : memref<3x384x128xbf16, #tpu.memory_space<vmem>>, vector<1x384x128xbf16>
    %97 = vector.shape_cast %96 : vector<1x384x128xbf16> to vector<384x128xbf16>
    %cst_72 = arith.constant dense<0.000000e+00> : vector<128x128xf32>
    %98 = tpu.matmul %95, %97, %cst_72 {dimension_numbers = #tpu.dot_dimension_numbers<[1], [0], [0], [1], [0, 0, 1, 1], [], []>} : vector<128x384xbf16>, vector<384x128xbf16>, vector<128x128xf32> -> vector<128x128xf32>
    %c0_73 = arith.constant 0 : index
    %c0_74 = arith.constant 0 : index
    %99 = vector.load %arg11[%c0_73, %c0_74] : memref<160x128xf32, #tpu.memory_space<vmem>>, vector<128x128xf32>
    %100 = arith.addf %99, %98 : vector<128x128xf32>
    %c0_75 = arith.constant 0 : index
    %c0_76 = arith.constant 0 : index
    %101 = vector.load %arg11[%c0_75, %c0_76] : memref<160x128xf32, #tpu.memory_space<vmem>>, vector<128x128xf32>
    tpu.vector_store %arg11[%c0_75, %c0_76], %100 {strides = array<i32>} : memref<160x128xf32, #tpu.memory_space<vmem>>, vector<128x128xf32>,
    %c0_77 = arith.constant 0 : index
    %c0_78 = arith.constant 0 : index
    %102 = vector.load %arg11[%c0_77, %c0_78] : memref<160x128xf32, #tpu.memory_space<vmem>>, vector<128x128xf32>
    %c0_79 = arith.constant 0 : index
    %c0_80 = arith.constant 0 : index
    %103 = vector.load %arg7[%c0_79, %c0_80] : memref<1x128xf32, #tpu.memory_space<vmem>>, vector<1x128xf32>
    %104 = vector.shape_cast %103 : vector<1x128xf32> to vector<128xf32>
    %105 = vector.shape_cast %104 : vector<128xf32> to vector<1x128xf32>
    %106 = vector.broadcast %105 : vector<1x128xf32> to vector<128x128xf32>
    %107 = arith.mulf %102, %106 : vector<128x128xf32>
    %c0_81 = arith.constant 0 : index
    %c0_82 = arith.constant 0 : index
    %108 = vector.load %arg8[%c0_81, %c0_82] : memref<1x128xf32, #tpu.memory_space<vmem>>, vector<1x128xf32>
    %109 = vector.shape_cast %108 : vector<1x128xf32> to vector<128xf32>
    %110 = vector.shape_cast %109 : vector<128xf32> to vector<1x128xf32>
    %111 = vector.broadcast %110 : vector<1x128xf32> to vector<128x128xf32>
    %112 = arith.addf %107, %111 : vector<128x128xf32>
    %c2_i32 = arith.constant 2 : i32
    %113 = arith.addi %1, %c2_i32 : i32
    %c0_83 = arith.constant 0 : index
    %114 = arith.index_cast %113 : i32 to index
    %c1_84 = arith.constant 1 : index
    %c0_85 = arith.constant 0 : index
    %115 = vector.load %arg2[%c0_83, %114, %c1_84, %c0_85] : memref<1x20x18x128xbf16, #tpu.memory_space<vmem>>, vector<1x8x16x128xbf16>
    %116 = vector.shape_cast %115 : vector<1x8x16x128xbf16> to vector<8x16x128xbf16>
    %117 = arith.extf %116 : vector<8x16x128xbf16> to vector<8x16x128xf32>
    %118 = vector.shape_cast %117 : vector<8x16x128xf32> to vector<128x128xf32>
    %119 = arith.addf %112, %118 : vector<128x128xf32>
    %cst_86 = arith.constant 0.000000e+00 : f32
    %120 = vector.broadcast %cst_86 : f32 to vector<128x128xf32>
    %121 = arith.maximumf %119, %120 : vector<128x128xf32>
    %122 = vector.shape_cast %121 : vector<128x128xf32> to vector<8x16x128xf32>
    %123 = arith.truncf %122 : vector<8x16x128xf32> to vector<8x16x128xbf16>
    %c0_87 = arith.constant 0 : index
    %c0_88 = arith.constant 0 : index
    %c0_89 = arith.constant 0 : index
    %c0_90 = arith.constant 0 : index
    %124 = vector.load %arg9[%c0_87, %c0_88, %c0_89, %c0_90] : memref<1x8x16x128xbf16, #tpu.memory_space<vmem>>, vector<1x8x16x128xbf16>
    %125 = vector.shape_cast %124 : vector<1x8x16x128xbf16> to vector<8x16x128xbf16>
    %126 = vector.shape_cast %123 : vector<8x16x128xbf16> to vector<1x8x16x128xbf16>
    tpu.vector_store %arg9[%c0_87, %c0_88, %c0_89, %c0_90], %126 {strides = array<i32>} : memref<1x8x16x128xbf16, #tpu.memory_space<vmem>>, vector<1x8x16x128xbf16>,
    return
  }
  func.func @transform_0(%arg0: i32, %arg1: i32) -> (i32, i32, i32, i32) {
    %c0_i32 = arith.constant 0 : i32
    %c0_i32_0 = arith.constant 0 : i32
    %c0_i32_1 = arith.constant 0 : i32
    %c0_i32_2 = arith.constant 0 : i32
    return %arg0, %c0_i32, %c0_i32_0, %c0_i32_1 : i32, i32, i32, i32
  }
  func.func @transform_1(%arg0: i32, %arg1: i32) -> (i32, i32, i32) {
    %c0_i32 = arith.constant 0 : i32
    %c0_i32_0 = arith.constant 0 : i32
    %c0_i32_1 = arith.constant 0 : i32
    %c0_i32_2 = arith.constant 0 : i32
    return %c0_i32, %c0_i32_0, %c0_i32_1 : i32, i32, i32
  }
  func.func @transform_2(%arg0: i32, %arg1: i32) -> (i32, i32) {
    %c0_i32 = arith.constant 0 : i32
    %c0_i32_0 = arith.constant 0 : i32
    %c0_i32_1 = arith.constant 0 : i32
    return %c0_i32, %c0_i32_0 : i32, i32
  }
  func.func @transform_3(%arg0: i32, %arg1: i32) -> (i32, i32) {
    %c0_i32 = arith.constant 0 : i32
    %c0_i32_0 = arith.constant 0 : i32
    %c0_i32_1 = arith.constant 0 : i32
    return %c0_i32, %c0_i32_0 : i32, i32
  }
  func.func @transform_4(%arg0: i32, %arg1: i32) -> (i32, i32, i32) {
    %c0_i32 = arith.constant 0 : i32
    %c0_i32_0 = arith.constant 0 : i32
    %c0_i32_1 = arith.constant 0 : i32
    %c0_i32_2 = arith.constant 0 : i32
    return %c0_i32, %c0_i32_0, %c0_i32_1 : i32, i32, i32
  }
  func.func @transform_5(%arg0: i32, %arg1: i32) -> (i32, i32) {
    %c0_i32 = arith.constant 0 : i32
    %c0_i32_0 = arith.constant 0 : i32
    %c0_i32_1 = arith.constant 0 : i32
    return %c0_i32, %c0_i32_0 : i32, i32
  }
  func.func @transform_6(%arg0: i32, %arg1: i32) -> (i32, i32) {
    %c0_i32 = arith.constant 0 : i32
    %c0_i32_0 = arith.constant 0 : i32
    %c0_i32_1 = arith.constant 0 : i32
    return %c0_i32, %c0_i32_0 : i32, i32
  }
  func.func @transform_7(%arg0: i32, %arg1: i32) -> (i32, i32, i32, i32) {
    %c0_i32 = arith.constant 0 : i32
    %c0_i32_0 = arith.constant 0 : i32
    %c0_i32_1 = arith.constant 0 : i32
    return %arg0, %arg1, %c0_i32, %c0_i32_0 : i32, i32, i32, i32
  }
}

</mosaic_0001>

<bundles_post_ra>
// kernel: tpu_custom_call.1
= control target key start
LH: loop header
LB: loop body
LE: loop exit
PB: predicated region body
PF: predicated region fallthrough
CT: control target
= control target key end

     0   :  { %s7403_s0 = inlined_call_operand.vmem [shape: bf16[2,20,18,128], index: 0, kind: input, shape index: {}]   ;;  %s7404_s1 = inlined_call_operand.vmem [shape: bf16[3,384,128], index: 1, kind: input, shape index: {}]   ;;  %s7405_s2 = inlined_call_operand.vmem [shape: f32[1,128], index: 2, kind: input, shape index: {}]   ;;  %s7406_s3 = inlined_call_operand.vmem [shape: f32[1,128], index: 3, kind: input, shape index: {}]   ;;  %s7407_s4 = inlined_call_operand.hbm [shape: bf16[3,384,128], index: 4, kind: input, shape index: {}]   ;;  %s7408_s5 = inlined_call_operand.vmem [shape: f32[1,128], index: 5, kind: input, shape index: {}]   ;;  %s7409_s6 = inlined_call_operand.vmem [shape: f32[1,128], index: 6, kind: input, shape index: {}]   ;;  %s7410_s7 = inlined_call_operand.hbm [shape: bf16[2,16,16,128], index: 7, kind: output, shape index: {}]  }
   0x1   :  { %7414 = sst [smem:[#allocation12_spill]] %s7407_s4 }
   0x2   :  { %12 = vsyncpa [#allocation5], 0 }
   0x3   :  { %13 = vsyncpa [#allocation6], 0 }
   0x4   :  { %15 = vsyncpa [#allocation6 + $0x1], 0  ;;  %s6110_s24 = smov 0   ;;  %s6112_s25 = smov 0  }
   0x5   :  { %s6114_s26 = smov 0   ;;  %s6116_s27 = smov 0  }
   0x6   :  { %s6118_s28 = smov 0   ;;  %s6120_s29 = smov 0  }
   0x7   :  { %s6122_s30 = smov 0   ;;  %s6124_s8 = smov 0  }
   0x8 LB: > { %s4760_s9 = sadd.s32 4294967295, %s6061_s8   ;;  %s4761_s10 = sadd.s32 4294967294, %s6061_s8   ;;  %s6061_s8 = sphi %s6124_s8, %s21_s8   ;;  %s6057_s30 = sphi %s6122_s30, %s7443_s30   ;;  %s6053_s29 = sphi %s6120_s29, %s7442_s29   ;;  %s6049_s28 = sphi %s6118_s28, %s7441_s28   ;;  %s6045_s27 = sphi %s6116_s27, %s7440_s27   ;;  %s6041_s26 = sphi %s6114_s26, %s7439_s26   ;;  %s6037_s25 = sphi %s6112_s25, %s7438_s25   ;;  %s6033_s24 = sphi %s6110_s24, %s7437_s24  }
   0x9   : > { %s30_s11 = sadd.s32 1, %s6053_s29  ;;  %s33_s12 = sadd.s32 1, %s6057_s30 }
   0xa   : > { %p31_p0 = scmp.ge.s32.totalorder %s30_s11, 2  ;;  %s194_s13 = sadd.s32 1, %s6041_s26 }
   0xb   : > { %p204_p1 = scmp.ne.s32.totalorder %s6041_s26, %s6037_s25  ;;  %p205_p2 = scmp.eq.s32.totalorder %s4760_s9, 3 }
   0xc   : > { %s7445_s11 = smov (%p31_p0, %s30_s11), 0  ;;  %s7447_s12 = smov (!%p31_p0, %s33_s12), %s6057_s30 }
   0xd   : > { %7415 = sst [smem:[#allocation10_spill]] %s7445_s11  ;;  %s190_s14 = ssub.s32 %s6053_s29, %s7445_s11 }
   0xe   : > { %p6162_p3 = por %p205_p2, %p204_p1  ;;  %p35_p4 = scmp.ge.s32.totalorder %s7447_s12, 2 }
   0xf   : > { %p210_p5 = scmp.ne.s32.totalorder %s6037_s25, %s6033_s24  ;;  %p211_p6 = scmp.eq.s32.totalorder %s4761_s10, 3 }
  0x10   : > { %p4762_p7 = scmp.ge.s32.totalorder %s6061_s8, 1  ;;  %s7449_s12 = smov (%p35_p4, %s7447_s12), 0 }
  0x11   : > { %7417 = sst [smem:[#allocation11_spill]] %s7449_s12  ;;  %p6171_p8 = por %p211_p6, %p210_p5 }
  0x12   : > { %p218_p9 = scmp.lt.s32.totalorder %s6061_s8, 5  ;;  %s189_s17 = ssub.s32 %s6057_s30, %s7449_s12 }
  0x13   : > { %s191_s18 = sor.u32 %s190_s14, %s189_s17  ;;  %p6182_p12 = scmp.eq.s32.totalorder %s4760_s9, 0 }
  0x14   : > { %p6178_p10 = pnand %p4762_p7, %p218_p9  ;;  %p192_p11 = scmp.eq.s32.totalorder %s191_s18, 0 }
  0x15   : > { %s7421_s4 = sld [smem:[#allocation12_spill]]  ;;  %s6063_s14 = smov [#allocation4]  }
  0x16   : > { %p5847_p13 = pneg %p6178_p10  ;;  %s240_s17 = sshll.u32 %s6063_s14, 4  ;;  %s241_s17 = int_to_ptr.vmem [resolvable:$true] %s240_s17 }
  0x17   : > { %s6192_s10 = scalar_select %p192_p11, %s6041_s26, %s194_s13  }
  0x18   : > { %p5848_p0 = pnand %p6182_p12, %p5847_p13  ;;  %s6064_s18 = smov 64  }
  0x19   : > { %s6065_s9 = smov 4   ;;  %270 = sbr.rel (%p6178_p10) target bundleno = 1314 (0x522), region = 48 }
  0x1b   : > { %s238_s23 = sshll.u32 %s7421_s4, 4  ;;  %s239_s23 = int_to_ptr.hbm [resolvable:$true] %s238_s23 }
  0x1c   : > { %5850 = dma.hbm_to_vmem [thread:$0]  (!%p5848_p0), %s239_s23, 9216, %s241_s17, [#allocation5], %s6064_s18, %s6064_s18, %s6065_s9  }
  0x1e   : > { %6024 = dma.done.wait (%p6182_p12), [#allocation5], 9216  }
  0x1f   : > { %6026 = vsyncadd (%p6182_p12), [#allocation5], 4294958080  ;;  %s7411_s13 = sand.u32 1, %s6037_s25   ;;  %v5609_v0 = vld [vmem:[%s7404_s1 + $0x38] sm:$0xff]  ;;  %v5608_v2 = vld [vmem:[%s7404_s1 + $0x30] sm:$0xff]  ;;  %p303_p1 = scmp.lt.s32.totalorder %s6049_s28, 1 }
  0x20   : > { %s6205_s21 = sshll.u32 %s7411_s13, 6  ;;  %v5617_v1 = vld [vmem:[%s7404_s1 + $0x78] sm:$0xff]  ;;  %602 = vmatpush.bf16.msra.mxu0 %v5609_v0  ;;  %v5616_v3 = vld [vmem:[%s7404_s1 + $0x70] sm:$0xff]  ;;  %v5607_v4 = vld [vmem:[%s7404_s1 + $0x28] sm:$0xff]  ;;  %s5589_s4 = smul.u32 96, %s6045_s27  ;;  %vm1676_vm3 = vcmask 1042432  }
  0x21   : > { %661 = vmatpush.bf16.msra.mxu1 %v5617_v1  ;;  %5824 = vmatpush.bf16.msra.mxu3 %v5617_v1  ;;  %v5615_v5 = vld [vmem:[%s7404_s1 + $0x68] sm:$0xff]  ;;  %v5625_v6 = vld [vmem:[%s7404_s1 + $0xb8] sm:$0xff]  ;;  %v5606_v7 = vld [vmem:[%s7404_s1 + $0x20] sm:$0xff]  ;;  %s304_s23 = scalar_select %p303_p1, %s6049_s28, 1  ;;  %vm835_vm0 = vsmask.f32 3328 }
  0x22   : > { %5832 = vmatpush.bf16.msra.mxu2 %v5625_v6  ;;  %v5614_v8 = vld [vmem:[%s7404_s1 + $0x60] sm:$0xff]  ;;  %v5605_v9 = vld [vmem:[%s7404_s1 + $0x18] sm:$0xff]  ;;  %v5624_v11 = vld [vmem:[%s7404_s1 + $0xb0] sm:$0xff]  ;;  %vm836_vm1 = vsmask.f32 7440  ;;  %vm1677_vm4 = vcmask 1046532  }
  0x23   : > { %v5613_v10 = vld [vmem:[%s7404_s1 + $0x58] sm:$0xff]  ;;  %v5604_v12 = vld [vmem:[%s7404_s1 + $0x10] sm:$0xff]  ;;  %s5840_s9 = smul.u32 240, %s304_s23  ;;  %v5623_v14 = vld [vmem:[%s7404_s1 + $0xa8] sm:$0xff]  ;;  %vm2552_vm6 = vcmask 1043456   ;;  %vm2559_vm10 = vcmask 1040384  }
  0x24   : > { %603 = vmatpush.bf16.msra.mxu0 %v5608_v2  ;;  %v5612_v13 = vld [vmem:[%s7404_s1 + $0x50] sm:$0xff]  ;;  %v5603_v15 = vld [vmem:[%s7404_s1 + $0x8] sm:$0xff]  ;;  %v5622_v17 = vld [vmem:[%s7404_s1 + $0xa0] sm:$0xff]  ;;  %vm2553_vm7 = vsmask.f32 7938  ;;  %s7060_s19 = scalar_lea.vmem [#allocation7], %s6205_s21 }
  0x25   : > { %662 = vmatpush.bf16.msra.mxu1 %v5616_v3  ;;  %5825 = vmatpush.bf16.msra.mxu3 %v5616_v3  ;;  %v5611_v16 = vld [vmem:[%s7404_s1 + $0x48] sm:$0xff]  ;;  %s307_s23 = scalar_lea.vmem %s7403_s0, %s5840_s9  ;;  %v5602_v18 = vld [vmem:[%s7404_s1] sm:$0xff]  ;;  %v5621_v20 = vld [vmem:[%s7404_s1 + $0x98] sm:$0xff]  ;;  %vm2349_vm9 = vsmask.f32 256  ;;  %p5216_p2 = scmp.ne.s32.totalorder %s6045_s27, 0 }
  0x26   : > { %5833 = vmatpush.bf16.msra.mxu2 %v5624_v11  ;;  %v5610_v19 = vld [vmem:[%s7404_s1 + $0x40] sm:$0xff]  ;;  %s6273_s20 = scalar_lea.vmem %s307_s23, %s5589_s4  ;;  %v5620_v23 = vld [vmem:[%s7404_s1 + $0x90] sm:$0xff]  ;;  %v5619_v24 = vld [vmem:[%s7404_s1 + $0x88] sm:$0xff]  ;;  %vm2350_vm11 = vsmask.f32 4368 }
  0x27   : > { %v5590_v21 = vld [vmem:[%s6273_s20] sm:$0xff]  ;;  %v5591_v22 = vld [vmem:[%s6273_s20 + $0xc] sm:$0xff]  ;;  %v6291_v27 = vld [vmem:[%s6273_s20 + $0x18] sm:$0xff] }
  0x28   : > { %604 = vmatpush.bf16.msra.mxu0 %v5607_v4  ;;  %v5618_v25 = vld [vmem:[%s7404_s1 + $0x80] sm:$0xff]  ;;  %v5596_v28 = vld [vmem:[%s6273_s20 + $0x48] sm:$0xff]  ;;  %v5597_v30 = vld [vmem:[%s6273_s20 + $0x54] sm:$0xff] }
  0x29   : > { %663 = vmatpush.bf16.msra.mxu1 %v5615_v5  ;;  %5826 = vmatpush.bf16.msra.mxu3 %v5615_v5  ;;  %v5595_v26 = vld [vmem:[%s6273_s20 + $0x3c] sm:$0xff]  ;;  %v6296_v29 = vld [vmem:[%s6273_s20 + $0x24] sm:$0xff]  ;;  %v6302_v31 = vld [vmem:[%s6273_s20 + $0x30] sm:$0xff] }
  0x2a   : > { %5834 = vmatpush.bf16.msra.mxu2 %v5623_v14  ;;  %v5598_v32 = vld [vmem:[%s6273_s20 + $0x60] sm:$0xff]  ;;  %v5599_v33 = vld [vmem:[%s6273_s20 + $0x6c] sm:$0xff]  ;;  %v5600_v34 = vld [vmem:[%s6273_s20 + $0x78] sm:$0xff] }
  0x2b   : > { %v5601_v35 = vld [vmem:[%s6273_s20 + $0x84] sm:$0xff]  ;;  %v5633_v36 = vld [vmem:[%s7404_s1 + $0xf8] sm:$0xff]  ;;  %v5632_v40 = vld [vmem:[%s7404_s1 + $0xf0] sm:$0xff] }
  0x2c   : > { %605 = vmatpush.bf16.msra.mxu0 %v5606_v7  ;;  %v5641_v41 = vld [vmem:[%s7404_s1 + $0x138] sm:$0xff]  ;;  %v5631_v42 = vld [vmem:[%s7404_s1 + $0xe8] sm:$0xff]  ;;  %v5640_v45 = vld [vmem:[%s7404_s1 + $0x130] sm:$0xff] }
  0x2d   : > { %664 = vmatpush.bf16.msra.mxu1 %v5614_v8  ;;  %5827 = vmatpush.bf16.msra.mxu3 %v5614_v8  ;;  %v5630_v46 = vld [vmem:[%s7404_s1 + $0xe0] sm:$0xff]  ;;  %v5639_v47 = vld [vmem:[%s7404_s1 + $0x128] sm:$0xff]  ;;  %v5629_v51 = vld [vmem:[%s7404_s1 + $0xd8] sm:$0xff] }
  0x2e   : > { %5835 = vmatpush.bf16.msra.mxu2 %v5622_v17  ;;  %v5649_v52 = vld [vmem:[%s7404_s1 + $0x178] sm:$0xff]  ;;  %v5638_v53 = vld [vmem:[%s7404_s1 + $0x120] sm:$0xff]  ;;  %v5628_v56 = vld [vmem:[%s7404_s1 + $0xd0] sm:$0xff] }
  0x2f   : > { %v799_v54 = vld [vmem:[%s6273_s20] sm:$0xf]  ;;  %v800_v55 = vld [vmem:[%s6273_s20 + $0x4] sm:$0xf]  ;;  %v5648_v0 = vld [vmem:[%s7404_s1 + $0x170] sm:$0xff] }
  0x30   : > { %606 = vmatpush.bf16.msra.mxu0 %v5605_v9  ;;  %v839_v57 = vshrl.u32 %v799_v54, 16  ;;  %v842_v58 = vshll.u32 %v799_v54, 16  ;;  %v848_v59 = vshll.u32 %v800_v55, 16  ;;  %v852_v60 = vshrl.u32 %v800_v55, 16  ;;  %v801_v5 = vld [vmem:[%s6273_s20 + $0x8] sm:$0x1]  ;;  %vm6373_vm2 = vmor %vm835_vm0, %vm836_vm1 }
  0x31   : > { %665 = vmatpush.bf16.msra.mxu1 %v5613_v10  ;;  %5828 = vmatpush.bf16.msra.mxu3 %v5613_v10  ;;  %v858_v9 = vshll.u32 %v801_v5, 16  ;;  %v5647_v10 = vld [vmem:[%s7404_s1 + $0x168] sm:$0xff]  ;;  %vm6645_vm5 = vmor %vm1676_vm3, %vm1677_vm4 }
  0x32   : > { %5836 = vmatpush.bf16.msra.mxu2 %v5621_v20  ;;  %v841_v1 = vrot.slane %v839_v57, 4  ;;  %v844_v2 = vrot.slane %v842_v58, 5  ;;  %v850_v3 = vrot.slane %v848_v59, 5  ;;  %v854_v4 = vrot.slane %v852_v60, 4  ;;  %v807_v60 = vld [vmem:[%s6273_s20 + $0x20] sm:$0x1]  ;;  %vm6858_vm8 = vmand %vm2552_vm6, %vm2553_vm7 }
  0x33   : > { %vm6871_vm12 = vmand %vm2559_vm10, %vm2349_vm9 }
  0x34   : > { %607 = vmatpush.bf16.msra.mxu0 %v5604_v12  ;;  %v845_v7 = vor.u32 %v844_v2, %v841_v1  ;;  %v855_v8 = vor.u32 %v854_v4, %v850_v3  ;;  %v5637_v12 = vld [vmem:[%s7404_s1 + $0x118] sm:$0xff]  ;;  %vm6878_vm13 = vmor %vm2349_vm9, %vm2350_vm11 }
  0x35   : > { %666 = vmatpush.bf16.msra.mxu1 %v5612_v13  ;;  %5829 = vmatpush.bf16.msra.mxu3 %v5612_v13  ;;  %vm6899_vm14 = vmand %vm2559_vm10, %vm2553_vm7 }
  0x36   : > { %5837 = vmatpush.bf16.msra.mxu2 %v5620_v23 }
  0x38   : > { %608 = vmatpush.bf16.msra.mxu0 %v5603_v15  ;;  %v860_v15 = vrot.slane %v858_v9, 5  ;;  %v5634_v9 = vld [vmem:[%s7404_s1 + $0x100] sm:$0xff] }
  0x39   : > { %667 = vmatpush.bf16.msra.mxu1 %v5611_v16  ;;  %5830 = vmatpush.bf16.msra.mxu3 %v5611_v16  ;;  %v5626_v16 = vld [vmem:[%s7404_s1 + $0xc0] sm:$0xff] }
  0x3a   : > { %5838 = vmatpush.bf16.msra.mxu2 %v5619_v24 }
  0x3c   : > { %609 = vmatpush.bf16.msra.mxu0 %v5602_v18 }
  0x3d   : > { %668 = vmatpush.bf16.msra.mxu1 %v5610_v19  ;;  %5831 = vmatpush.bf16.msra.mxu3 %v5610_v19 }
  0x3e   : > { %5839 = vmatpush.bf16.msra.mxu2 %v5618_v25 }
  0x3f   : > { %610 = vmatmul.bf16.vlgmr.msra.gmra.mxu0 %v5590_v21 }
  0x40   : > { %720 = vmatpush.bf16.msrb.mxu0 %v5625_v6  ;;  %669 = vmatmul.bf16.vlgmr.msra.gmra.mxu1 %v5591_v22  ;;  %v5627_v6 = vld [vmem:[%s7404_s1 + $0xc8] sm:$0xff] }
  0x41   : > { %743 = vmatmul.bf16.vlgmr.msra.gmra.mxu2 %v5595_v26  ;;  %704 = vmatmul.bf16.vlgmr.msra.gmra.mxu3 %v5598_v32 }
  0x42   : > { %1367 = vmatpush.bf16.msrb.mxu3 %v5633_v36  ;;  %1485 = vmatpush.bf16.msrb.mxu1 %v5649_v52 }
  0x44   : > { %721 = vmatpush.bf16.msrb.mxu0 %v5624_v11  ;;  %v846_v11 = vrot.slane %v845_v7, 4 }
  0x46   : > { %1368 = vmatpush.bf16.msrb.mxu3 %v5632_v40  ;;  %1486 = vmatpush.bf16.msrb.mxu1 %v5648_v0  ;;  %v805_v40 = vld [vmem:[%s6273_s20 + $0x18] sm:$0xf] }
  0x47   : > { %v887_v52 = vshrl.u32 %v805_v40, 16 }
  0x48   : > { %722 = vmatpush.bf16.msrb.mxu0 %v5623_v14  ;;  %v856_v14 = vrot.slane %v855_v8, 4  ;;  %v5665_v8 = vld [vmem:[%s7404_s1 + $0x1f8] sm:$0xff] }
  0x49   : > { %v889_v0 = vrot.slane %v887_v52, 4 }
  0x4a   : > { %1369 = vmatpush.bf16.msrb.mxu3 %v5631_v42  ;;  %1487 = vmatpush.bf16.msrb.mxu1 %v5647_v10  ;;  %v861_v18 = vsel %vm6373_vm2, %v856_v14, %v860_v15 }
  0x4c   : > { %723 = vmatpush.bf16.msrb.mxu0 %v5622_v17  ;;  %v851_v17 = vsel %vm6373_vm2, %v846_v11, %v850_v3  ;;  %v5643_v3 = vld [vmem:[%s7404_s1 + $0x148] sm:$0xff]  ;;  %v906_v11 = vshll.u32 %v807_v60, 16 }
  0x4d   : > { %v1126_v19 = vunpack.c.l.b16 %v851_v17 }
  0x4e   : > { %1370 = vmatpush.bf16.msrb.mxu3 %v5630_v46 }
  0x4f   : > { %615 = vmatmul.bf16.gmra.mxu0 %v5591_v22  ;;  %v5646_v22 = vld [vmem:[%s7404_s1 + $0x160] sm:$0xff] }
  0x50   : > { %724 = vmatpush.bf16.msrb.mxu0 %v5621_v20  ;;  %674 = vmatmul.bf16.gmra.mxu1 %v6291_v27 }
  0x51   : > { %748 = vmatmul.bf16.gmra.mxu2 %v5596_v28  ;;  %709 = vmatmul.bf16.gmra.mxu3 %v5599_v33 }
  0x52   : > { %1371 = vmatpush.bf16.msrb.mxu3 %v5629_v51  ;;  %1488 = vmatpush.bf16.msrb.mxu1 %v5646_v22  ;;  %v804_v51 = vld [vmem:[%s6273_s20 + $0x14] sm:$0x1]  ;;  %v5642_v22 = vld [vmem:[%s7404_s1 + $0x140] sm:$0xff] }
  0x53   : > { %v882_v57 = vshll.u32 %v804_v51, 16 }
  0x54   : > { %725 = vmatpush.bf16.msrb.mxu0 %v5620_v23  ;;  %v1127_v23 = vunpack.c.l.b16 %v861_v18 }
  0x56   : > { %1372 = vmatpush.bf16.msrb.mxu3 %v5628_v56 }
  0x58   : > { %726 = vmatpush.bf16.msrb.mxu0 %v5619_v24 }
  0x5a   : > { %1373 = vmatpush.bf16.msrb.mxu3 %v5627_v6  ;;  %v884_v6 = vrot.slane %v882_v57, 5 }
  0x5c   : > { %727 = vmatpush.bf16.msrb.mxu0 %v5618_v25 }
  0x5e   : > { %1374 = vmatpush.bf16.msrb.mxu3 %v5626_v16 }
  0x5f   : > { %620 = vmatmul.bf16.gmra.mxu0 %v6291_v27 }
  0x60   : > { %679 = vmatmul.bf16.gmra.mxu1 %v6296_v29  ;;  %1426 = vmatpush.bf16.msra.mxu0 %v5641_v41 }
  0x61   : > { %753 = vmatmul.bf16.gmra.mxu2 %v5597_v30  ;;  %714 = vmatmul.bf16.gmra.mxu3 %v5600_v34 }
  0x62   : > { %2063 = vmatpush.bf16.msra.mxu3 %v5665_v8 }
  0x64   : > { %1427 = vmatpush.bf16.msra.mxu0 %v5640_v45  ;;  %v5644_v45 = vld [vmem:[%s7404_s1 + $0x150] sm:$0xff] }
  0x68   : > { %1428 = vmatpush.bf16.msra.mxu0 %v5639_v47 }
  0x6c   : > { %1429 = vmatpush.bf16.msra.mxu0 %v5638_v53  ;;  %v890_v53 = vshll.u32 %v805_v40, 16  ;;  %v808_v40 = vld [vmem:[%s6273_s20 + $0x24] sm:$0xf] }
  0x6e   : > { %v892_v1 = vrot.slane %v890_v53, 5 }
  0x6f   : > { %625 = vmatmul.bf16.gmra.mxu0 %v6296_v29 }
  0x70   : > { %684 = vmatmul.bf16.gmra.mxu1 %v6302_v31  ;;  %1430 = vmatpush.bf16.msra.mxu0 %v5637_v12  ;;  %v893_v10 = vor.u32 %v892_v1, %v889_v0  ;;  %v5664_v0 = vld [vmem:[%s7404_s1 + $0x1f0] sm:$0xff] }
  0x71   : > { %758 = vmatmul.bf16.gmra.mxu2 %v5598_v32  ;;  %2064 = vmatpush.bf16.msra.mxu3 %v5664_v0 }
  0x72   : > { %v894_v18 = vrot.slane %v893_v10, 4 }
  0x7f   : > { %630 = vmatmul.bf16.gmra.mxu0 %v6302_v31 }
  0x80   : > { %689 = vmatmul.bf16.gmra.mxu1 %v5595_v26 }
  0x81   : > { %763 = vmatmul.bf16.gmra.mxu2 %v5599_v33 }
  0x8f   : > { %635 = vmatmul.bf16.gmra.mxu0 %v5595_v26  ;;  %v5636_v26 = vld [vmem:[%s7404_s1 + $0x110] sm:$0xff] }
  0x90   : > { %694 = vmatmul.bf16.gmra.mxu1 %v5596_v28  ;;  %1431 = vmatpush.bf16.msra.mxu0 %v5636_v26 }
  0x91   : > { %768 = vmatmul.bf16.gmra.mxu2 %v5600_v34  ;;  %v803_v34 = vld [vmem:[%s6273_s20 + $0x10] sm:$0xf] }
  0x9f   : > { %640 = vmatmul.bf16.gmra.mxu0 %v5596_v28  ;;  %v1146_v28 = vpack.c.b16 %v1127_v23, %v1126_v19  ;;  %v908_v19 = vrot.slane %v906_v11, 5 }
  0xa0   : > { %699 = vmatmul.bf16.gmra.mxu1 %v5597_v30 }
  0xa1   : > { %773 = vmatmul.bf16.gmra.mxu2 %v5601_v35  ;;  %1375 = vmatmul.bf16.vlgmr.msrb.gmra.mxu3 %v1146_v28 }
  0xaf   : > { %645 = vmatmul.bf16.gmra.mxu0 %v5597_v30  ;;  %v5645_v30 = vld [vmem:[%s7404_s1 + $0x158] sm:$0xff] }
  0xb0   : > { %1489 = vmatpush.bf16.msrb.mxu1 %v5645_v30 }
  0xb4   : > { %1490 = vmatpush.bf16.msrb.mxu1 %v5644_v45 }
  0xb8   : > { %1491 = vmatpush.bf16.msrb.mxu1 %v5643_v3 }
  0xbc   : > { %v611_v37 = vpop.f32.mrf.mxu0  ;;  %1492 = vmatpush.bf16.msrb.mxu1 %v5642_v22 }
  0xbd   : > { %v670_v38 = vpop.f32.mrf.mxu1 }
  0xbe   : > { %v6314_v39 = vadd.f32 %v670_v38, %v611_v37  ;;  %v872_v37 = vshll.u32 %v803_v34, 16  ;;  %v876_v38 = vshrl.u32 %v803_v34, 16 }
  0xbf   : > { %650 = vmatmul.bf16.gmra.mxu0 %v5598_v32  ;;  %v5635_v32 = vld [vmem:[%s7404_s1 + $0x108] sm:$0xff] }
  0xc0   : > { %1432 = vmatpush.bf16.msra.mxu0 %v5635_v32 }
  0xc4   : > { %v6325_v43 = vpop.f32.mrf.mxu0  ;;  %v6354_v61 = vpop.f32.mrf.mxu2  ;;  %1433 = vmatpush.bf16.msra.mxu0 %v5634_v9 }
  0xc5   : > { %v6327_v44 = vpop.f32.mrf.mxu1 }
  0xcc   : > { %v616_v48 = vpop.f32.mrf.mxu0  ;;  %v6389_v25 = vpop.f32.mrf.mxu2 }
  0xcd   : > { %v675_v49 = vpop.f32.mrf.mxu1 }
  0xce   : > { %v6338_v50 = vadd.f32 %v675_v49, %v616_v48  ;;  %v874_v48 = vrot.slane %v872_v37, 5  ;;  %v878_v49 = vrot.slane %v876_v38, 4  ;;  %v5673_v37 = vld [vmem:[%s7404_s1 + $0x238] sm:$0xff] }
  0xcf   : > { %655 = vmatmul.bf16.gmra.mxu0 %v5599_v33  ;;  %v802_v33 = vld [vmem:[%s6273_s20 + $0xc] sm:$0xf] }
  0xd0   : > { %v863_v35 = vshrl.u32 %v802_v33, 16  ;;  %v866_v36 = vshll.u32 %v802_v33, 16  ;;  %v879_v56 = vor.u32 %v878_v49, %v874_v48 }
  0xd2   : > { %v865_v46 = vrot.slane %v863_v35, 4  ;;  %v868_v47 = vrot.slane %v866_v36, 5  ;;  %v880_v5 = vrot.slane %v879_v56, 4  ;;  %v810_v56 = vld [vmem:[%s6273_s20 + $0x2c] sm:$0x1] }
  0xd3   : > { %v930_v60 = vshll.u32 %v810_v56, 16  ;;  %v814_v56 = vld [vmem:[%s6273_s20 + $0x3c] sm:$0xf] }
  0xd4   : > { %v6356_v62 = vpop.f32.mrf.mxu0  ;;  %v869_v55 = vor.u32 %v868_v47, %v865_v46  ;;  %v6413_v59 = vpop.f32.mrf.mxu2  ;;  %v885_v14 = vsel %vm6373_vm2, %v880_v5, %v884_v6  ;;  %v914_v46 = vshll.u32 %v808_v40, 16  ;;  %v959_v0 = vshrl.u32 %v814_v56, 16 }
  0xd5   : > { %v6358_v63 = vpop.f32.mrf.mxu1  ;;  %v1129_v17 = vunpack.c.l.b16 %v885_v14  ;;  %v932_v3 = vrot.slane %v930_v60, 5  ;;  %v5672_v14 = vld [vmem:[%s7404_s1 + $0x230] sm:$0xff] }
  0xd6   : > { %v870_v4 = vrot.slane %v869_v55, 4  ;;  %v916_v52 = vrot.slane %v914_v46, 5 }
  0xd8   : > { %v875_v12 = vsel %vm6373_vm2, %v870_v4, %v874_v48 }
  0xd9   : > { %v1128_v16 = vunpack.c.l.b16 %v875_v12 }
  0xdb   : > { %v6432_v28 = vpack.c.b16 %v1129_v17, %v1128_v16  ;;  %v812_v16 = vld [vmem:[%s6273_s20 + $0x34] sm:$0xf] }
  0xdc   : > { %v621_v20 = vpop.f32.mrf.mxu0  ;;  %v751_v36 = vpop.f32.mrf.mxu2 }
  0xdd   : > { %v680_v21 = vpop.f32.mrf.mxu1  ;;  %1380 = vmatmul.bf16.gmra.mxu3 %v6432_v28 }
  0xde   : > { %v6387_v24 = vadd.f32 %v680_v21, %v621_v20 }
  0xdf   : > { %728 = vmatmul.bf16.vlgmr.msrb.gmra.mxu0 %v6291_v27  ;;  %v806_v27 = vld [vmem:[%s6273_s20 + $0x1c] sm:$0xf] }
  0xe0   : > { %v896_v54 = vshll.u32 %v806_v27, 16  ;;  %v900_v58 = vshrl.u32 %v806_v27, 16  ;;  %2122 = vmatpush.bf16.msrb.mxu0 %v5673_v37  ;;  %v809_v27 = vld [vmem:[%s6273_s20 + $0x28] sm:$0xf] }
  0xe1   : > { %v920_v47 = vshll.u32 %v809_v27, 16  ;;  %v924_v48 = vshrl.u32 %v809_v27, 16 }
  0xe2   : > { %v898_v2 = vrot.slane %v896_v54, 5  ;;  %v902_v7 = vrot.slane %v900_v58, 4 }
  0xe3   : > { %v922_v53 = vrot.slane %v920_v47, 5  ;;  %v926_v54 = vrot.slane %v924_v48, 4 }
  0xe4   : > { %v6405_v41 = vpop.f32.mrf.mxu0  ;;  %v903_v15 = vor.u32 %v902_v7, %v898_v2  ;;  %v899_v30 = vsel %vm6373_vm2, %v894_v18, %v898_v2  ;;  %v754_v4 = vpop.f32.mrf.mxu2  ;;  %2123 = vmatpush.bf16.msrb.mxu0 %v5672_v14 }
  0xe5   : > { %v6407_v42 = vpop.f32.mrf.mxu1  ;;  %v1130_v33 = vunpack.c.l.b16 %v899_v30  ;;  %v927_v58 = vor.u32 %v926_v54, %v922_v53 }
  0xe6   : > { %v904_v23 = vrot.slane %v903_v15, 4  ;;  %v811_v15 = vld [vmem:[%s6273_s20 + $0x30] sm:$0xf] }
  0xe7   : > { %v928_v2 = vrot.slane %v927_v58, 4 }
  0xe8   : > { %v909_v32 = vsel %vm6373_vm2, %v904_v23, %v908_v19  ;;  %v938_v19 = vshll.u32 %v811_v15, 16 }
  0xe9   : > { %v1131_v35 = vunpack.c.l.b16 %v909_v32  ;;  %v933_v7 = vsel %vm6373_vm2, %v928_v2, %v932_v3 }
  0xea   : > { %v1133_v10 = vunpack.c.l.b16 %v933_v7 }
  0xeb   : > { %v6444_v38 = vpack.c.b16 %v1131_v35, %v1130_v33 }
  0xec   : > { %v626_v20 = vpop.f32.mrf.mxu0  ;;  %v756_v22 = vpop.f32.mrf.mxu2 }
  0xed   : > { %v685_v21 = vpop.f32.mrf.mxu1  ;;  %1493 = vmatmul.bf16.vlgmr.msrb.gmra.mxu1 %v6444_v38  ;;  %1385 = vmatmul.bf16.gmra.mxu3 %v6444_v38 }
  0xee   : > { %v686_v26 = vadd.f32 %v685_v21, %v626_v20  ;;  %v948_v20 = vshrl.u32 %v812_v16, 16 }
  0xef   : > { %733 = vmatmul.bf16.gmra.mxu0 %v6296_v29  ;;  %v911_v29 = vshrl.u32 %v808_v40, 16 }
  0xf0   : > { %v745_v34 = vadd.f32 %v6354_v61, %v686_v26  ;;  %v940_v26 = vrot.slane %v938_v19, 5  ;;  %v950_v32 = vrot.slane %v948_v20, 4 }
  0xf1   : > { %v913_v51 = vrot.slane %v911_v29, 4 }
  0xf2   : > { %785 = vst [vmem:[#allocation3 + $0x78] sm:$0xff] %v745_v34  ;;  %v813_v34 = vld [vmem:[%s6273_s20 + $0x38] sm:$0x1] }
  0xf3   : > { %v917_v57 = vor.u32 %v916_v52, %v913_v51  ;;  %v954_v40 = vshll.u32 %v813_v34, 16  ;;  %v5662_v34 = vld [vmem:[%s7404_s1 + $0x1e0] sm:$0xff] }
  0xf4   : > { %v628_v61 = vpop.f32.mrf.mxu0 }
  0xf5   : > { %v687_v45 = vpop.f32.mrf.mxu1  ;;  %v918_v1 = vrot.slane %v917_v57, 4  ;;  %v815_v57 = vld [vmem:[%s6273_s20 + $0x40] sm:$0xf] }
  0xf6   : > { %v688_v49 = vadd.f32 %v687_v45, %v628_v61  ;;  %v956_v45 = vrot.slane %v954_v40, 5  ;;  %v972_v2 = vshrl.u32 %v815_v57, 16  ;;  %v818_v40 = vld [vmem:[%s6273_s20 + $0x4c] sm:$0xf] }
  0xf8   : > { %v747_v55 = vadd.f32 %v6389_v25, %v688_v49  ;;  %v923_v25 = vsel %vm6373_vm2, %v918_v1, %v922_v53  ;;  %v759_v53 = vpop.f32.mrf.mxu2  ;;  %v968_v1 = vshll.u32 %v815_v57, 16 }
  0xf9   : > { %v1132_v9 = vunpack.c.l.b16 %v923_v25  ;;  %v974_v25 = vrot.slane %v972_v2, 4 }
  0xfa   : > { %786 = vst [vmem:[#allocation3 + $0x80] sm:$0xff] %v747_v55  ;;  %v5663_v55 = vld [vmem:[%s7404_s1 + $0x1e8] sm:$0xff] }
  0xfb   : > { %v6460_v12 = vpack.c.b16 %v1133_v10, %v1132_v9  ;;  %2065 = vmatpush.bf16.msra.mxu3 %v5663_v55  ;;  %v819_v55 = vld [vmem:[%s6273_s20 + $0x50] sm:$0x1] }
  0xfc   : > { %v631_v5 = vpop.f32.mrf.mxu0 }
  0xfd   : > { %v690_v6 = vpop.f32.mrf.mxu1  ;;  %1498 = vmatmul.bf16.gmra.mxu1 %v6460_v12  ;;  %1390 = vmatmul.bf16.gmra.mxu3 %v6460_v12 }
  0xfe   : > { %v691_v8 = vadd.f32 %v690_v6, %v631_v5  ;;  %v970_v6 = vrot.slane %v968_v1, 5 }
  0xff   : > { %738 = vmatmul.bf16.gmra.mxu0 %v6302_v31  ;;  %v944_v31 = vshll.u32 %v812_v16, 16  ;;  %v5671_v16 = vld [vmem:[%s7404_s1 + $0x228] sm:$0xff]  ;;  %2066 = vmatpush.bf16.msra.mxu3 %v5662_v34 }
 0x100   : > { %v750_v11 = vadd.f32 %v6413_v59, %v691_v8  ;;  %v935_v59 = vshrl.u32 %v811_v15, 16  ;;  %v816_v8 = vld [vmem:[%s6273_s20 + $0x44] sm:$0x1]  ;;  %v975_v10 = vor.u32 %v974_v25, %v970_v6  ;;  %v761_v14 = vpop.f32.mrf.mxu2  ;;  %v5657_v15 = vld [vmem:[%s7404_s1 + $0x1b8] sm:$0xff]  ;;  %2124 = vmatpush.bf16.msrb.mxu0 %v5671_v16 }
 0x101   : > { %v946_v30 = vrot.slane %v944_v31, 5  ;;  %2004 = vmatpush.bf16.msrb.mxu2 %v5657_v15  ;;  %v821_v15 = vld [vmem:[%s6273_s20 + $0x58] sm:$0xf] }
 0x102   : > { %787 = vst [vmem:[#allocation3 + $0x8] sm:$0xff] %v750_v11  ;;  %v937_v23 = vrot.slane %v935_v59, 4  ;;  %v978_v11 = vshll.u32 %v816_v8, 16 }
 0x103   : > { %v951_v37 = vor.u32 %v950_v32, %v946_v30 }
 0x104   : > { %v633_v17 = vpop.f32.mrf.mxu0  ;;  %v941_v35 = vor.u32 %v940_v26, %v937_v23  ;;  %v980_v59 = vrot.slane %v978_v11, 5  ;;  %v5655_v11 = vld [vmem:[%s7404_s1 + $0x1a8] sm:$0xff] }
 0x105   : > { %v692_v18 = vpop.f32.mrf.mxu1  ;;  %v952_v61 = vrot.slane %v951_v37, 4  ;;  %v817_v37 = vld [vmem:[%s6273_s20 + $0x48] sm:$0xf] }
 0x106   : > { %v693_v21 = vadd.f32 %v692_v18, %v633_v17  ;;  %v942_v27 = vrot.slane %v941_v35, 4  ;;  %v976_v18 = vrot.slane %v975_v10, 4 }
 0x107   : > { %v957_v48 = vsel %vm6373_vm2, %v952_v61, %v956_v45  ;;  %v986_v45 = vshll.u32 %v817_v37, 16 }
 0x108   : > { %v752_v33 = vadd.f32 %v751_v36, %v693_v21  ;;  %v947_v47 = vsel %vm6373_vm2, %v942_v27, %v946_v30  ;;  %v1135_v51 = vunpack.c.l.b16 %v957_v48  ;;  %v981_v21 = vsel %vm6373_vm2, %v976_v18, %v980_v59  ;;  %v764_v35 = vpop.f32.mrf.mxu2  ;;  %v5656_v48 = vld [vmem:[%s7404_s1 + $0x1b0] sm:$0xff] }
 0x109   : > { %v1134_v36 = vunpack.c.l.b16 %v947_v47  ;;  %v1137_v26 = vunpack.c.l.b16 %v981_v21  ;;  %2005 = vmatpush.bf16.msrb.mxu2 %v5656_v48 }
 0x10a   : > { %788 = vst [vmem:[#allocation3 + $0x88] sm:$0xff] %v752_v33  ;;  %v705_v33 = vpop.f32.mrf.mxu3 }
 0x10b   : > { %v6475_v54 = vpack.c.b16 %v1135_v51, %v1134_v36  ;;  %v988_v36 = vrot.slane %v986_v45, 5 }
 0x10c   : > { %v636_v29 = vpop.f32.mrf.mxu0 }
 0x10d   : > { %v695_v46 = vpop.f32.mrf.mxu1  ;;  %1503 = vmatmul.bf16.gmra.mxu1 %v6475_v54  ;;  %1395 = vmatmul.bf16.gmra.mxu3 %v6475_v54 }
 0x10e   : > { %v696_v49 = vadd.f32 %v695_v46, %v636_v29  ;;  %v992_v29 = vshll.u32 %v818_v40, 16  ;;  %v996_v46 = vshrl.u32 %v818_v40, 16  ;;  %2006 = vmatpush.bf16.msrb.mxu2 %v5655_v11 }
 0x10f   : > { %1434 = vmatmul.bf16.vlgmr.msra.gmra.mxu0 %v6432_v28  ;;  %v962_v28 = vshll.u32 %v814_v56, 16 }
 0x110   : > { %v755_v52 = vadd.f32 %v754_v4, %v696_v49  ;;  %v961_v4 = vrot.slane %v959_v0, 4  ;;  %v994_v51 = vrot.slane %v992_v29, 5  ;;  %v766_v8 = vpop.f32.mrf.mxu2 }
 0x111   : > { %v964_v5 = vrot.slane %v962_v28, 5 }
 0x112   : > { %789 = vst [vmem:[#allocation3 + $0x28] sm:$0xff] %v755_v52  ;;  %v998_v52 = vrot.slane %v996_v46, 4  ;;  %v707_v0 = vpop.f32.mrf.mxu3 }
 0x113   : > { %v965_v9 = vor.u32 %v964_v5, %v961_v4 }
 0x114   : > { %v638_v58 = vpop.f32.mrf.mxu0  ;;  %v999_v57 = vor.u32 %v998_v52, %v994_v51  ;;  %v5669_v52 = vld [vmem:[%s7404_s1 + $0x218] sm:$0xff] }
 0x115   : > { %v697_v60 = vpop.f32.mrf.mxu1  ;;  %v966_v17 = vrot.slane %v965_v9, 4 }
 0x116   : > { %v698_v3 = vadd.f32 %v697_v60, %v638_v58  ;;  %v1002_v58 = vshll.u32 %v819_v55, 16  ;;  %v5670_v60 = vld [vmem:[%s7404_s1 + $0x220] sm:$0xff]  ;;  %v1000_v1 = vrot.slane %v999_v57, 4 }
 0x117   : > { %v971_v20 = vsel %vm6373_vm2, %v966_v17, %v970_v6  ;;  %2125 = vmatpush.bf16.msrb.mxu0 %v5670_v60  ;;  %v5654_v55 = vld [vmem:[%s7404_s1 + $0x1a0] sm:$0xff] }
 0x118   : > { %v757_v7 = vadd.f32 %v756_v22, %v698_v3  ;;  %v1136_v23 = vunpack.c.l.b16 %v971_v20  ;;  %v1004_v2 = vrot.slane %v1002_v58, 5  ;;  %v769_v34 = vpop.f32.mrf.mxu2  ;;  %2007 = vmatpush.bf16.msrb.mxu2 %v5654_v55  ;;  %v824_v57 = vld [vmem:[%s6273_s20 + $0x64] sm:$0xf] }
 0x11a   : > { %790 = vst [vmem:[#allocation3 + $0x40] sm:$0xff] %v757_v7  ;;  %v6496_v32 = vpack.c.b16 %v1137_v26, %v1136_v23  ;;  %v1005_v5 = vsel %vm6373_vm2, %v1000_v1, %v1004_v2  ;;  %v710_v17 = vpop.f32.mrf.mxu3  ;;  %v1044_v1 = vshrl.u32 %v824_v57, 16 }
 0x11b   : > { %v1139_v7 = vunpack.c.l.b16 %v1005_v5  ;;  %2126 = vmatpush.bf16.msrb.mxu0 %v5669_v52 }
 0x11c   : > { %v641_v19 = vpop.f32.mrf.mxu0 }
 0x11d   : > { %v700_v31 = vpop.f32.mrf.mxu1  ;;  %1508 = vmatmul.bf16.gmra.mxu1 %v6496_v32  ;;  %1400 = vmatmul.bf16.gmra.mxu3 %v6496_v32 }
 0x11e   : > { %v701_v22 = vadd.f32 %v700_v31, %v641_v19  ;;  %v1020_v19 = vshrl.u32 %v821_v15, 16 }
 0x11f   : > { %1439 = vmatmul.bf16.gmra.mxu0 %v6444_v38  ;;  %v983_v38 = vshrl.u32 %v817_v37, 16 }
 0x120   : > { %v760_v30 = vadd.f32 %v759_v53, %v701_v22  ;;  %v1022_v23 = vrot.slane %v1020_v19, 4 }
 0x121   : > { %v985_v49 = vrot.slane %v983_v38, 4 }
 0x122   : > { %791 = vst [vmem:[#allocation3 + $0x58] sm:$0xff] %v760_v30  ;;  %v5661_v30 = vld [vmem:[%s7404_s1 + $0x1d8] sm:$0xff] }
 0x123   : > { %v989_v56 = vor.u32 %v988_v36, %v985_v49  ;;  %2067 = vmatpush.bf16.msra.mxu3 %v5661_v30  ;;  %v712_v36 = vpop.f32.mrf.mxu3 }
 0x124   : > { %v643_v27 = vpop.f32.mrf.mxu0 }
 0x125   : > { %v702_v61 = vpop.f32.mrf.mxu1  ;;  %v990_v28 = vrot.slane %v989_v56, 4  ;;  %v771_v56 = vpop.f32.mrf.mxu2 }
 0x126   : > { %v703_v47 = vadd.f32 %v702_v61, %v643_v27 }
 0x127   : > { %v995_v4 = vsel %vm6373_vm2, %v990_v28, %v994_v51  ;;  %v1040_v28 = vshll.u32 %v824_v57, 16 }
 0x128   : > { %v762_v53 = vadd.f32 %v761_v14, %v703_v47  ;;  %v1138_v25 = vunpack.c.l.b16 %v995_v4  ;;  %v820_v14 = vld [vmem:[%s6273_s20 + $0x54] sm:$0xf] }
 0x129   : > { %v1007_v18 = vshrl.u32 %v820_v14, 16  ;;  %v1010_v59 = vshll.u32 %v820_v14, 16 }
 0x12a   : > { %792 = vst [vmem:[#allocation3 + $0x10] sm:$0xff] %v762_v53  ;;  %v6517_v10 = vpack.c.b16 %v1139_v7, %v1138_v25  ;;  %v1046_v25 = vrot.slane %v1044_v1, 4 }
 0x12b   : > { %v1009_v20 = vrot.slane %v1007_v18, 4  ;;  %v1012_v21 = vrot.slane %v1010_v59, 5 }
 0x12c   : > { %v646_v3 = vpop.f32.mrf.mxu0 }
 0x12d   : > { %v706_v6 = vadd.f32 %v705_v33, %v646_v3  ;;  %1513 = vmatmul.bf16.gmra.mxu1 %v6517_v10  ;;  %v822_v33 = vld [vmem:[%s6273_s20 + $0x5c] sm:$0x1]  ;;  %1405 = vmatmul.bf16.gmra.mxu3 %v6517_v10  ;;  %v5660_v3 = vld [vmem:[%s7404_s1 + $0x1d0] sm:$0xff] }
 0x12e   : > { %v1026_v40 = vshll.u32 %v822_v33, 16  ;;  %2068 = vmatpush.bf16.msra.mxu3 %v5660_v3  ;;  %v5668_v33 = vld [vmem:[%s7404_s1 + $0x210] sm:$0xff]  ;;  %v5659_v3 = vld [vmem:[%s7404_s1 + $0x1c8] sm:$0xff] }
 0x12f   : > { %v765_v9 = vadd.f32 %v764_v35, %v706_v6  ;;  %1444 = vmatmul.bf16.gmra.mxu0 %v6460_v12  ;;  %v1016_v12 = vshll.u32 %v821_v15, 16  ;;  %v1013_v35 = vor.u32 %v1012_v21, %v1009_v20  ;;  %v1042_v6 = vrot.slane %v1040_v28, 5  ;;  %v5652_v28 = vld [vmem:[%s7404_s1 + $0x190] sm:$0xff] }
 0x130   : > { %v1028_v38 = vrot.slane %v1026_v40, 5  ;;  %2127 = vmatpush.bf16.msrb.mxu0 %v5668_v33 }
 0x131   : > { %793 = vst [vmem:[#allocation3 + $0x98] sm:$0xff] %v765_v9  ;;  %v1018_v22 = vrot.slane %v1016_v12, 5  ;;  %v1014_v27 = vrot.slane %v1013_v35, 4  ;;  %v715_v9 = vpop.f32.mrf.mxu3  ;;  %v1047_v14 = vor.u32 %v1046_v25, %v1042_v6  ;;  %v774_v12 = vpop.f32.mrf.mxu2  ;;  %v827_v35 = vld [vmem:[%s6273_s20 + $0x70] sm:$0xf] }
 0x132   : > { %2069 = vmatpush.bf16.msra.mxu3 %v5659_v3  ;;  %v1609_v3 = vld [vmem:[%s6273_s20 + $0x14] sm:$0x1] }
 0x133   : > { %v1023_v37 = vor.u32 %v1022_v23, %v1018_v22  ;;  %v1019_v29 = vsel %vm6373_vm2, %v1014_v27, %v1018_v22 }
 0x134   : > { %v648_v16 = vpop.f32.mrf.mxu0  ;;  %v1140_v48 = vunpack.c.l.b16 %v1019_v29 }
 0x135   : > { %v708_v31 = vadd.f32 %v707_v0, %v648_v16  ;;  %v1024_v61 = vrot.slane %v1023_v37, 4 }
 0x137   : > { %v767_v26 = vadd.f32 %v766_v8, %v708_v31  ;;  %v1029_v46 = vsel %vm6373_vm2, %v1024_v61, %v1028_v38  ;;  %v825_v8 = vld [vmem:[%s6273_s20 + $0x68] sm:$0x1]  ;;  %v1064_v61 = vshll.u32 %v827_v35, 16  ;;  %v1068_v38 = vshrl.u32 %v827_v35, 16 }
 0x138   : > { %v1141_v49 = vunpack.c.l.b16 %v1029_v46  ;;  %v1050_v15 = vshll.u32 %v825_v8, 16 }
 0x139   : > { %794 = vst [vmem:[#allocation3 + $0x60] sm:$0xff] %v767_v26  ;;  %v5653_v26 = vld [vmem:[%s7404_s1 + $0x198] sm:$0xff] }
 0x13a   : > { %v6538_v53 = vpack.c.b16 %v1141_v49, %v1140_v48  ;;  %v1052_v18 = vrot.slane %v1050_v15, 5  ;;  %2008 = vmatpush.bf16.msrb.mxu2 %v5653_v26  ;;  %v1070_v48 = vrot.slane %v1068_v38, 4  ;;  %v828_v49 = vld [vmem:[%s6273_s20 + $0x74] sm:$0x1]  ;;  %v5667_v15 = vld [vmem:[%s7404_s1 + $0x208] sm:$0xff] }
 0x13b   : > { %v1074_v52 = vshll.u32 %v828_v49, 16  ;;  %2128 = vmatpush.bf16.msrb.mxu0 %v5667_v15  ;;  %v834_v15 = vld [vmem:[%s6273_s20 + $0x8c] sm:$0x1] }
 0x13c   : > { %v651_v45 = vpop.f32.mrf.mxu0 }
 0x13d   : > { %v711_v47 = vadd.f32 %v710_v17, %v651_v45  ;;  %1518 = vmatmul.bf16.gmra.mxu1 %v6538_v53  ;;  %v1048_v17 = vrot.slane %v1047_v14, 4  ;;  %1410 = vmatmul.bf16.gmra.mxu3 %v6538_v53 }
 0x13e   : > { %2009 = vmatpush.bf16.msrb.mxu2 %v5652_v28 }
 0x13f   : > { %v770_v51 = vadd.f32 %v769_v34, %v711_v47  ;;  %1449 = vmatmul.bf16.gmra.mxu0 %v6475_v54  ;;  %v823_v54 = vld [vmem:[%s6273_s20 + $0x60] sm:$0xf]  ;;  %v1053_v31 = vsel %vm6373_vm2, %v1048_v17, %v1052_v18  ;;  %v717_v34 = vpop.f32.mrf.mxu3  ;;  %v1066_v47 = vrot.slane %v1064_v61, 5 }
 0x140   : > { %v1031_v60 = vshrl.u32 %v823_v54, 16  ;;  %v1034_v0 = vshll.u32 %v823_v54, 16  ;;  %v1143_v22 = vunpack.c.l.b16 %v1053_v31  ;;  %v1076_v54 = vrot.slane %v1074_v52, 5  ;;  %v5658_v61 = vld [vmem:[%s7404_s1 + $0x1c0] sm:$0xff] }
 0x141   : > { %795 = vst [vmem:[#allocation3 + $0x20] sm:$0xff] %v770_v51  ;;  %v1071_v51 = vor.u32 %v1070_v48, %v1066_v47  ;;  %2070 = vmatpush.bf16.msra.mxu3 %v5658_v61 }
 0x142   : > { %v1033_v4 = vrot.slane %v1031_v60, 4  ;;  %v1036_v5 = vrot.slane %v1034_v0, 5 }
 0x144   : > { %v653_v58 = vpop.f32.mrf.mxu0  ;;  %v1037_v11 = vor.u32 %v1036_v5, %v1033_v4 }
 0x145   : > { %v713_v2 = vadd.f32 %v712_v36, %v653_v58 }
 0x146   : > { %v1038_v16 = vrot.slane %v1037_v11, 4 }
 0x147   : > { %v772_v7 = vadd.f32 %v771_v56, %v713_v2  ;;  %v1072_v56 = vrot.slane %v1071_v51, 4  ;;  %v6591_v5 = vpop.f32.mrf.mxu3  ;;  %v1608_v51 = vld [vmem:[%s6273_s20 + $0x10] sm:$0xf] }
 0x148   : > { %v1043_v19 = vsel %vm6373_vm2, %v1038_v16, %v1042_v6  ;;  %v829_v6 = vld [vmem:[%s6273_s20 + $0x78] sm:$0xf] }
 0x149   : > { %796 = vst [vmem:[#allocation3 + $0x48] sm:$0xff] %v772_v7  ;;  %v1142_v21 = vunpack.c.l.b16 %v1043_v19  ;;  %v1077_v60 = vsel %vm6373_vm2, %v1072_v56, %v1076_v54  ;;  %v1079_v7 = vshrl.u32 %v829_v6, 16  ;;  %v1082_v8 = vshll.u32 %v829_v6, 16  ;;  %v5666_v6 = vld [vmem:[%s7404_s1 + $0x200] sm:$0xff] }
 0x14a   : > { %v1145_v2 = vunpack.c.l.b16 %v1077_v60  ;;  %v1607_v60 = vld [vmem:[%s6273_s20 + $0xc] sm:$0xe]  ;;  %2129 = vmatpush.bf16.msrb.mxu0 %v5666_v6 }
 0x14b   : > { %v6559_v30 = vpack.c.b16 %v1143_v22, %v1142_v21  ;;  %v1084_v16 = vrot.slane %v1082_v8, 5 }
 0x14c   : > { %v656_v59 = vpop.f32.mrf.mxu0 }
 0x14d   : > { %v716_v20 = vadd.f32 %v715_v9, %v656_v59  ;;  %1523 = vmatmul.bf16.gmra.mxu1 %v6559_v30  ;;  %1415 = vmatmul.bf16.gmra.mxu3 %v6559_v30  ;;  %v831_v59 = vld [vmem:[%s6273_s20 + $0x80] sm:$0x1] }
 0x14e   : > { %v1098_v31 = vshll.u32 %v831_v59, 16 }
 0x14f   : > { %v775_v23 = vadd.f32 %v774_v12, %v716_v20  ;;  %1454 = vmatmul.bf16.gmra.mxu0 %v6496_v32  ;;  %v826_v32 = vld [vmem:[%s6273_s20 + $0x6c] sm:$0xf] }
 0x150   : > { %v1055_v40 = vshrl.u32 %v826_v32, 16  ;;  %v1058_v27 = vshll.u32 %v826_v32, 16  ;;  %v1100_v22 = vrot.slane %v1098_v31, 5 }
 0x151   : > { %797 = vst [vmem:[#allocation3 + $0x70] sm:$0xff] %v775_v23  ;;  %v6604_v23 = vpop.f32.mrf.mxu3 }
 0x152   : > { %v1057_v29 = vrot.slane %v1055_v40, 4  ;;  %v1060_v46 = vrot.slane %v1058_v27, 5 }
 0x154   : > { %v658_v37 = vpop.f32.mrf.mxu0  ;;  %v1061_v36 = vor.u32 %v1060_v46, %v1057_v29  ;;  %v833_v29 = vld [vmem:[%s6273_s20 + $0x88] sm:$0xf] }
 0x155   : > { %v6568_v45 = vadd.f32 %v717_v34, %v658_v37  ;;  %v1112_v52 = vshll.u32 %v833_v29, 16 }
 0x156   : > { %v1062_v55 = vrot.slane %v1061_v36, 4  ;;  %v1605_v36 = vld [vmem:[%s6273_s20 + $0x4] sm:$0xf] }
 0x158   : > { %v1067_v58 = vsel %vm6373_vm2, %v1062_v55, %v1066_v47  ;;  %v1688_v55 = vrot.slane %v1608_v51, 5 }
 0x159   : > { %v1144_v1 = vunpack.c.l.b16 %v1067_v58  ;;  %v1606_v58 = vld [vmem:[%s6273_s20 + $0x8] sm:$0x1] }
 0x15a   : > { %v1690_v8 = vrot.slane %v1688_v55, 4 }
 0x15b   : > { %v6585_v4 = vpack.c.b16 %v1145_v2, %v1144_v1 }
 0x15c   : > { %v729_v57 = vpop.f32.mrf.mxu0 }
 0x15d   : > { %v6576_v0 = vadd.f32 %v729_v57, %v6314_v39  ;;  %v673_v39 = vadd.f32 %v6327_v44, %v6325_v43  ;;  %1528 = vmatmul.bf16.gmra.mxu1 %v6585_v4  ;;  %v5651_v43 = vld [vmem:[%s7404_s1 + $0x188] sm:$0xff]  ;;  %v1081_v44 = vrot.slane %v1079_v7, 4  ;;  %1420 = vmatmul.bf16.gmra.mxu3 %v6585_v4  ;;  %v1604_v57 = vld [vmem:[%s6273_s20] sm:$0xe]  ;;  %v5061_v7 = vrot.slane %v1607_v60, 9 }
 0x15e   : > { %2010 = vmatpush.bf16.msrb.mxu2 %v5651_v43  ;;  %v5060_v1 = vrot.slane %v1604_v57, 9 }
 0x15f   : > { %1459 = vmatmul.bf16.gmra.mxu0 %v6517_v10  ;;  %v830_v10 = vld [vmem:[%s6273_s20 + $0x7c] sm:$0xf]  ;;  %v1085_v12 = vor.u32 %v1084_v16, %v1081_v44  ;;  %v1114_v44 = vrot.slane %v1112_v52, 5 }
 0x160   : > { %v1088_v9 = vshll.u32 %v830_v10, 16  ;;  %v1092_v11 = vshrl.u32 %v830_v10, 16  ;;  %v6625_v38 = vpop.f32.mrf.mxu3 }
 0x161   : > { %v1086_v20 = vrot.slane %v1085_v12, 4  ;;  %v1689_v12 = vsel %vm6645_vm5, %v5061_v7, %v1688_v55 }
 0x162   : > { %v1090_v17 = vrot.slane %v1088_v9, 5  ;;  %v1094_v18 = vrot.slane %v1092_v11, 4  ;;  %v1691_v9 = vrot.slane %v1609_v3, 5 }
 0x164   : > { %v731_v25 = vpop.f32.mrf.mxu0  ;;  %v1095_v19 = vor.u32 %v1094_v18, %v1090_v17  ;;  %v1091_v33 = vsel %vm6373_vm2, %v1086_v20, %v1090_v17 }
 0x165   : > { %v6595_v14 = vadd.f32 %v731_v25, %v673_v39  ;;  %v1166_v35 = vunpack.c.l.b16 %v1091_v33  ;;  %v5650_v39 = vld [vmem:[%s7404_s1 + $0x180] sm:$0xff]  ;;  %v1684_v25 = vrot.slane %v1606_v58, 5 }
 0x166   : > { %v1096_v21 = vrot.slane %v1095_v19, 4  ;;  %2011 = vmatpush.bf16.msrb.mxu2 %v5650_v39  ;;  %v1692_v19 = vsel %vm6645_vm5, %v1690_v8, %v1691_v9 }
 0x168   : > { %v1101_v34 = vsel %vm6373_vm2, %v1096_v21, %v1100_v22  ;;  %v6652_v17 = vpop.f32.mrf.mxu3  ;;  %v1765_v21 = vunpack.c.l.b16 %v1689_v12  ;;  %v1766_v22 = vunpack.c.l.b16 %v1692_v19  ;;  %v1615_v12 = vld [vmem:[%s6273_s20 + $0x2c] sm:$0x1] }
 0x169   : > { %v1167_v37 = vunpack.c.l.b16 %v1101_v34 }
 0x16a   : > { %v6616_v27 = vpop.f32.mrf.mxu1  ;;  %v1784_v61 = vpack.c.b16 %v1766_v22, %v1765_v21 }
 0x16b   : > { %v6614_v40 = vpack.c.b16 %v1167_v37, %v1166_v35  ;;  %v1122_v35 = vshll.u32 %v834_v15, 16 }
 0x16c   : > { %v734_v26 = vpop.f32.mrf.mxu0 }
 0x16d   : > { %v6611_v32 = vadd.f32 %v734_v26, %v6338_v50  ;;  %v678_v50 = vadd.f32 %v6358_v63, %v6356_v62  ;;  %1533 = vmatmul.bf16.gmra.mxu1 %v6614_v40  ;;  %v1116_v62 = vshrl.u32 %v833_v29, 16  ;;  %v1681_v63 = vrot.slane %v1605_v36, 5  ;;  %2071 = vmatmul.bf16.vlgmr.msra.gmra.mxu3 %v1784_v61 }
 0x16e   : > { %v1124_v29 = vrot.slane %v1122_v35, 5  ;;  %v683_v36 = vadd.f32 %v6407_v42, %v6405_v41 }
 0x16f   : > { %1464 = vmatmul.bf16.gmra.mxu0 %v6538_v53  ;;  %v832_v53 = vld [vmem:[%s6273_s20 + $0x84] sm:$0xf]  ;;  %v1683_v2 = vrot.slane %v1681_v63, 4  ;;  %v1682_v11 = vsel %vm6645_vm5, %v5060_v1, %v1681_v63  ;;  %v1118_v16 = vrot.slane %v1116_v62, 4  ;;  %v1611_v63 = vld [vmem:[%s6273_s20 + $0x1c] sm:$0xf] }
 0x170   : > { %v1103_v47 = vshrl.u32 %v832_v53, 16  ;;  %v1106_v48 = vshll.u32 %v832_v53, 16  ;;  %v1763_v59 = vunpack.c.l.b16 %v1682_v11  ;;  %v6670_v51 = vpop.f32.mrf.mxu3  ;;  %v1695_v55 = vrot.slane %v1611_v63, 5 }
 0x171   : > { %v1685_v18 = vsel %vm6645_vm5, %v1683_v2, %v1684_v25  ;;  %v1119_v34 = vor.u32 %v1118_v16, %v1114_v44  ;;  %v1614_v16 = vld [vmem:[%s6273_s20 + $0x28] sm:$0xf] }
 0x172   : > { %v1105_v56 = vrot.slane %v1103_v47, 4  ;;  %v1108_v54 = vrot.slane %v1106_v48, 5  ;;  %v6636_v28 = vpop.f32.mrf.mxu1  ;;  %v1764_v20 = vunpack.c.l.b16 %v1685_v18  ;;  %v1697_v60 = vrot.slane %v1695_v55, 4 }
 0x173   : > { %v1120_v53 = vrot.slane %v1119_v34, 4  ;;  %v1702_v18 = vrot.slane %v1614_v16, 5 }
 0x174   : > { %v736_v46 = vpop.f32.mrf.mxu0  ;;  %v1109_v43 = vor.u32 %v1108_v54, %v1105_v56  ;;  %v1783_v37 = vpack.c.b16 %v1764_v20, %v1763_v59  ;;  %v1610_v56 = vld [vmem:[%s6273_s20 + $0x18] sm:$0xe]  ;;  %v1612_v54 = vld [vmem:[%s6273_s20 + $0x20] sm:$0x1]  ;;  %v1613_v59 = vld [vmem:[%s6273_s20 + $0x24] sm:$0xe] }
 0x175   : > { %v6629_v49 = vadd.f32 %v736_v46, %v678_v50  ;;  %v5062_v58 = vrot.slane %v1610_v56, 9  ;;  %v1698_v1 = vrot.slane %v1612_v54, 5  ;;  %v5063_v19 = vrot.slane %v1613_v59, 9 }
 0x176   : > { %v1110_v26 = vrot.slane %v1109_v43, 4  ;;  %2012 = vmatmul.bf16.vlgmr.msrb.gmra.mxu2 %v1783_v37 }
 0x177   : > { %v1696_v2 = vsel %vm6645_vm5, %v5062_v58, %v1695_v55  ;;  %v1699_v41 = vsel %vm6645_vm5, %v1697_v60, %v1698_v1 }
 0x178   : > { %v1115_v50 = vsel %vm6373_vm2, %v1110_v26, %v1114_v44  ;;  %v6681_v42 = vpop.f32.mrf.mxu3  ;;  %v1767_v3 = vunpack.c.l.b16 %v1696_v2  ;;  %v1768_v39 = vunpack.c.l.b16 %v1699_v41 }
 0x179   : > { %v1170_v47 = vunpack.c.l.b16 %v1115_v50 }
 0x17a   : > { %v1499_v46 = vpop.f32.mrf.mxu1  ;;  %v1785_v7 = vpack.c.b16 %v1768_v39, %v1767_v3  ;;  %v1620_v39 = vld [vmem:[%s6273_s20 + $0x40] sm:$0xf] }
 0x17c   : > { %v739_v31 = vpop.f32.mrf.mxu0 }
 0x17d   : > { %v6661_v33 = vadd.f32 %v739_v31, %v6387_v24  ;;  %v1125_v24 = vsel %vm6373_vm2, %v1120_v53, %v1124_v29  ;;  %2076 = vmatmul.bf16.gmra.mxu3 %v1785_v7  ;;  %v1705_v31 = vrot.slane %v1615_v12, 5 }
 0x17e   : > { %v1171_v48 = vunpack.c.l.b16 %v1125_v24 }
 0x17f   : > { %1469 = vmatmul.bf16.gmra.mxu0 %v6559_v30 }
 0x180   : > { %v1172_v62 = vpack.c.b16 %v1171_v48, %v1170_v47  ;;  %v6689_v15 = vpop.f32.mrf.mxu3  ;;  %v1617_v47 = vld [vmem:[%s6273_s20 + $0x34] sm:$0xf] }
 0x181   : > { %v1709_v24 = vrot.slane %v1617_v47, 5 }
 0x182   : > { %1538 = vmatmul.bf16.gmra.mxu1 %v1172_v62  ;;  %v1501_v57 = vpop.f32.mrf.mxu1 }
 0x184   : > { %v741_v52 = vpop.f32.mrf.mxu0 }
 0x185   : > { %v6672_v30 = vadd.f32 %v741_v52, %v683_v36  ;;  %v1616_v36 = vld [vmem:[%s6273_s20 + $0x30] sm:$0xe] }
 0x186   : > { %2017 = vmatmul.bf16.gmra.mxu2 %v1784_v61  ;;  %v5064_v52 = vrot.slane %v1616_v36, 9 }
 0x18a   : > { %v1504_v9 = vpop.f32.mrf.mxu1 }
 0x18c   : > { %v1435_v6 = vpop.f32.mrf.mxu0 }
 0x18d   : > { %v1436_v25 = vadd.f32 %v1435_v6, %v6591_v5 }
 0x18f   : > { %v1495_v8 = vadd.f32 %v6616_v27, %v1436_v25  ;;  %1474 = vmatmul.bf16.gmra.mxu0 %v6585_v4  ;;  %v1704_v4 = vrot.slane %v1702_v18, 4  ;;  %v1716_v25 = vrot.slane %v1620_v39, 5 }
 0x191   : > { %v6687_v11 = vadd.f32 %v1495_v8, %v6576_v0  ;;  %v1703_v0 = vsel %vm6645_vm5, %v5063_v19, %v1702_v18  ;;  %v1706_v21 = vsel %vm6645_vm5, %v1704_v4, %v1705_v31  ;;  %v1718_v16 = vrot.slane %v1716_v25, 4 }
 0x192   : > { %v1506_v27 = vpop.f32.mrf.mxu1  ;;  %v1769_v22 = vunpack.c.l.b16 %v1703_v0 }
 0x194   : > { %v1437_v43 = vpop.f32.mrf.mxu0 }
 0x195   : > { %v1438_v44 = vadd.f32 %v1437_v43, %v6604_v23  ;;  %v6703_v23 = vpop.f32.mrf.mxu3  ;;  %v1619_v43 = vld [vmem:[%s6273_s20 + $0x3c] sm:$0xe] }
 0x196   : > { %2022 = vmatmul.bf16.gmra.mxu2 %v1785_v7 }
 0x197   : > { %v1497_v5 = vadd.f32 %v6636_v28, %v1438_v44  ;;  %v1770_v28 = vunpack.c.l.b16 %v1706_v21  ;;  %v1621_v44 = vld [vmem:[%s6273_s20 + $0x44] sm:$0x1] }
 0x199   : > { %v6697_v20 = vadd.f32 %v1497_v5, %v6595_v14  ;;  %v1786_v35 = vpack.c.b16 %v1770_v28, %v1769_v22  ;;  %v1623_v22 = vld [vmem:[%s6273_s20 + $0x4c] sm:$0xf] }
 0x19a   : > { %v1509_v61 = vpop.f32.mrf.mxu1  ;;  %v1723_v28 = vrot.slane %v1623_v22, 5 }
 0x19b   : > { %2081 = vmatmul.bf16.gmra.mxu3 %v1786_v35 }
 0x19c   : > { %v1440_v26 = vpop.f32.mrf.mxu0 }
 0x19d   : > { %v1441_v34 = vadd.f32 %v1440_v26, %v6625_v38  ;;  %v6710_v50 = vpop.f32.mrf.mxu3  ;;  %v1618_v38 = vld [vmem:[%s6273_s20 + $0x38] sm:$0x1] }
 0x19e   : > { %v1712_v62 = vrot.slane %v1618_v38, 5 }
 0x19f   : > { %v1500_v37 = vadd.f32 %v1499_v46, %v1441_v34  ;;  %1479 = vmatmul.bf16.gmra.mxu0 %v6614_v40  ;;  %v1711_v46 = vrot.slane %v1709_v24, 4  ;;  %v1622_v34 = vld [vmem:[%s6273_s20 + $0x48] sm:$0xe] }
 0x1a1   : > { %v6708_v14 = vadd.f32 %v1500_v37, %v6611_v32  ;;  %v1710_v32 = vsel %vm6645_vm5, %v5064_v52, %v1709_v24  ;;  %v1713_v63 = vsel %vm6645_vm5, %v1711_v46, %v1712_v62  ;;  %v1624_v37 = vld [vmem:[%s6273_s20 + $0x50] sm:$0x1] }
 0x1a2   : > { %v1772_v56 = vunpack.c.l.b16 %v1713_v63 }
 0x1a4   : > { %v1442_v53 = vpop.f32.mrf.mxu0 }
 0x1a5   : > { %v1443_v29 = vadd.f32 %v1442_v53, %v6652_v17  ;;  %v6723_v55 = vpop.f32.mrf.mxu3  ;;  %v1771_v17 = vunpack.c.l.b16 %v1710_v32  ;;  %v5066_v53 = vrot.slane %v1622_v34, 9 }
 0x1a6   : > { %2027 = vmatmul.bf16.gmra.mxu2 %v1786_v35 }
 0x1a7   : > { %v1502_v48 = vadd.f32 %v1501_v57, %v1443_v29  ;;  %v1511_v57 = vpop.f32.mrf.mxu1  ;;  %v1787_v60 = vpack.c.b16 %v1772_v56, %v1771_v17  ;;  %v1726_v29 = vrot.slane %v1624_v37, 5  ;;  %v1626_v56 = vld [vmem:[%s6273_s20 + $0x58] sm:$0xf] }
 0x1a9   : > { %v6717_v40 = vadd.f32 %v1502_v48, %v6629_v49 }
 0x1ab   : > { %2086 = vmatmul.bf16.gmra.mxu3 %v1787_v60 }
 0x1ac   : > { %v1445_v54 = vpop.f32.mrf.mxu0 }
 0x1ad   : > { %v1446_v58 = vadd.f32 %v1445_v54, %v6670_v51  ;;  %v6729_v2 = vpop.f32.mrf.mxu3  ;;  %v5065_v51 = vrot.slane %v1619_v43, 9  ;;  %v1730_v54 = vrot.slane %v1626_v56, 5 }
 0x1af   : > { %v1505_v49 = vadd.f32 %v1504_v9, %v1446_v58  ;;  %2130 = vmatmul.bf16.vlgmr.msrb.gmra.mxu0 %v1785_v7  ;;  %v1514_v6 = vpop.f32.mrf.mxu1  ;;  %v1719_v9 = vrot.slane %v1621_v44, 5  ;;  %v1625_v58 = vld [vmem:[%s6273_s20 + $0x54] sm:$0xe] }
 0x1b1   : > { %v6727_v1 = vadd.f32 %v1505_v49, %v6661_v33  ;;  %v1717_v33 = vsel %vm6645_vm5, %v5065_v51, %v1716_v25  ;;  %v1720_v18 = vsel %vm6645_vm5, %v1718_v16, %v1719_v9  ;;  %v1627_v49 = vld [vmem:[%s6273_s20 + $0x5c] sm:$0x1] }
 0x1b2   : > { %v1773_v5 = vunpack.c.l.b16 %v1717_v33  ;;  %v1774_v59 = vunpack.c.l.b16 %v1720_v18 }
 0x1b4   : > { %v1447_v41 = vpop.f32.mrf.mxu0  ;;  %v1788_v19 = vpack.c.b16 %v1774_v59, %v1773_v5  ;;  %v1629_v5 = vld [vmem:[%s6273_s20 + $0x64] sm:$0xf] }
 0x1b5   : > { %v1448_v3 = vadd.f32 %v1447_v41, %v6681_v42  ;;  %v1403_v42 = vpop.f32.mrf.mxu3  ;;  %v5067_v41 = vrot.slane %v1625_v58, 9  ;;  %v1737_v59 = vrot.slane %v1629_v5, 5 }
 0x1b6   : > { %2032 = vmatmul.bf16.gmra.mxu2 %v1787_v60 }
 0x1b7   : > { %v1507_v8 = vadd.f32 %v1506_v27, %v1448_v3  ;;  %v1733_v3 = vrot.slane %v1627_v49, 5  ;;  %v776_v49 = vpop.f32.mrf.mxu2 }
 0x1b9   : > { %v6736_v7 = vadd.f32 %v1507_v8, %v6672_v30  ;;  %v1516_v30 = vpop.f32.mrf.mxu1 }
 0x1bb   : > { %2091 = vmatmul.bf16.gmra.mxu3 %v1788_v19 }
 0x1bc   : > { %v1450_v12 = vpop.f32.mrf.mxu0 }
 0x1bd   : > { %v1451_v27 = vadd.f32 %v1450_v12, %v6689_v15  ;;  %v6745_v31 = vpop.f32.mrf.mxu3  ;;  %v1725_v15 = vrot.slane %v1723_v28, 4 }
 0x1bf   : > { %v6743_v4 = vadd.f32 %v1509_v61, %v1451_v27  ;;  %2135 = vmatmul.bf16.gmra.mxu0 %v1786_v35  ;;  %v1724_v35 = vsel %vm6645_vm5, %v5066_v53, %v1723_v28  ;;  %v1727_v47 = vsel %vm6645_vm5, %v1725_v15, %v1726_v29  ;;  %v1628_v27 = vld [vmem:[%s6273_s20 + $0x60] sm:$0xe] }
 0x1c0   : > { %v1775_v48 = vunpack.c.l.b16 %v1724_v35 }
 0x1c1   : > { %v1519_v61 = vpop.f32.mrf.mxu1 }
 0x1c4   : > { %v1452_v0 = vpop.f32.mrf.mxu0 }
 0x1c5   : > { %v1453_v21 = vadd.f32 %v1452_v0, %v6703_v23  ;;  %v1408_v24 = vpop.f32.mrf.mxu3  ;;  %v1776_v23 = vunpack.c.l.b16 %v1727_v47 }
 0x1c6   : > { %2037 = vmatmul.bf16.gmra.mxu2 %v1788_v19 }
 0x1c7   : > { %v6749_v26 = vadd.f32 %v1511_v57, %v1453_v21  ;;  %v1789_v52 = vpack.c.b16 %v1776_v23, %v1775_v48  ;;  %v5068_v21 = vrot.slane %v1628_v27, 9 }
 0x1c9   : > { %v1521_v63 = vpop.f32.mrf.mxu1  ;;  %v1738_v28 = vsel %vm6645_vm5, %v5068_v21, %v1737_v59 }
 0x1cb   : > { %2096 = vmatmul.bf16.gmra.mxu3 %v1789_v52 }
 0x1cc   : > { %v1455_v36 = vpop.f32.mrf.mxu0 }
 0x1cd   : > { %v1456_v38 = vadd.f32 %v1455_v36, %v6710_v50  ;;  %v6760_v62 = vpop.f32.mrf.mxu3  ;;  %v1732_v50 = vrot.slane %v1730_v54, 4  ;;  %v1632_v36 = vld [vmem:[%s6273_s20 + $0x70] sm:$0xf] }
 0x1cf   : > { %v6758_v46 = vadd.f32 %v1514_v6, %v1456_v38  ;;  %2140 = vmatmul.bf16.gmra.mxu0 %v1787_v60  ;;  %v1731_v60 = vsel %vm6645_vm5, %v5067_v41, %v1730_v54  ;;  %v1734_v39 = vsel %vm6645_vm5, %v1732_v50, %v1733_v3  ;;  %v1744_v38 = vrot.slane %v1632_v36, 5 }
 0x1d0   : > { %v1777_v25 = vunpack.c.l.b16 %v1731_v60 }
 0x1d1   : > { %v1524_v51 = vpop.f32.mrf.mxu1  ;;  %v1746_v54 = vrot.slane %v1744_v38, 4 }
 0x1d4   : > { %v1457_v32 = vpop.f32.mrf.mxu0 }
 0x1d5   : > { %v1458_v17 = vadd.f32 %v1457_v32, %v6723_v55  ;;  %v6772_v6 = vpop.f32.mrf.mxu3  ;;  %v1778_v55 = vunpack.c.l.b16 %v1734_v39 }
 0x1d6   : > { %2042 = vmatmul.bf16.gmra.mxu2 %v1789_v52 }
 0x1d7   : > { %v6764_v57 = vadd.f32 %v1516_v30, %v1458_v17  ;;  %v1790_v44 = vpack.c.b16 %v1778_v55, %v1777_v25  ;;  %v1630_v30 = vld [vmem:[%s6273_s20 + $0x68] sm:$0x1]  ;;  %v1633_v17 = vld [vmem:[%s6273_s20 + $0x74] sm:$0x1] }
 0x1d8   : > { %v1740_v22 = vrot.slane %v1630_v30, 5  ;;  %v1747_v58 = vrot.slane %v1633_v17, 5  ;;  %v1634_v30 = vld [vmem:[%s6273_s20 + $0x78] sm:$0xe] }
 0x1d9   : > { %v1526_v0 = vpop.f32.mrf.mxu1  ;;  %v5070_v21 = vrot.slane %v1634_v30, 9 }
 0x1db   : > { %2101 = vmatmul.bf16.gmra.mxu3 %v1790_v44 }
 0x1dc   : > { %v1460_v8 = vpop.f32.mrf.mxu0 }
 0x1dd   : > { %v1461_v43 = vadd.f32 %v1460_v8, %v6729_v2  ;;  %v6777_v9 = vpop.f32.mrf.mxu3  ;;  %v1739_v2 = vrot.slane %v1737_v59, 4 }
 0x1df   : > { %v6775_v16 = vadd.f32 %v1519_v61, %v1461_v43  ;;  %2145 = vmatmul.bf16.gmra.mxu0 %v1788_v19  ;;  %v1741_v19 = vsel %vm6645_vm5, %v1739_v2, %v1740_v22 }
 0x1e0   : > { %v1780_v37 = vunpack.c.l.b16 %v1741_v19 }
 0x1e1   : > { %v1529_v35 = vpop.f32.mrf.mxu1 }
 0x1e4   : > { %v1462_v33 = vpop.f32.mrf.mxu0 }
 0x1e5   : > { %v1463_v18 = vadd.f32 %v1462_v33, %v1403_v42  ;;  %v6788_v34 = vpop.f32.mrf.mxu3  ;;  %v1779_v42 = vunpack.c.l.b16 %v1738_v28 }
 0x1e6   : > { %2047 = vmatmul.bf16.gmra.mxu2 %v1790_v44 }
 0x1e7   : > { %v6780_v12 = vadd.f32 %v1521_v63, %v1463_v18  ;;  %v1791_v29 = vpack.c.b16 %v1780_v37, %v1779_v42  ;;  %v1631_v63 = vld [vmem:[%s6273_s20 + $0x6c] sm:$0xe]  ;;  %v1635_v18 = vld [vmem:[%s6273_s20 + $0x7c] sm:$0xf] }
 0x1e8   : > { %v5069_v56 = vrot.slane %v1631_v63, 9  ;;  %v1751_v59 = vrot.slane %v1635_v18, 5 }
 0x1e9   : > { %v1531_v60 = vpop.f32.mrf.mxu1 }
 0x1eb   : > { %2106 = vmatmul.bf16.gmra.mxu3 %v1791_v29 }
 0x1ec   : > { %v1465_v53 = vpop.f32.mrf.mxu0 }
 0x1ed   : > { %v1466_v15 = vadd.f32 %v1465_v53, %v6745_v31  ;;  %v1421_v47 = vpop.f32.mrf.mxu3  ;;  %v1745_v31 = vsel %vm6645_vm5, %v5069_v56, %v1744_v38 }
 0x1ee   : > { %v1781_v50 = vunpack.c.l.b16 %v1745_v31 }
 0x1ef   : > { %v6791_v61 = vadd.f32 %v1524_v51, %v1466_v15  ;;  %2150 = vmatmul.bf16.gmra.mxu0 %v1789_v52  ;;  %v1748_v52 = vsel %vm6645_vm5, %v1746_v54, %v1747_v58 }
 0x1f1   : > { %v1534_v5 = vpop.f32.mrf.mxu1 }
 0x1f4   : > { %v1467_v48 = vpop.f32.mrf.mxu0 }
 0x1f5   : > { %v1468_v23 = vadd.f32 %v1467_v48, %v1408_v24  ;;  %v1423_v41 = vpop.f32.mrf.mxu3  ;;  %v1782_v24 = vunpack.c.l.b16 %v1748_v52  ;;  %v1562_v52 = vld [vmem:[#allocation3 + $0x70] sm:$0xff] }
 0x1f6   : > { %2052 = vmatmul.bf16.gmra.mxu2 %v1791_v29 }
 0x1f7   : > { %v6794_v32 = vadd.f32 %v1526_v0, %v1468_v23  ;;  %v1792_v25 = vpack.c.b16 %v1782_v24, %v1781_v50  ;;  %v1636_v0 = vld [vmem:[%s6273_s20 + $0x80] sm:$0x1] }
 0x1f8   : > { %v1754_v2 = vrot.slane %v1636_v0, 5  ;;  %v6834_v0 = vld [vmem:[%s7405_s2] ss:$0 sm:$0xff] }
 0x1f9   : > { %v2013_v8 = vpop.f32.mrf.mxu2  ;;  %v1536_v48 = vpop.f32.mrf.mxu1 }
 0x1fb   : > { %2111 = vmatmul.bf16.gmra.mxu3 %v1792_v25 }
 0x1fc   : > { %v1470_v3 = vpop.f32.mrf.mxu0 }
 0x1fd   : > { %v1471_v39 = vadd.f32 %v1470_v3, %v6760_v62  ;;  %v2072_v51 = vpop.f32.mrf.mxu3  ;;  %v1753_v62 = vrot.slane %v1751_v59, 4 }
 0x1ff   : > { %v6803_v55 = vadd.f32 %v1529_v35, %v1471_v39  ;;  %2155 = vmatmul.bf16.gmra.mxu0 %v1790_v44  ;;  %v1752_v44 = vsel %vm6645_vm5, %v5070_v21, %v1751_v59  ;;  %v1755_v22 = vsel %vm6645_vm5, %v1753_v62, %v1754_v2  ;;  %v1639_v21 = vld [vmem:[%s6273_s20 + $0x8c] sm:$0x1] }
 0x200   : > { %v1803_v19 = vunpack.c.l.b16 %v1752_v44  ;;  %v1804_v42 = vunpack.c.l.b16 %v1755_v22  ;;  %v1761_v62 = vrot.slane %v1639_v21, 5 }
 0x201   : > { %v2015_v28 = vpop.f32.mrf.mxu2  ;;  %v1539_v56 = vpop.f32.mrf.mxu1 }
 0x202   : > { %v1805_v15 = vpack.c.b16 %v1804_v42, %v1803_v19 }
 0x204   : > { %v1472_v43 = vpop.f32.mrf.mxu0 }
 0x205   : > { %v1473_v33 = vadd.f32 %v1472_v43, %v6772_v6  ;;  %v2074_v37 = vpop.f32.mrf.mxu3  ;;  %v2073_v43 = vadd.f32 %v2072_v51, %v2013_v8 }
 0x206   : > { %2057 = vmatmul.bf16.gmra.mxu2 %v1792_v25  ;;  %v2075_v44 = vadd.f32 %v2074_v37, %v2015_v28 }
 0x207   : > { %v6807_v27 = vadd.f32 %v1531_v60, %v1473_v33  ;;  %v777_v60 = vadd.f32 %v776_v49, %v6568_v45  ;;  %v6842_v49 = vld [vmem:[%s7406_s3] ss:$0 sm:$0xff] }
 0x209   : > { %v2018_v38 = vpop.f32.mrf.mxu2 }
 0x20b   : > { %2116 = vmatmul.bf16.gmra.mxu3 %v1805_v15 }
 0x20c   : > { %v1475_v6 = vpop.f32.mrf.mxu0 }
 0x20d   : > { %v1476_v53 = vadd.f32 %v1475_v6, %v6777_v9  ;;  %v2077_v63 = vpop.f32.mrf.mxu3 }
 0x20e   : > { %v2078_v37 = vadd.f32 %v2077_v63, %v2018_v38 }
 0x20f   : > { %v6816_v35 = vadd.f32 %v1534_v5, %v1476_v53  ;;  %2160 = vmatmul.bf16.gmra.mxu0 %v1791_v29 }
 0x211   : > { %v6821_v9 = vpop.f32.mrf.mxu2 }
 0x214   : > { %v1477_v23 = vpop.f32.mrf.mxu0 }
 0x215   : > { %v1478_v36 = vadd.f32 %v1477_v23, %v6788_v34  ;;  %v6823_v29 = vpop.f32.mrf.mxu3  ;;  %v1541_v34 = vpop.f32.mrf.mxu1 }
 0x217   : > { %v6819_v17 = vadd.f32 %v1536_v48, %v1478_v36 }
 0x219   : > { %v6827_v18 = vpop.f32.mrf.mxu2 }
 0x21c   : > { %v1480_v54 = vpop.f32.mrf.mxu0 }
 0x21d   : > { %v1481_v58 = vadd.f32 %v1480_v54, %v1421_v47  ;;  %v1638_v47 = vld [vmem:[%s6273_s20 + $0x88] sm:$0xf] }
 0x21e   : > { %v1758_v59 = vrot.slane %v1638_v47, 5 }
 0x21f   : > { %v1540_v31 = vadd.f32 %v1539_v56, %v1481_v58  ;;  %2165 = vmatmul.bf16.gmra.mxu0 %v1792_v25  ;;  %v6829_v25 = vpop.f32.mrf.mxu3 }
 0x220   : > { %v1760_v51 = vrot.slane %v1758_v59, 4 }
 0x221   : > { %v1582_v50 = vadd.f32 %v1562_v52, %v1540_v31  ;;  %v6846_v19 = vpop.f32.mrf.mxu2 }
 0x222   : > { %v1762_v6 = vsel %vm6645_vm5, %v1760_v51, %v1761_v62 }
 0x223   : > { %1602 = vst [vmem:[#allocation3 + $0x70] sm:$0xff] %v1582_v50  ;;  %v1808_v28 = vunpack.c.l.b16 %v1762_v6 }
 0x224   : > { %v1482_v24 = vpop.f32.mrf.mxu0 }
 0x225   : > { %v1483_v3 = vadd.f32 %v1482_v24, %v1423_v41  ;;  %v1637_v41 = vld [vmem:[%s6273_s20 + $0x84] sm:$0xe] }
 0x226   : > { %v5071_v8 = vrot.slane %v1637_v41, 9 }
 0x227   : > { %v1542_v39 = vadd.f32 %v1541_v34, %v1483_v3  ;;  %v6852_v53 = vpop.f32.mrf.mxu3  ;;  %v2555_v3 = vld [vmem:[#allocation2] sm:$0xf] }
 0x229   : > { %v1583_v33 = vadd.f32 %v1542_v39, %v777_v60  ;;  %v6862_v63 = vpop.f32.mrf.mxu2 }
 0x22b   : > { %1603 = vst [vmem:[#allocation3 + $0x90] sm:$0xff] %v1583_v33 }
 0x22c   : > { %v2131_v5 = vpop.f32.mrf.mxu0 }
 0x22d   : > { %v2132_v30 = vadd.f32 %v2131_v5, %v2073_v43 }
 0x22f   : > { %v2201_v45 = vadd.f32 %v2132_v30, %v6687_v11  ;;  %2170 = vmatmul.bf16.gmra.mxu0 %v1805_v15  ;;  %v1759_v11 = vsel %vm6645_vm5, %v5071_v8, %v1758_v59  ;;  %v6864_v43 = vpop.f32.mrf.mxu3  ;;  %v2080_v8 = vadd.f32 %v6823_v29, %v6821_v9 }
 0x230   : > { %v1807_v56 = vunpack.c.l.b16 %v1759_v11 }
 0x231   : > { %v2265_v2 = vmul.f32 %v6834_v0, %v2201_v45 }
 0x232   : > { %v1809_v24 = vpack.c.b16 %v1808_v28, %v1807_v56 }
 0x233   : > { %v2289_v22 = vadd.f32 %v6842_v49, %v2265_v2  ;;  %v2561_v2 = vld [vmem:[#allocation2 + $0x8] sm:$0x1] }
 0x234   : > { %v2133_v42 = vpop.f32.mrf.mxu0 }
 0x235   : > { %v2309_v15 = vmax.f32 %v2289_v22, 0.0  ;;  %v2134_v48 = vadd.f32 %v2133_v42, %v2075_v44 }
 0x237   : > { %v2329_v23 = vpack.c.bf16 %v2309_v15, %v2309_v15  ;;  %v2202_v36 = vadd.f32 %v2134_v48, %v6697_v20  ;;  %v6891_v28 = vpop.f32.mrf.mxu3 }
 0x239   : > { %v2353_v54 = vshrl.u32 %v2329_v23, 16  ;;  %v2266_v58 = vmul.f32 %v6834_v0, %v2202_v36  ;;  %v2356_v52 = vshll.u32 %v2329_v23, 16  ;;  %v6887_v36 = vpop.f32.mrf.mxu2 }
 0x23b   : > { %v2355_v31 = vrot.slane %v2353_v54, 7  ;;  %v2290_v50 = vadd.f32 %v6842_v49, %v2266_v58  ;;  %v2083_v54 = vadd.f32 %v6829_v25, %v6827_v18 }
 0x23c   : > { %v2136_v20 = vpop.f32.mrf.mxu0 }
 0x23d   : > { %v2358_v60 = vor.u32 %v2356_v52, %v2355_v31  ;;  %v2310_v39 = vmax.f32 %v2290_v50, 0.0  ;;  %v2137_v38 = vadd.f32 %v2136_v20, %v2078_v37  ;;  %v2359_v51 = vrot.slane %v2355_v31, 4  ;;  %v2564_v50 = vld [vmem:[#allocation2 + $0xc] sm:$0xf] }
 0x23f   : > { %v2556_v33 = vsel %vm6858_vm8, %v2358_v60, %v2555_v3  ;;  %v2330_v47 = vpack.c.bf16 %v2310_v39, %v2310_v39  ;;  %v2203_v5 = vadd.f32 %v2137_v38, %v6708_v14  ;;  %2175 = vmatmul.bf16.gmra.mxu0 %v1809_v24 }
 0x240   : > { %2557 = vst [vmem:[#allocation2] sm:$0xf] %v2556_v33 }
 0x241   : > { %v2361_v59 = vshrl.u32 %v2330_v47, 16  ;;  %v2267_v30 = vmul.f32 %v6834_v0, %v2203_v5  ;;  %v2364_v45 = vshll.u32 %v2330_v47, 16 }
 0x243   : > { %v2363_v21 = vrot.slane %v2361_v59, 7  ;;  %v2291_v14 = vadd.f32 %v6842_v49, %v2267_v30  ;;  %v6907_v59 = vpop.f32.mrf.mxu2 }
 0x244   : > { %v2138_v44 = vpop.f32.mrf.mxu0 }
 0x245   : > { %v2366_v22 = vor.u32 %v2364_v45, %v2363_v21  ;;  %v2368_v42 = vrot.slane %v2363_v21, 4  ;;  %v2311_v11 = vmax.f32 %v2291_v14, 0.0  ;;  %v2139_v6 = vadd.f32 %v2138_v44, %v2080_v8  ;;  %v6911_v21 = vpop.f32.mrf.mxu3 }
 0x246   : > { %v2085_v14 = vadd.f32 %v6852_v53, %v6846_v19 }
 0x247   : > { %v2627_v15 = vld [vmem:[#allocation2] sm:$0x1]  ;;  %v2367_v48 = vsel %vm6878_vm13, %v2359_v51, %v2366_v22  ;;  %v2562_v9 = vsel %vm6871_vm12, %v2368_v42, %v2561_v2  ;;  %v2331_v29 = vpack.c.bf16 %v2311_v11, %v2311_v11  ;;  %v2204_v23 = vadd.f32 %v2139_v6, %v6717_v40  ;;  %v2568_v2 = vld [vmem:[#allocation2 + $0x14] sm:$0x1] }
 0x248   : > { %v2628_v56 = vsel %vm6871_vm12, 0, %v2627_v15  ;;  %2558 = vst [vmem:[#allocation2 + $0x4] sm:$0xf] %v2367_v48 }
 0x249   : > { %2629 = vst [vmem:[#allocation2] sm:$0x1] %v2628_v56  ;;  %v2370_v37 = vshrl.u32 %v2331_v29, 16  ;;  %v2268_v58 = vmul.f32 %v6834_v0, %v2204_v23  ;;  %v2373_v52 = vshll.u32 %v2331_v29, 16  ;;  %v2088_v56 = vadd.f32 %v6864_v43, %v6862_v63 }
 0x24a   : > { %2563 = vst [vmem:[#allocation2 + $0x8] sm:$0x1] %v2562_v9 }
 0x24b   : > { %v2372_v31 = vrot.slane %v2370_v37, 7  ;;  %v2292_v40 = vadd.f32 %v6842_v49, %v2268_v58 }
 0x24c   : > { %v2141_v24 = vpop.f32.mrf.mxu0 }
 0x24d   : > { %v2375_v3 = vor.u32 %v2373_v52, %v2372_v31  ;;  %v2312_v20 = vmax.f32 %v2292_v40, 0.0  ;;  %v2142_v60 = vadd.f32 %v2141_v24, %v2083_v54  ;;  %v2376_v51 = vrot.slane %v2372_v31, 4  ;;  %v6927_v52 = vpop.f32.mrf.mxu2  ;;  %v1550_v40 = vld [vmem:[#allocation3 + $0x78] sm:$0xff]  ;;  %v6929_v24 = vpop.f32.mrf.mxu3 }
 0x24f   : > { %v2565_v18 = vsel %vm6858_vm8, %v2375_v3, %v2564_v50  ;;  %v2332_v25 = vpack.c.bf16 %v2312_v20, %v2312_v20  ;;  %v2205_v38 = vadd.f32 %v2142_v60, %v6727_v1  ;;  %v1570_v3 = vadd.f32 %v1550_v40, %v6743_v4  ;;  %v2578_v40 = vld [vmem:[#allocation2 + $0x24] sm:$0xf] }
 0x250   : > { %2566 = vst [vmem:[#allocation2 + $0xc] sm:$0xf] %v2565_v18 }
 0x251   : > { %v2658_v33 = vld [vmem:[#allocation2 + $0x8] sm:$0x1]  ;;  %v2378_v47 = vshrl.u32 %v2332_v25, 16  ;;  %v2269_v5 = vmul.f32 %v6834_v0, %v2205_v38  ;;  %v2381_v8 = vshll.u32 %v2332_v25, 16 }
 0x252   : > { %v2659_v30 = vsel %vm6899_vm14, 0, %v2658_v33 }
 0x253   : > { %2660 = vst [vmem:[#allocation2 + $0x8] sm:$0x1] %v2659_v30  ;;  %v2380_v45 = vrot.slane %v2378_v47, 7  ;;  %v2293_v1 = vadd.f32 %v6842_v49, %v2269_v5  ;;  %v1551_v30 = vld [vmem:[#allocation3 + $0x80] sm:$0xff] }
 0x254   : > { %v2143_v44 = vpop.f32.mrf.mxu0 }
 0x255   : > { %v2383_v22 = vor.u32 %v2381_v8, %v2380_v45  ;;  %v2385_v42 = vrot.slane %v2380_v45, 4  ;;  %v2313_v11 = vmax.f32 %v2293_v1, 0.0  ;;  %v2144_v6 = vadd.f32 %v2143_v44, %v2085_v14 }
 0x256   : > { %v2090_v8 = vadd.f32 %v6891_v28, %v6887_v36  ;;  %v1571_v1 = vadd.f32 %v1551_v30, %v6749_v26 }
 0x257   : > { %v2630_v15 = vld [vmem:[#allocation2 + $0xc] sm:$0x1]  ;;  %v2384_v48 = vsel %vm6878_vm13, %v2376_v51, %v2383_v22  ;;  %v2569_v9 = vsel %vm6871_vm12, %v2385_v42, %v2568_v2  ;;  %v2333_v29 = vpack.c.bf16 %v2313_v11, %v2313_v11  ;;  %v2206_v23 = vadd.f32 %v2144_v6, %v6736_v7  ;;  %v2571_v7 = vld [vmem:[#allocation2 + $0x18] sm:$0xf]  ;;  %v2575_v2 = vld [vmem:[#allocation2 + $0x20] sm:$0x1] }
 0x258   : > { %v2631_v19 = vsel %vm6871_vm12, 0, %v2630_v15  ;;  %2567 = vst [vmem:[#allocation2 + $0x10] sm:$0xf] %v2384_v48  ;;  %v2038_v15 = vpop.f32.mrf.mxu2  ;;  %v2097_v48 = vpop.f32.mrf.mxu3 }
 0x259   : > { %2632 = vst [vmem:[#allocation2 + $0xc] sm:$0x1] %v2631_v19  ;;  %v2387_v53 = vshrl.u32 %v2333_v29, 16  ;;  %v2270_v37 = vmul.f32 %v6834_v0, %v2206_v23  ;;  %v2390_v58 = vshll.u32 %v2333_v29, 16 }
 0x25a   : > { %2570 = vst [vmem:[#allocation2 + $0x14] sm:$0x1] %v2569_v9 }
 0x25b   : > { %v2389_v54 = vrot.slane %v2387_v53, 7  ;;  %v2294_v31 = vadd.f32 %v6842_v49, %v2270_v37  ;;  %v2093_v53 = vadd.f32 %v6911_v21, %v6907_v59 }
 0x25c   : > { %v2146_v50 = vpop.f32.mrf.mxu0 }
 0x25d   : > { %v2392_v20 = vor.u32 %v2390_v58, %v2389_v54  ;;  %v2314_v60 = vmax.f32 %v2294_v31, 0.0  ;;  %v2147_v18 = vadd.f32 %v2146_v50, %v2088_v56  ;;  %v2393_v51 = vrot.slane %v2389_v54, 4  ;;  %v1552_v31 = vld [vmem:[#allocation3 + $0x8] sm:$0xff] }
 0x25e   : > { %v1572_v50 = vadd.f32 %v1552_v31, %v6758_v46  ;;  %v1553_v46 = vld [vmem:[#allocation3 + $0x88] sm:$0xff] }
 0x25f   : > { %v2572_v63 = vsel %vm6858_vm8, %v2392_v20, %v2571_v7  ;;  %v2334_v43 = vpack.c.bf16 %v2314_v60, %v2314_v60  ;;  %v2207_v25 = vadd.f32 %v2147_v18, %v1570_v3 }
 0x260   : > { %2573 = vst [vmem:[#allocation2 + $0x18] sm:$0xf] %v2572_v63  ;;  %v2040_v63 = vpop.f32.mrf.mxu2 }
 0x261   : > { %v2661_v38 = vld [vmem:[#allocation2 + $0x14] sm:$0x1]  ;;  %v2395_v33 = vshrl.u32 %v2334_v43, 16  ;;  %2227 = vst [vmem:[#allocation3 + $0x78] sm:$0xff] %v2207_v25  ;;  %v2271_v47 = vmul.f32 %v6834_v0, %v2207_v25  ;;  %v2398_v45 = vshll.u32 %v2334_v43, 16  ;;  %v2099_v43 = vpop.f32.mrf.mxu3 }
 0x262   : > { %v2662_v5 = vsel %vm6899_vm14, 0, %v2661_v38 }
 0x263   : > { %2663 = vst [vmem:[#allocation2 + $0x14] sm:$0x1] %v2662_v5  ;;  %v2397_v4 = vrot.slane %v2395_v33, 7  ;;  %v2295_v14 = vadd.f32 %v6842_v49, %v2271_v47 }
 0x264   : > { %v2148_v44 = vpop.f32.mrf.mxu0 }
 0x265   : > { %v2400_v22 = vor.u32 %v2398_v45, %v2397_v4  ;;  %v2402_v42 = vrot.slane %v2397_v4, 4  ;;  %v2315_v11 = vmax.f32 %v2295_v14, 0.0  ;;  %v2149_v6 = vadd.f32 %v2148_v44, %v2090_v8 }
 0x266   : > { %v2095_v4 = vadd.f32 %v6929_v24, %v6927_v52  ;;  %v1573_v8 = vadd.f32 %v1553_v46, %v6764_v57 }
 0x267   : > { %v2633_v9 = vld [vmem:[#allocation2 + $0x18] sm:$0x1]  ;;  %v2401_v29 = vsel %vm6878_vm13, %v2393_v51, %v2400_v22  ;;  %v2576_v36 = vsel %vm6871_vm12, %v2402_v42, %v2575_v2  ;;  %v2335_v28 = vpack.c.bf16 %v2315_v11, %v2315_v11  ;;  %v2208_v23 = vadd.f32 %v2149_v6, %v1571_v1  ;;  %v2582_v1 = vld [vmem:[#allocation2 + $0x2c] sm:$0x1] }
 0x268   : > { %v2634_v26 = vsel %vm6871_vm12, 0, %v2633_v9  ;;  %2574 = vst [vmem:[#allocation2 + $0x1c] sm:$0xf] %v2401_v29 }
 0x269   : > { %2635 = vst [vmem:[#allocation2 + $0x18] sm:$0x1] %v2634_v26  ;;  %v2404_v19 = vshrl.u32 %v2335_v28, 16  ;;  %v2272_v56 = vmul.f32 %v6834_v0, %v2208_v23  ;;  %v2407_v54 = vshll.u32 %v2335_v28, 16  ;;  %v2102_v26 = vpop.f32.mrf.mxu3 }
 0x26a   : > { %2577 = vst [vmem:[#allocation2 + $0x20] sm:$0x1] %v2576_v36  ;;  %v2098_v36 = vadd.f32 %v2097_v48, %v2038_v15 }
 0x26b   : > { %v2406_v37 = vrot.slane %v2404_v19, 7  ;;  %2228 = vst [vmem:[#allocation3 + $0x80] sm:$0xff] %v2208_v23  ;;  %v2296_v58 = vadd.f32 %v6842_v49, %v2272_v56  ;;  %v2043_v23 = vpop.f32.mrf.mxu2 }
 0x26c   : > { %v2151_v7 = vpop.f32.mrf.mxu0 }
 0x26d   : > { %v2409_v3 = vor.u32 %v2407_v54, %v2406_v37  ;;  %v2316_v20 = vmax.f32 %v2296_v58, 0.0  ;;  %v2152_v60 = vadd.f32 %v2151_v7, %v2093_v53  ;;  %v2410_v14 = vrot.slane %v2406_v37, 4  ;;  %v1554_v37 = vld [vmem:[#allocation3 + $0x28] sm:$0xff]  ;;  %v2585_v54 = vld [vmem:[#allocation2 + $0x30] sm:$0xf] }
 0x26e   : > { %v1574_v31 = vadd.f32 %v1554_v37, %v6775_v16 }
 0x26f   : > { %v2579_v18 = vsel %vm6858_vm8, %v2409_v3, %v2578_v40  ;;  %v2336_v59 = vpack.c.bf16 %v2316_v20, %v2316_v20  ;;  %v2209_v21 = vadd.f32 %v2152_v60, %v1572_v50 }
 0x270   : > { %2580 = vst [vmem:[#allocation2 + $0x24] sm:$0xf] %v2579_v18 }
 0x271   : > { %v2664_v25 = vld [vmem:[#allocation2 + $0x20] sm:$0x1]  ;;  %v2412_v38 = vshrl.u32 %v2336_v59, 16  ;;  %2229 = vst [vmem:[#allocation3 + $0x8] sm:$0xff] %v2209_v21  ;;  %v2273_v33 = vmul.f32 %v6834_v0, %v2209_v21  ;;  %v2415_v30 = vshll.u32 %v2336_v59, 16  ;;  %v1555_v21 = vld [vmem:[#allocation3 + $0x40] sm:$0xff] }
 0x272   : > { %v2665_v47 = vsel %vm6899_vm14, 0, %v2664_v25  ;;  %v1575_v46 = vadd.f32 %v1555_v21, %v6780_v12 }
 0x273   : > { %2666 = vst [vmem:[#allocation2 + $0x20] sm:$0x1] %v2665_v47  ;;  %v2414_v5 = vrot.slane %v2412_v38, 7  ;;  %v2297_v45 = vadd.f32 %v6842_v49, %v2273_v33  ;;  %v2100_v38 = vadd.f32 %v2099_v43, %v2040_v63  ;;  %v2045_v47 = vpop.f32.mrf.mxu2 }
 0x274   : > { %v2153_v51 = vpop.f32.mrf.mxu0 }
 0x275   : > { %v2417_v2 = vor.u32 %v2415_v30, %v2414_v5  ;;  %v2419_v44 = vrot.slane %v2414_v5, 4  ;;  %v2317_v22 = vmax.f32 %v2297_v45, 0.0  ;;  %v2154_v42 = vadd.f32 %v2153_v51, %v2095_v4  ;;  %v2589_v30 = vld [vmem:[#allocation2 + $0x38] sm:$0x1]  ;;  %v2104_v45 = vpop.f32.mrf.mxu3 }
 0x277   : > { %v2636_v11 = vld [vmem:[#allocation2 + $0x24] sm:$0x1]  ;;  %v2418_v6 = vsel %vm6878_vm13, %v2410_v14, %v2417_v2  ;;  %v2583_v9 = vsel %vm6871_vm12, %v2419_v44, %v2582_v1  ;;  %v2337_v29 = vpack.c.bf16 %v2317_v22, %v2317_v22  ;;  %v2210_v52 = vadd.f32 %v2154_v42, %v1573_v8 }
 0x278   : > { %v2637_v24 = vsel %vm6871_vm12, 0, %v2636_v11  ;;  %2581 = vst [vmem:[#allocation2 + $0x28] sm:$0xf] %v2418_v6  ;;  %v2103_v11 = vadd.f32 %v2102_v26, %v2043_v23 }
 0x279   : > { %2638 = vst [vmem:[#allocation2 + $0x24] sm:$0x1] %v2637_v24  ;;  %v2421_v57 = vshrl.u32 %v2337_v29, 16  ;;  %v2274_v28 = vmul.f32 %v6834_v0, %v2210_v52  ;;  %v2424_v53 = vshll.u32 %v2337_v29, 16  ;;  %v1556_v24 = vld [vmem:[#allocation3 + $0x58] sm:$0xff] }
 0x27a   : > { %2584 = vst [vmem:[#allocation2 + $0x2c] sm:$0x1] %v2583_v9 }
 0x27b   : > { %v2423_v19 = vrot.slane %v2421_v57, 7  ;;  %2230 = vst [vmem:[#allocation3 + $0x88] sm:$0xff] %v2210_v52  ;;  %v2298_v56 = vadd.f32 %v6842_v49, %v2274_v28  ;;  %v2592_v57 = vld [vmem:[#allocation2 + $0x3c] sm:$0xf]  ;;  %v1576_v28 = vadd.f32 %v1556_v24, %v6791_v61  ;;  %v2048_v37 = vpop.f32.mrf.mxu2  ;;  %v1557_v61 = vld [vmem:[#allocation3 + $0x10] sm:$0xff] }
 0x27c   : > { %v2156_v58 = vpop.f32.mrf.mxu0 }
 0x27d   : > { %v2426_v40 = vor.u32 %v2424_v53, %v2423_v19  ;;  %v2318_v7 = vmax.f32 %v2298_v56, 0.0  ;;  %v2157_v50 = vadd.f32 %v2156_v58, %v2098_v36  ;;  %v2427_v5 = vrot.slane %v2423_v19, 4 }
 0x27f   : > { %v2586_v15 = vsel %vm6858_vm8, %v2426_v40, %v2585_v54  ;;  %v2338_v48 = vpack.c.bf16 %v2318_v7, %v2318_v7  ;;  %v2211_v3 = vadd.f32 %v2157_v50, %v1574_v31  ;;  %v2107_v54 = vpop.f32.mrf.mxu3 }
 0x280   : > { %2587 = vst [vmem:[#allocation2 + $0x30] sm:$0xf] %v2586_v15 }
 0x281   : > { %v2667_v20 = vld [vmem:[#allocation2 + $0x2c] sm:$0x1]  ;;  %v2429_v60 = vshrl.u32 %v2338_v48, 16  ;;  %2231 = vst [vmem:[#allocation3 + $0x28] sm:$0xff] %v2211_v3  ;;  %v2275_v18 = vmul.f32 %v6834_v0, %v2211_v3  ;;  %v2432_v25 = vshll.u32 %v2338_v48, 16  ;;  %v2105_v3 = vadd.f32 %v2104_v45, %v2045_v47 }
 0x282   : > { %v2668_v59 = vsel %vm6899_vm14, 0, %v2667_v20 }
 0x283   : > { %2669 = vst [vmem:[#allocation2 + $0x2c] sm:$0x1] %v2668_v59  ;;  %v2431_v16 = vrot.slane %v2429_v60, 7  ;;  %v2299_v33 = vadd.f32 %v6842_v49, %v2275_v18  ;;  %v1577_v60 = vadd.f32 %v1557_v61, %v6794_v32  ;;  %v2596_v59 = vld [vmem:[#allocation2 + $0x44] sm:$0x1]  ;;  %v2050_v45 = vpop.f32.mrf.mxu2 }
 0x284   : > { %v2158_v4 = vpop.f32.mrf.mxu0 }
 0x285   : > { %v2434_v8 = vor.u32 %v2432_v25, %v2431_v16  ;;  %v2436_v14 = vrot.slane %v2431_v16, 4  ;;  %v2319_v1 = vmax.f32 %v2299_v33, 0.0  ;;  %v2159_v51 = vadd.f32 %v2158_v4, %v2100_v38 }
 0x287   : > { %v2639_v2 = vld [vmem:[#allocation2 + $0x30] sm:$0x1]  ;;  %v2435_v44 = vsel %vm6878_vm13, %v2427_v5, %v2434_v8  ;;  %v2590_v63 = vsel %vm6871_vm12, %v2436_v14, %v2589_v30  ;;  %v2339_v43 = vpack.c.bf16 %v2319_v1, %v2319_v1  ;;  %v2212_v22 = vadd.f32 %v2159_v51, %v1575_v46  ;;  %v2109_v8 = vpop.f32.mrf.mxu3 }
 0x288   : > { %v2640_v12 = vsel %vm6871_vm12, 0, %v2639_v2  ;;  %2588 = vst [vmem:[#allocation2 + $0x34] sm:$0xf] %v2435_v44  ;;  %v2108_v1 = vadd.f32 %v2107_v54, %v2048_v37 }
 0x289   : > { %2641 = vst [vmem:[#allocation2 + $0x30] sm:$0x1] %v2640_v12  ;;  %v2438_v42 = vshrl.u32 %v2339_v43, 16  ;;  %v2276_v6 = vmul.f32 %v6834_v0, %v2212_v22  ;;  %v2441_v29 = vshll.u32 %v2339_v43, 16  ;;  %v1558_v43 = vld [vmem:[#allocation3 + $0x98] sm:$0xff] }
 0x28a   : > { %2591 = vst [vmem:[#allocation2 + $0x38] sm:$0x1] %v2590_v63 }
 0x28b   : > { %v2440_v9 = vrot.slane %v2438_v42, 7  ;;  %2232 = vst [vmem:[#allocation3 + $0x40] sm:$0xff] %v2212_v22  ;;  %v2300_v52 = vadd.f32 %v6842_v49, %v2276_v6  ;;  %v2599_v22 = vld [vmem:[#allocation2 + $0x48] sm:$0xf]  ;;  %v1578_v42 = vadd.f32 %v1558_v43, %v6803_v55  ;;  %v1559_v55 = vld [vmem:[#allocation3 + $0x60] sm:$0xff] }
 0x28c   : > { %v2161_v36 = vpop.f32.mrf.mxu0 }
 0x28d   : > { %v2443_v19 = vor.u32 %v2441_v29, %v2440_v9  ;;  %v2320_v53 = vmax.f32 %v2300_v52, 0.0  ;;  %v2162_v56 = vadd.f32 %v2161_v36, %v2103_v11  ;;  %v2444_v18 = vrot.slane %v2440_v9, 4 }
 0x28f   : > { %v2593_v23 = vsel %vm6858_vm8, %v2443_v19, %v2592_v57  ;;  %v2340_v26 = vpack.c.bf16 %v2320_v53, %v2320_v53  ;;  %v2213_v58 = vadd.f32 %v2162_v56, %v1576_v28  ;;  %v2053_v19 = vpop.f32.mrf.mxu2  ;;  %v2112_v56 = vpop.f32.mrf.mxu3 }
 0x290   : > { %2594 = vst [vmem:[#allocation2 + $0x3c] sm:$0xf] %v2593_v23  ;;  %v2110_v23 = vadd.f32 %v2109_v8, %v2050_v45 }
 0x291   : > { %v2670_v31 = vld [vmem:[#allocation2 + $0x38] sm:$0x1]  ;;  %v2446_v40 = vshrl.u32 %v2340_v26, 16  ;;  %2233 = vst [vmem:[#allocation3 + $0x58] sm:$0xff] %v2213_v58  ;;  %v2277_v7 = vmul.f32 %v6834_v0, %v2213_v58  ;;  %v2449_v48 = vshll.u32 %v2340_v26, 16  ;;  %v1579_v58 = vadd.f32 %v1559_v55, %v6807_v27 }
 0x292   : > { %v2671_v50 = vsel %vm6899_vm14, 0, %v2670_v31 }
 0x293   : > { %2672 = vst [vmem:[#allocation2 + $0x38] sm:$0x1] %v2671_v50  ;;  %v2448_v15 = vrot.slane %v2446_v40, 7  ;;  %v2301_v20 = vadd.f32 %v6842_v49, %v2277_v7  ;;  %v2603_v40 = vld [vmem:[#allocation2 + $0x50] sm:$0x1] }
 0x294   : > { %v2163_v21 = vpop.f32.mrf.mxu0 }
 0x295   : > { %v2451_v16 = vor.u32 %v2449_v48, %v2448_v15  ;;  %v2453_v25 = vrot.slane %v2448_v15, 4  ;;  %v2321_v38 = vmax.f32 %v2301_v20, 0.0  ;;  %v2164_v33 = vadd.f32 %v2163_v21, %v2105_v3 }
 0x297   : > { %v2642_v46 = vld [vmem:[#allocation2 + $0x3c] sm:$0x1]  ;;  %v2452_v5 = vsel %vm6878_vm13, %v2444_v18, %v2451_v16  ;;  %v2597_v30 = vsel %vm6871_vm12, %v2453_v25, %v2596_v59  ;;  %v2341_v4 = vpack.c.bf16 %v2321_v38, %v2321_v38  ;;  %v2214_v47 = vadd.f32 %v2164_v33, %v1577_v60 }
 0x298   : > { %v2643_v32 = vsel %vm6871_vm12, 0, %v2642_v46  ;;  %2595 = vst [vmem:[#allocation2 + $0x40] sm:$0xf] %v2452_v5  ;;  %v2113_v16 = vadd.f32 %v2112_v56, %v2053_v19  ;;  %v2055_v5 = vpop.f32.mrf.mxu2 }
 0x299   : > { %2644 = vst [vmem:[#allocation2 + $0x3c] sm:$0x1] %v2643_v32  ;;  %v2455_v14 = vshrl.u32 %v2341_v4, 16  ;;  %v2278_v51 = vmul.f32 %v6834_v0, %v2214_v47  ;;  %v2458_v44 = vshll.u32 %v2341_v4, 16  ;;  %v2606_v4 = vld [vmem:[#allocation2 + $0x54] sm:$0xf] }
 0x29a   : > { %2598 = vst [vmem:[#allocation2 + $0x44] sm:$0x1] %v2597_v30  ;;  %v1560_v30 = vld [vmem:[#allocation3 + $0x20] sm:$0xff] }
 0x29b   : > { %v2457_v2 = vrot.slane %v2455_v14, 7  ;;  %2234 = vst [vmem:[#allocation3 + $0x10] sm:$0xff] %v2214_v47  ;;  %v2302_v63 = vadd.f32 %v6842_v49, %v2278_v51  ;;  %v2114_v47 = vpop.f32.mrf.mxu3  ;;  %v1580_v32 = vadd.f32 %v1560_v30, %v6816_v35 }
 0x29c   : > { %v2166_v12 = vpop.f32.mrf.mxu0 }
 0x29d   : > { %v2460_v11 = vor.u32 %v2458_v44, %v2457_v2  ;;  %v2322_v6 = vmax.f32 %v2302_v63, 0.0  ;;  %v2167_v9 = vadd.f32 %v2166_v12, %v2108_v1  ;;  %v2461_v31 = vrot.slane %v2457_v2, 4 }
 0x29f   : > { %v2600_v29 = vsel %vm6858_vm8, %v2460_v11, %v2599_v22  ;;  %v2342_v52 = vpack.c.bf16 %v2322_v6, %v2322_v6  ;;  %v2215_v24 = vadd.f32 %v2167_v9, %v1578_v42  ;;  %v1561_v42 = vld [vmem:[#allocation3 + $0x48] sm:$0xff]  ;;  %v2115_v6 = vadd.f32 %v2114_v47, %v2055_v5 }
 0x2a0   : > { %2601 = vst [vmem:[#allocation2 + $0x48] sm:$0xf] %v2600_v29  ;;  %v1581_v29 = vadd.f32 %v1561_v42, %v6819_v17  ;;  %v2058_v56 = vpop.f32.mrf.mxu2 }
 0x2a1   : > { %v2673_v57 = vld [vmem:[#allocation2 + $0x44] sm:$0x1]  ;;  %v2463_v36 = vshrl.u32 %v2342_v52, 16  ;;  %2235 = vst [vmem:[#allocation3 + $0x98] sm:$0xff] %v2215_v24  ;;  %v2279_v28 = vmul.f32 %v6834_v0, %v2215_v24  ;;  %v2466_v54 = vshll.u32 %v2342_v52, 16 }
 0x2a2   : > { %v2674_v53 = vsel %vm6899_vm14, 0, %v2673_v57  ;;  %v2610_v24 = vld [vmem:[#allocation2 + $0x5c] sm:$0x1] }
 0x2a3   : > { %2675 = vst [vmem:[#allocation2 + $0x44] sm:$0x1] %v2674_v53  ;;  %v2465_v37 = vrot.slane %v2463_v36, 7  ;;  %v2303_v26 = vadd.f32 %v6842_v49, %v2279_v28  ;;  %v2117_v55 = vpop.f32.mrf.mxu3 }
 0x2a4   : > { %v2168_v7 = vpop.f32.mrf.mxu0 }
 0x2a5   : > { %v2468_v50 = vor.u32 %v2466_v54, %v2465_v37  ;;  %v2470_v61 = vrot.slane %v2465_v37, 4  ;;  %v2323_v15 = vmax.f32 %v2303_v26, 0.0  ;;  %v2169_v48 = vadd.f32 %v2168_v7, %v2110_v23 }
 0x2a7   : > { %v2645_v3 = vld [vmem:[#allocation2 + $0x48] sm:$0x1]  ;;  %v2469_v20 = vsel %vm6878_vm13, %v2461_v31, %v2468_v50  ;;  %v2604_v60 = vsel %vm6871_vm12, %v2470_v61, %v2603_v40  ;;  %v2343_v18 = vpack.c.bf16 %v2323_v15, %v2323_v15  ;;  %v2216_v59 = vadd.f32 %v2169_v48, %v1579_v58  ;;  %v2613_v48 = vld [vmem:[#allocation2 + $0x60] sm:$0xf] }
 0x2a8   : > { %v2646_v21 = vsel %vm6871_vm12, 0, %v2645_v3  ;;  %2602 = vst [vmem:[#allocation2 + $0x4c] sm:$0xf] %v2469_v20  ;;  %v2118_v40 = vadd.f32 %v2117_v55, %v2058_v56 }
 0x2a9   : > { %2647 = vst [vmem:[#allocation2 + $0x48] sm:$0x1] %v2646_v21  ;;  %v2472_v27 = vshrl.u32 %v2343_v18, 16  ;;  %v2280_v25 = vmul.f32 %v6834_v0, %v2216_v59  ;;  %v2475_v33 = vshll.u32 %v2343_v18, 16 }
 0x2aa   : > { %2605 = vst [vmem:[#allocation2 + $0x50] sm:$0x1] %v2604_v60 }
 0x2ab   : > { %v2474_v38 = vrot.slane %v2472_v27, 7  ;;  %2236 = vst [vmem:[#allocation3 + $0x60] sm:$0xff] %v2216_v59  ;;  %v2304_v46 = vadd.f32 %v6842_v49, %v2280_v25  ;;  %v2199_v59 = vld [vmem:[#allocation3 + $0x70] sm:$0xff]  ;;  %v2060_v25 = vpop.f32.mrf.mxu2 }
 0x2ac   : > { %v2171_v45 = vpop.f32.mrf.mxu0 }
 0x2ad   : > { %v2477_v8 = vor.u32 %v2475_v33, %v2474_v38  ;;  %v2324_v14 = vmax.f32 %v2304_v46, 0.0  ;;  %v2172_v1 = vadd.f32 %v2171_v45, %v2113_v16  ;;  %v2478_v52 = vrot.slane %v2474_v38, 4  ;;  %v2119_v38 = vpop.f32.mrf.mxu3 }
 0x2ae   : > { %v2120_v45 = vadd.f32 %v2119_v38, %v2060_v25 }
 0x2af   : > { %v2607_v51 = vsel %vm6858_vm8, %v2477_v8, %v2606_v4  ;;  %v2344_v2 = vpack.c.bf16 %v2324_v14, %v2324_v14  ;;  %v2217_v44 = vadd.f32 %v2172_v1, %v1580_v32  ;;  %v2617_v14 = vld [vmem:[#allocation2 + $0x68] sm:$0x1] }
 0x2b0   : > { %2608 = vst [vmem:[#allocation2 + $0x54] sm:$0xf] %v2607_v51 }
 0x2b1   : > { %v2676_v63 = vld [vmem:[#allocation2 + $0x50] sm:$0x1]  ;;  %v2480_v43 = vshrl.u32 %v2344_v2, 16  ;;  %2237 = vst [vmem:[#allocation3 + $0x20] sm:$0xff] %v2217_v44  ;;  %v2281_v22 = vmul.f32 %v6834_v0, %v2217_v44  ;;  %v2483_v11 = vshll.u32 %v2344_v2, 16 }
 0x2b2   : > { %v2677_v12 = vsel %vm6899_vm14, 0, %v2676_v63 }
 0x2b3   : > { %2678 = vst [vmem:[#allocation2 + $0x50] sm:$0x1] %v2677_v12  ;;  %v2482_v35 = vrot.slane %v2480_v43, 7  ;;  %v2305_v9 = vadd.f32 %v6842_v49, %v2281_v22  ;;  %v2200_v43 = vld [vmem:[#allocation3 + $0x90] sm:$0xff] }
 0x2b4   : > { %v2173_v57 = vpop.f32.mrf.mxu0 }
 0x2b5   : > { %v2485_v36 = vor.u32 %v2483_v11, %v2482_v35  ;;  %v2487_v28 = vrot.slane %v2482_v35, 4  ;;  %v2325_v19 = vmax.f32 %v2305_v9, 0.0  ;;  %v2174_v53 = vadd.f32 %v2173_v57, %v2115_v6 }
 0x2b7   : > { %v2648_v37 = vld [vmem:[#allocation2 + $0x54] sm:$0x1]  ;;  %v2486_v54 = vsel %vm6878_vm13, %v2478_v52, %v2485_v36  ;;  %v2611_v23 = vsel %vm6871_vm12, %v2487_v28, %v2610_v24  ;;  %v2345_v26 = vpack.c.bf16 %v2325_v19, %v2325_v19  ;;  %v2218_v58 = vadd.f32 %v2174_v53, %v1581_v29  ;;  %v2620_v36 = vld [vmem:[#allocation2 + $0x6c] sm:$0xf] }
 0x2b8   : > { %v2649_v17 = vsel %vm6871_vm12, 0, %v2648_v37  ;;  %2609 = vst [vmem:[#allocation2 + $0x58] sm:$0xf] %v2486_v54 }
 0x2b9   : > { %2650 = vst [vmem:[#allocation2 + $0x54] sm:$0x1] %v2649_v17  ;;  %v2489_v31 = vshrl.u32 %v2345_v26, 16  ;;  %v2282_v7 = vmul.f32 %v6834_v0, %v2218_v58  ;;  %v2492_v61 = vshll.u32 %v2345_v26, 16  ;;  %v2624_v26 = vld [vmem:[#allocation2 + $0x74] sm:$0x1] }
 0x2ba   : > { %2612 = vst [vmem:[#allocation2 + $0x5c] sm:$0x1] %v2611_v23 }
 0x2bb   : > { %v2491_v50 = vrot.slane %v2489_v31, 7  ;;  %2238 = vst [vmem:[#allocation3 + $0x48] sm:$0xff] %v2218_v58  ;;  %v2306_v15 = vadd.f32 %v6842_v49, %v2282_v7 }
 0x2bc   : > { %v2176_v3 = vpop.f32.mrf.mxu0 }
 0x2bd   : > { %v2494_v20 = vor.u32 %v2492_v61, %v2491_v50  ;;  %v2326_v60 = vmax.f32 %v2306_v15, 0.0  ;;  %v2177_v18 = vadd.f32 %v2176_v3, %v2118_v40  ;;  %v2495_v8 = vrot.slane %v2491_v50, 4 }
 0x2bf   : > { %v2614_v21 = vsel %vm6858_vm8, %v2494_v20, %v2613_v48  ;;  %v2346_v27 = vpack.c.bf16 %v2326_v60, %v2326_v60  ;;  %v2219_v16 = vadd.f32 %v2199_v59, %v2177_v18 }
 0x2c0   : > { %2615 = vst [vmem:[#allocation2 + $0x60] sm:$0xf] %v2614_v21 }
 0x2c1   : > { %v2679_v33 = vld [vmem:[#allocation2 + $0x5c] sm:$0x1]  ;;  %v2497_v46 = vshrl.u32 %v2346_v27, 16  ;;  %2239 = vst [vmem:[#allocation3 + $0x70] sm:$0xff] %v2219_v16  ;;  %v2283_v5 = vmul.f32 %v6834_v0, %v2219_v16  ;;  %v2500_v47 = vshll.u32 %v2346_v27, 16 }
 0x2c2   : > { %v2680_v30 = vsel %vm6899_vm14, 0, %v2679_v33 }
 0x2c3   : > { %2681 = vst [vmem:[#allocation2 + $0x5c] sm:$0x1] %v2680_v30  ;;  %v2499_v4 = vrot.slane %v2497_v46, 7  ;;  %v2307_v32 = vadd.f32 %v6842_v49, %v2283_v5 }
 0x2c4   : > { %v2178_v1 = vpop.f32.mrf.mxu0 }
 0x2c5   : > { %v2502_v51 = vor.u32 %v2500_v47, %v2499_v4  ;;  %v2504_v2 = vrot.slane %v2499_v4, 4  ;;  %v2327_v44 = vmax.f32 %v2307_v32, 0.0  ;;  %v2179_v63 = vadd.f32 %v2178_v1, %v2120_v45 }
 0x2c7   : > { %v2651_v22 = vld [vmem:[#allocation2 + $0x60] sm:$0x1]  ;;  %v2503_v12 = vsel %vm6878_vm13, %v2495_v8, %v2502_v51  ;;  %v2618_v42 = vsel %vm6871_vm12, %v2504_v2, %v2617_v14  ;;  %v2347_v35 = vpack.c.bf16 %v2327_v44, %v2327_v44  ;;  %v2220_v11 = vadd.f32 %v2200_v43, %v2179_v63 }
 0x2c8   : > { %v2652_v6 = vsel %vm6871_vm12, 0, %v2651_v22  ;;  %2616 = vst [vmem:[#allocation2 + $0x64] sm:$0xf] %v2503_v12 }
 0x2c9   : > { %2653 = vst [vmem:[#allocation2 + $0x60] sm:$0x1] %v2652_v6  ;;  %v2506_v9 = vshrl.u32 %v2347_v35, 16  ;;  %v2284_v29 = vmul.f32 %v6834_v0, %v2220_v11  ;;  %v2509_v24 = vshll.u32 %v2347_v35, 16 }
 0x2ca   : > { %2619 = vst [vmem:[#allocation2 + $0x68] sm:$0x1] %v2618_v42 }
 0x2cb   : > { %v2508_v52 = vrot.slane %v2506_v9, 7  ;;  %2240 = vst [vmem:[#allocation3 + $0x90] sm:$0xff] %v2220_v11  ;;  %v2308_v57 = vadd.f32 %v6842_v49, %v2284_v29 }
 0x2cd   : > { %v2511_v28 = vor.u32 %v2509_v24, %v2508_v52  ;;  %v2328_v19 = vmax.f32 %v2308_v57, 0.0  ;;  %v2512_v58 = vrot.slane %v2508_v52, 4 }
 0x2cf   : > { %v2621_v53 = vsel %vm6858_vm8, %v2511_v28, %v2620_v36  ;;  %v2348_v56 = vpack.c.bf16 %v2328_v19, %v2328_v19 }
 0x2d0   : > { %2622 = vst [vmem:[#allocation2 + $0x6c] sm:$0xf] %v2621_v53 }
 0x2d1   : > { %v2682_v55 = vld [vmem:[#allocation2 + $0x68] sm:$0x1]  ;;  %v2514_v37 = vshrl.u32 %v2348_v56, 16  ;;  %v2517_v23 = vshll.u32 %v2348_v56, 16 }
 0x2d2   : > { %v2683_v54 = vsel %vm6899_vm14, 0, %v2682_v55 }
 0x2d3   : > { %2684 = vst [vmem:[#allocation2 + $0x68] sm:$0x1] %v2683_v54  ;;  %v2516_v0 = vrot.slane %v2514_v37, 7 }
 0x2d5   : > { %v2519_v49 = vor.u32 %v2517_v23, %v2516_v0  ;;  %v2521_v17 = vrot.slane %v2516_v0, 4 }
 0x2d7   : > { %v2654_v31 = vld [vmem:[#allocation2 + $0x6c] sm:$0x1]  ;;  %v2520_v34 = vsel %vm6878_vm13, %v2512_v58, %v2519_v49  ;;  %v2625_v40 = vsel %vm6871_vm12, %v2521_v17, %v2624_v26 }
 0x2d8   : > { %v2655_v7 = vsel %vm6871_vm12, 0, %v2654_v31  ;;  %2623 = vst [vmem:[#allocation2 + $0x70] sm:$0xf] %v2520_v34 }
 0x2d9   : > { %2656 = vst [vmem:[#allocation2 + $0x6c] sm:$0x1] %v2655_v7 }
 0x2da   : > { %2626 = vst [vmem:[#allocation2 + $0x74] sm:$0x1] %v2625_v40 }
 0x2df   : > { %2691 = sbr.rel (%p5216_p2) target bundleno = 744 (0x2e8), region = 56 }
 0x2e1   : > { %v2685_v50 = vld [vmem:[#allocation2 + $0x74] sm:$0x1] }
 0x2e2   : > { %v2686_v61 = vsel %vm6899_vm14, 0, %v2685_v50 }
 0x2e3   : > { %2687 = vst [vmem:[#allocation2 + $0x74] sm:$0x1] %v2686_v61 }
 0x2e4   : > { %v6066_v62 = vmov 0  }
 0x2e5   : > { %2692 = vst [vmem:[#allocation2] sm:$0xf] %v6066_v62 }
 0x2e6   : > { %2693 = vst [vmem:[#allocation2 + $0x4] sm:$0xf] %v6066_v62 }
 0x2e7   : > { %2694 = vst [vmem:[#allocation2 + $0x8] sm:$0x1] %v6066_v62 }
 0x2e8 PF: > { %p5217_p4 = scmp.ne.s32.totalorder %s6045_s27, 1 }
 0x2ea   : > { %2698 = sbr.rel (%p5217_p4) target bundleno = 755 (0x2f3), region = 60 }
 0x2ef   : > { %v6067_v41 = vmov 0  }
 0x2f0   : > { %2700 = vst [vmem:[#allocation2 + $0x6c] sm:$0xf] %v6067_v41 }
 0x2f1   : > { %2701 = vst [vmem:[#allocation2 + $0x70] sm:$0xf] %v6067_v41 }
 0x2f2   : > { %2702 = vst [vmem:[#allocation2 + $0x74] sm:$0x1] %v6067_v41 }
 0x2f3 PF: > { %v5691_v39 = vld [vmem:[#allocation4 + $0x38] sm:$0xff]  ;;  %v5690_v3 = vld [vmem:[#allocation4 + $0x30] sm:$0xff]  ;;  %v5689_v18 = vld [vmem:[#allocation4 + $0x28] sm:$0xff]  ;;  %vm4526_vm15 = vcmask 1046528   ;;  %s5756_s11 = sshll.u32 %s6045_s27, 4  ;;  %s5585_s18 = sshll.u32 %s6049_s28, 5 }
 0x2f4   : > { %v5699_v15 = vld [vmem:[#allocation4 + $0x78] sm:$0xff]  ;;  %2975 = vmatpush.bf16.msra.mxu1 %v5691_v39  ;;  %v5698_v20 = vld [vmem:[#allocation4 + $0x70] sm:$0xff]  ;;  %v5697_v59 = vld [vmem:[#allocation4 + $0x68] sm:$0xff]  ;;  %s4660_s4 = sadd.s32 %s5756_s11, %s5585_s18  ;;  %s4663_s22 = sshll.u32 %s7060_s19, 4  ;;  %s4664_s22 = int_to_ptr.vmem [resolvable:$true] %s4663_s22 }
 0x2f5   : > { %v5707_v48 = vld [vmem:[#allocation4 + $0xb8] sm:$0xff]  ;;  %3024 = vmatpush.bf16.msra.mxu2 %v5699_v15  ;;  %v5706_v60 = vld [vmem:[#allocation4 + $0xb0] sm:$0xff]  ;;  %v5705_v21 = vld [vmem:[#allocation4 + $0xa8] sm:$0xff]  ;;  %s7434_s17 = sand.u32 1, %s6037_s25   ;;  %s5983_s18 = scalar_lea.hbm %s7410_s7, 256 }
 0x2f6   : > { %3073 = vmatpush.bf16.msrb.mxu3 %v5707_v48  ;;  %v5688_v27 = vld [vmem:[#allocation4 + $0x20] sm:$0xff]  ;;  %v5687_v38 = vld [vmem:[#allocation4 + $0x18] sm:$0xff]  ;;  %v5686_v5 = vld [vmem:[#allocation4 + $0x10] sm:$0xff]  ;;  %s4648_s21 = scalar_lea.sflag [#allocation6], %s7434_s17 }
 0x2f7   : > { %v5696_v16 = vld [vmem:[#allocation4 + $0x60] sm:$0xff]  ;;  %v5695_v33 = vld [vmem:[#allocation4 + $0x58] sm:$0xff]  ;;  %v5694_v30 = vld [vmem:[#allocation4 + $0x50] sm:$0xff] }
 0x2f8   : > { %2976 = vmatpush.bf16.msra.mxu1 %v5690_v3  ;;  %v5704_v25 = vld [vmem:[#allocation4 + $0xa0] sm:$0xff]  ;;  %v5703_v46 = vld [vmem:[#allocation4 + $0x98] sm:$0xff]  ;;  %v5702_v4 = vld [vmem:[#allocation4 + $0x90] sm:$0xff] }
 0x2f9   : > { %3025 = vmatpush.bf16.msra.mxu2 %v5698_v20  ;;  %v5685_v47 = vld [vmem:[#allocation4 + $0x8] sm:$0xff]  ;;  %v5684_v8 = vld [vmem:[#allocation4] sm:$0xff]  ;;  %v5723_v51 = vld [vmem:[#allocation4 + $0x138] sm:$0xff] }
 0x2fa   : > { %3074 = vmatpush.bf16.msrb.mxu3 %v5706_v60  ;;  %v5693_v45 = vld [vmem:[#allocation4 + $0x48] sm:$0xff]  ;;  %v5692_v14 = vld [vmem:[#allocation4 + $0x40] sm:$0xff]  ;;  %v5715_v2 = vld [vmem:[#allocation4 + $0xf8] sm:$0xff] }
 0x2fb   : > { %v5701_v32 = vld [vmem:[#allocation4 + $0x88] sm:$0xff]  ;;  %v5700_v1 = vld [vmem:[#allocation4 + $0x80] sm:$0xff]  ;;  %v5675_v63 = vld [vmem:[#allocation2 + $0xc] sm:$0xff] }
 0x2fc   : > { %2977 = vmatpush.bf16.msra.mxu1 %v5689_v18  ;;  %v5674_v44 = vld [vmem:[#allocation2] sm:$0xff]  ;;  %v5676_v43 = vld [vmem:[#allocation2 + $0x18] sm:$0xff]  ;;  %v5722_v22 = vld [vmem:[#allocation4 + $0x130] sm:$0xff] }
 0x2fd   : > { %3026 = vmatpush.bf16.msra.mxu2 %v5697_v59  ;;  %v5714_v12 = vld [vmem:[#allocation4 + $0xf0] sm:$0xff]  ;;  %v5721_v42 = vld [vmem:[#allocation4 + $0x128] sm:$0xff]  ;;  %v5720_v6 = vld [vmem:[#allocation4 + $0x120] sm:$0xff] }
 0x2fe   : > { %3075 = vmatpush.bf16.msrb.mxu3 %v5705_v21  ;;  %v5713_v35 = vld [vmem:[#allocation4 + $0xe8] sm:$0xff]  ;;  %v5712_v9 = vld [vmem:[#allocation4 + $0xe0] sm:$0xff]  ;;  %v5678_v29 = vld [vmem:[#allocation2 + $0x30] sm:$0xff] }
 0x2ff   : > { %v5677_v11 = vld [vmem:[#allocation2 + $0x24] sm:$0xff]  ;;  %v5719_v52 = vld [vmem:[#allocation4 + $0x118] sm:$0xff]  ;;  %v5679_v57 = vld [vmem:[#allocation2 + $0x3c] sm:$0xff] }
 0x300   : > { %2978 = vmatpush.bf16.msra.mxu1 %v5688_v27  ;;  %v5711_v24 = vld [vmem:[#allocation4 + $0xd8] sm:$0xff]  ;;  %v5718_v36 = vld [vmem:[#allocation4 + $0x110] sm:$0xff]  ;;  %v5717_v53 = vld [vmem:[#allocation4 + $0x108] sm:$0xff] }
 0x301   : > { %3027 = vmatpush.bf16.msra.mxu2 %v5696_v16  ;;  %v5710_v28 = vld [vmem:[#allocation4 + $0xd0] sm:$0xff]  ;;  %v5731_v56 = vld [vmem:[#allocation4 + $0x178] sm:$0xff]  ;;  %v5709_v55 = vld [vmem:[#allocation4 + $0xc8] sm:$0xff] }
 0x302   : > { %3076 = vmatpush.bf16.msrb.mxu3 %v5704_v25  ;;  %v5680_v19 = vld [vmem:[#allocation2 + $0x48] sm:$0xff]  ;;  %v5729_v54 = vld [vmem:[#allocation4 + $0x168] sm:$0xff]  ;;  %v5728_v0 = vld [vmem:[#allocation4 + $0x160] sm:$0xff] }
 0x303   : > { %v5730_v37 = vld [vmem:[#allocation4 + $0x170] sm:$0xff]  ;;  %v7064_v23 = vld [vmem:[#allocation2 + $0x54] sm:$0xff]  ;;  %v5725_v31 = vld [vmem:[#allocation4 + $0x148] sm:$0xff] }
 0x304   : > { %2979 = vmatpush.bf16.msra.mxu1 %v5687_v38  ;;  %v5716_v26 = vld [vmem:[#allocation4 + $0x100] sm:$0xff]  ;;  %v5727_v58 = vld [vmem:[#allocation4 + $0x158] sm:$0xff]  ;;  %v5726_v17 = vld [vmem:[#allocation4 + $0x150] sm:$0xff] }
 0x305   : > { %3028 = vmatpush.bf16.msra.mxu2 %v5695_v33  ;;  %v5708_v49 = vld [vmem:[#allocation4 + $0xc0] sm:$0xff]  ;;  %v5682_v34 = vld [vmem:[#allocation2 + $0x60] sm:$0xff]  ;;  %v5755_v7 = vld [vmem:[#allocation4 + $0x238] sm:$0xff] }
 0x306   : > { %3077 = vmatpush.bf16.msrb.mxu3 %v5703_v46  ;;  %v5724_v40 = vld [vmem:[#allocation4 + $0x140] sm:$0xff]  ;;  %v3138_v50 = vld [vmem:[#allocation2] sm:$0xf]  ;;  %v3139_v61 = vld [vmem:[#allocation2 + $0x4] sm:$0xf] }
 0x307   : > { %v3141_v62 = vld [vmem:[#allocation2 + $0xc] sm:$0xf]  ;;  %v3142_v41 = vld [vmem:[#allocation2 + $0x10] sm:$0xf]  ;;  %v3144_v39 = vld [vmem:[#allocation2 + $0x18] sm:$0xf] }
 0x308   : > { %2980 = vmatpush.bf16.msra.mxu1 %v5686_v5  ;;  %v3145_v15 = vld [vmem:[#allocation2 + $0x1c] sm:$0xf]  ;;  %v3169_v48 = vshrl.u32 %v3138_v50, 16  ;;  %v3172_v3 = vshll.u32 %v3138_v50, 16  ;;  %v3178_v20 = vshll.u32 %v3139_v61, 16  ;;  %v3182_v60 = vshrl.u32 %v3139_v61, 16 }
 0x309   : > { %3029 = vmatpush.bf16.msra.mxu2 %v5694_v30  ;;  %v5747_v18 = vld [vmem:[#allocation4 + $0x1f8] sm:$0xff]  ;;  %v3193_v59 = vshrl.u32 %v3141_v62, 16  ;;  %v3196_v21 = vshll.u32 %v3141_v62, 16  ;;  %v3202_v27 = vshll.u32 %v3142_v41, 16  ;;  %v3206_v16 = vshrl.u32 %v3142_v41, 16 }
 0x30a   : > { %3078 = vmatpush.bf16.msrb.mxu3 %v5702_v4  ;;  %v3217_v25 = vshrl.u32 %v3144_v39, 16  ;;  %v3220_v38 = vshll.u32 %v3144_v39, 16  ;;  %v3226_v33 = vshll.u32 %v3145_v15, 16  ;;  %v3230_v46 = vshrl.u32 %v3145_v15, 16 }
 0x30b   : > { %v3171_v5 = vrot.slane %v3169_v48, 4  ;;  %v3174_v30 = vrot.slane %v3172_v3, 5  ;;  %v3180_v4 = vrot.slane %v3178_v20, 5 }
 0x30c   : > { %2981 = vmatpush.bf16.msra.mxu1 %v5685_v47  ;;  %v3184_v47 = vrot.slane %v3182_v60, 4 }
 0x30d   : > { %3030 = vmatpush.bf16.msra.mxu2 %v5693_v45  ;;  %v3140_v45 = vld [vmem:[#allocation2 + $0x8] sm:$0x1] }
 0x30e   : > { %3079 = vmatpush.bf16.msrb.mxu3 %v5701_v32  ;;  %v3195_v32 = vrot.slane %v3193_v59, 4 }
 0x310   : > { %2982 = vmatpush.bf16.msra.mxu1 %v5684_v8  ;;  %v3198_v8 = vrot.slane %v3196_v21, 5 }
 0x311   : > { %3031 = vmatpush.bf16.msra.mxu2 %v5692_v14  ;;  %v3204_v14 = vrot.slane %v3202_v27, 5 }
 0x312   : > { %3080 = vmatpush.bf16.msrb.mxu3 %v5700_v1  ;;  %v3208_v1 = vrot.slane %v3206_v16, 4 }
 0x313   : > { %2983 = vmatmul.bf16.vlgmr.msra.gmra.mxu1 %v5674_v44  ;;  %v3222_v44 = vrot.slane %v3220_v38, 5 }
 0x314   : > { %3641 = vmatpush.bf16.msrb.mxu1 %v5715_v2  ;;  %3032 = vmatmul.bf16.vlgmr.msra.gmra.mxu2 %v5675_v63  ;;  %v3219_v2 = vrot.slane %v3217_v25, 4  ;;  %v3149_v25 = vld [vmem:[#allocation2 + $0x2c] sm:$0x1] }
 0x315   : > { %3690 = vmatpush.bf16.msrb.mxu2 %v5723_v51  ;;  %3081 = vmatmul.bf16.vlgmr.msrb.gmra.mxu3 %v5676_v43  ;;  %v3143_v51 = vld [vmem:[#allocation2 + $0x14] sm:$0x1] }
 0x316   : > { %3739 = vmatpush.bf16.msra.mxu3 %v5731_v56 }
 0x318   : > { %3642 = vmatpush.bf16.msrb.mxu1 %v5714_v12  ;;  %v3175_v12 = vor.u32 %v3174_v30, %v3171_v5 }
 0x319   : > { %3691 = vmatpush.bf16.msrb.mxu2 %v5722_v22  ;;  %v3146_v22 = vld [vmem:[#allocation2 + $0x20] sm:$0x1] }
 0x31a   : > { %3740 = vmatpush.bf16.msra.mxu3 %v5730_v37 }
 0x31c   : > { %3643 = vmatpush.bf16.msrb.mxu1 %v5713_v35  ;;  %v3188_v35 = vshll.u32 %v3140_v45, 16  ;;  %v5753_v45 = vld [vmem:[#allocation4 + $0x228] sm:$0xff] }
 0x31d   : > { %3692 = vmatpush.bf16.msrb.mxu2 %v5721_v42  ;;  %v3185_v42 = vor.u32 %v3184_v47, %v3180_v4  ;;  %v3260_v47 = vshll.u32 %v3149_v25, 16 }
 0x31e   : > { %3741 = vmatpush.bf16.msra.mxu3 %v5729_v54 }
 0x320   : > { %3644 = vmatpush.bf16.msrb.mxu1 %v5712_v9  ;;  %v3209_v9 = vor.u32 %v3208_v1, %v3204_v14  ;;  %v3150_v1 = vld [vmem:[#allocation2 + $0x30] sm:$0xf] }
 0x321   : > { %3693 = vmatpush.bf16.msrb.mxu2 %v5720_v6  ;;  %v3199_v6 = vor.u32 %v3198_v8, %v3195_v32 }
 0x322   : > { %3742 = vmatpush.bf16.msra.mxu3 %v5728_v0 }
 0x323   : > { %2988 = vmatmul.bf16.gmra.mxu1 %v5675_v63  ;;  %v3228_v63 = vrot.slane %v3226_v33, 5  ;;  %v3200_v56 = vrot.slane %v3199_v6, 4 }
 0x324   : > { %3037 = vmatmul.bf16.gmra.mxu2 %v5676_v43  ;;  %3645 = vmatpush.bf16.msrb.mxu1 %v5711_v24 }
 0x325   : > { %3086 = vmatmul.bf16.gmra.mxu3 %v5677_v11  ;;  %3694 = vmatpush.bf16.msrb.mxu2 %v5719_v52  ;;  %v3223_v52 = vor.u32 %v3222_v44, %v3219_v2  ;;  %v3151_v2 = vld [vmem:[#allocation2 + $0x34] sm:$0xf] }
 0x326   : > { %3743 = vmatpush.bf16.msra.mxu3 %v5727_v58  ;;  %v3147_v58 = vld [vmem:[#allocation2 + $0x24] sm:$0xf] }
 0x327   : > { %v3224_v54 = vrot.slane %v3223_v52, 4  ;;  %v3244_v50 = vshll.u32 %v3147_v58, 16 }
 0x328   : > { %3646 = vmatpush.bf16.msrb.mxu1 %v5710_v28  ;;  %v3186_v28 = vrot.slane %v3185_v42, 4  ;;  %v3265_v42 = vshrl.u32 %v3150_v1, 16 }
 0x329   : > { %3695 = vmatpush.bf16.msrb.mxu2 %v5718_v36  ;;  %v3176_v36 = vrot.slane %v3175_v12, 4  ;;  %v3229_v61 = vsel %vm6373_vm2, %v3224_v54, %v3228_v63  ;;  %v3246_v21 = vrot.slane %v3244_v50, 5 }
 0x32a   : > { %3744 = vmatpush.bf16.msra.mxu3 %v5726_v17  ;;  %v3412_v60 = vunpack.c.l.b16 %v3229_v61  ;;  %v3154_v61 = vld [vmem:[#allocation2 + $0x40] sm:$0xf] }
 0x32b   : > { %v3181_v17 = vsel %vm6373_vm2, %v3176_v36, %v3180_v4 }
 0x32c   : > { %3647 = vmatpush.bf16.msrb.mxu1 %v5709_v55  ;;  %v3210_v55 = vrot.slane %v3209_v9, 4  ;;  %v3408_v15 = vunpack.c.l.b16 %v3181_v17  ;;  %v3274_v9 = vshll.u32 %v3151_v2, 16 }
 0x32d   : > { %3696 = vmatpush.bf16.msrb.mxu2 %v5717_v53  ;;  %v5754_v53 = vld [vmem:[#allocation4 + $0x230] sm:$0xff] }
 0x32e   : > { %3745 = vmatpush.bf16.msra.mxu3 %v5725_v31  ;;  %v5746_v31 = vld [vmem:[#allocation4 + $0x1f0] sm:$0xff] }
 0x330   : > { %3648 = vmatpush.bf16.msrb.mxu1 %v5708_v49  ;;  %v3148_v49 = vld [vmem:[#allocation2 + $0x28] sm:$0xf] }
 0x331   : > { %3697 = vmatpush.bf16.msrb.mxu2 %v5716_v26  ;;  %v3250_v41 = vshll.u32 %v3148_v49, 16  ;;  %v3254_v39 = vshrl.u32 %v3148_v49, 16 }
 0x332   : > { %3746 = vmatpush.bf16.msra.mxu3 %v5724_v40 }
 0x333   : > { %2993 = vmatmul.bf16.gmra.mxu1 %v5676_v43  ;;  %v3232_v43 = vrot.slane %v3230_v46, 4  ;;  %v3252_v27 = vrot.slane %v3250_v41, 5  ;;  %v3256_v16 = vrot.slane %v3254_v39, 4  ;;  %v5744_v39 = vld [vmem:[#allocation4 + $0x1e0] sm:$0xff] }
 0x334   : > { %3042 = vmatmul.bf16.gmra.mxu2 %v5677_v11  ;;  %4248 = vmatpush.bf16.msra.mxu1 %v5747_v18 }
 0x335   : > { %3091 = vmatmul.bf16.gmra.mxu3 %v5678_v29  ;;  %4297 = vmatpush.bf16.msra.mxu2 %v5755_v7  ;;  %v3233_v24 = vor.u32 %v3232_v43, %v3228_v63  ;;  %v3241_v7 = vshrl.u32 %v3147_v58, 16  ;;  %v3257_v4 = vor.u32 %v3256_v16, %v3252_v27  ;;  %v5745_v43 = vld [vmem:[#allocation4 + $0x1e8] sm:$0xff] }
 0x337   : > { %v3234_v0 = vrot.slane %v3233_v24, 4  ;;  %v3243_v59 = vrot.slane %v3241_v7, 4  ;;  %v3258_v8 = vrot.slane %v3257_v4, 4  ;;  %v3153_v7 = vld [vmem:[#allocation2 + $0x3c] sm:$0xf] }
 0x338   : > { %4249 = vmatpush.bf16.msra.mxu1 %v5746_v31  ;;  %v3155_v4 = vld [vmem:[#allocation2 + $0x44] sm:$0x1] }
 0x339   : > { %4298 = vmatpush.bf16.msra.mxu2 %v5754_v53  ;;  %v3247_v30 = vor.u32 %v3246_v21, %v3243_v59  ;;  %v3298_v59 = vshll.u32 %v3154_v61, 16  ;;  %v3302_v21 = vshrl.u32 %v3154_v61, 16 }
 0x33b   : > { %v3248_v32 = vrot.slane %v3247_v30, 4 }
 0x33c   : > { %4250 = vmatpush.bf16.msra.mxu1 %v5745_v43 }
 0x33d   : > { %4299 = vmatpush.bf16.msra.mxu2 %v5753_v45  ;;  %v3253_v12 = vsel %vm6373_vm2, %v3248_v32, %v3252_v27 }
 0x33e   : > { %v3414_v52 = vunpack.c.l.b16 %v3253_v12  ;;  %v3156_v12 = vld [vmem:[#allocation2 + $0x48] sm:$0xf] }
 0x340   : > { %4251 = vmatpush.bf16.msra.mxu1 %v5744_v39  ;;  %v5750_v39 = vld [vmem:[#allocation4 + $0x210] sm:$0xff] }
 0x343   : > { %2998 = vmatmul.bf16.gmra.mxu1 %v5677_v11  ;;  %v5683_v11 = vld [vmem:[#allocation2 + $0x6c] sm:$0xff] }
 0x344   : > { %3047 = vmatmul.bf16.gmra.mxu2 %v5678_v29 }
 0x345   : > { %3096 = vmatmul.bf16.gmra.mxu3 %v5679_v57 }
 0x353   : > { %3003 = vmatmul.bf16.gmra.mxu1 %v5678_v29  ;;  %v3212_v29 = vshll.u32 %v3143_v51, 16 }
 0x354   : > { %3052 = vmatmul.bf16.gmra.mxu2 %v5679_v57 }
 0x355   : > { %3101 = vmatmul.bf16.gmra.mxu3 %v5680_v19  ;;  %v3214_v37 = vrot.slane %v3212_v29, 5  ;;  %v3278_v29 = vshrl.u32 %v3151_v2, 16  ;;  %v3308_v2 = vshll.u32 %v3155_v4, 16 }
 0x357   : > { %v3215_v40 = vsel %vm6373_vm2, %v3210_v55, %v3214_v37 }
 0x358   : > { %v3411_v20 = vunpack.c.l.b16 %v3215_v40 }
 0x363   : > { %3008 = vmatmul.bf16.gmra.mxu1 %v5679_v57  ;;  %v3236_v57 = vshll.u32 %v3146_v22, 16 }
 0x364   : > { %3057 = vmatmul.bf16.gmra.mxu2 %v5680_v19 }
 0x365   : > { %3106 = vmatmul.bf16.gmra.mxu3 %v7064_v23  ;;  %v3238_v26 = vrot.slane %v3236_v57, 5  ;;  %v3267_v57 = vrot.slane %v3265_v42, 4 }
 0x367   : > { %v3239_v62 = vsel %vm6373_vm2, %v3234_v0, %v3238_v26 }
 0x368   : > { %v3413_v18 = vunpack.c.l.b16 %v3239_v62 }
 0x36a   : > { %v7081_v5 = vpack.c.b16 %v3413_v18, %v3412_v60 }
 0x373   : > { %3013 = vmatmul.bf16.gmra.mxu1 %v5680_v19  ;;  %v3190_v19 = vrot.slane %v3188_v35, 5  ;;  %v3268_v35 = vshll.u32 %v3150_v1, 16 }
 0x374   : > { %3062 = vmatmul.bf16.gmra.mxu2 %v7064_v23 }
 0x375   : > { %3111 = vmatmul.bf16.gmra.mxu3 %v5682_v34  ;;  %v3270_v36 = vrot.slane %v3268_v35, 5  ;;  %v3157_v35 = vld [vmem:[#allocation2 + $0x4c] sm:$0xf] }
 0x377   : > { %v3271_v26 = vor.u32 %v3270_v36, %v3267_v57  ;;  %v3316_v57 = vshll.u32 %v3156_v12, 16 }
 0x379   : > { %v3272_v31 = vrot.slane %v3271_v26, 4 }
 0x383   : > { %3018 = vmatmul.bf16.gmra.mxu1 %v7064_v23  ;;  %v3191_v23 = vsel %vm6373_vm2, %v3186_v28, %v3190_v19  ;;  %v3276_v28 = vrot.slane %v3274_v9, 5  ;;  %v3280_v19 = vrot.slane %v3278_v29, 4  ;;  %v5743_v29 = vld [vmem:[#allocation4 + $0x1d8] sm:$0xff] }
 0x384   : > { %3067 = vmatmul.bf16.gmra.mxu2 %v5682_v34  ;;  %v3205_v34 = vsel %vm6373_vm2, %v3200_v56, %v3204_v14  ;;  %v3409_v48 = vunpack.c.l.b16 %v3191_v23  ;;  %v3262_v14 = vrot.slane %v3260_v47, 5  ;;  %v3152_v56 = vld [vmem:[#allocation2 + $0x38] sm:$0x1]  ;;  %4252 = vmatpush.bf16.msra.mxu1 %v5743_v29 }
 0x385   : > { %3116 = vmatmul.bf16.gmra.mxu3 %v5683_v11  ;;  %v3410_v3 = vunpack.c.l.b16 %v3205_v34  ;;  %v3281_v49 = vor.u32 %v3280_v19, %v3276_v28  ;;  %v3284_v17 = vshll.u32 %v3152_v56, 16  ;;  %v5752_v23 = vld [vmem:[#allocation4 + $0x220] sm:$0xff]  ;;  %v3322_v19 = vshll.u32 %v3157_v35, 16 }
 0x386   : > { %v3424_v38 = vpack.c.b16 %v3409_v48, %v3408_v15  ;;  %v3263_v6 = vsel %vm6373_vm2, %v3258_v8, %v3262_v14  ;;  %4300 = vmatpush.bf16.msra.mxu2 %v5752_v23  ;;  %v3277_v48 = vsel %vm6373_vm2, %v3272_v31, %v3276_v28  ;;  %v3158_v23 = vld [vmem:[#allocation2 + $0x50] sm:$0x1] }
 0x387   : > { %v3425_v33 = vpack.c.b16 %v3411_v20, %v3410_v3  ;;  %v3415_v24 = vunpack.c.l.b16 %v3263_v6  ;;  %v3282_v34 = vrot.slane %v3281_v49, 4  ;;  %v3286_v40 = vrot.slane %v3284_v17, 5 }
 0x388   : > { %v3289_v3 = vshrl.u32 %v3153_v7, 16  ;;  %v3292_v20 = vshll.u32 %v3153_v7, 16  ;;  %v3416_v27 = vunpack.c.l.b16 %v3277_v48  ;;  %v3324_v26 = vrot.slane %v3322_v19, 5  ;;  %v3162_v19 = vld [vmem:[#allocation2 + $0x60] sm:$0xf] }
 0x389   : > { %v7090_v0 = vpack.c.b16 %v3415_v24, %v3414_v52  ;;  %v3287_v18 = vsel %vm6373_vm2, %v3282_v34, %v3286_v40 }
 0x38a   : > { %v3417_v16 = vunpack.c.l.b16 %v3287_v18  ;;  %v3291_v25 = vrot.slane %v3289_v3, 4 }
 0x38c   : > { %v7102_v8 = vpack.c.b16 %v3417_v16, %v3416_v27  ;;  %v5742_v16 = vld [vmem:[#allocation4 + $0x1d0] sm:$0xff] }
 0x38d   : > { %4253 = vmatpush.bf16.msra.mxu1 %v5742_v16  ;;  %v5735_v16 = vld [vmem:[#allocation4 + $0x198] sm:$0xff] }
 0x390   : > { %v2984_v46 = vpop.f32.mrf.mxu1 }
 0x393   : > { %3649 = vmatmul.bf16.vlgmr.msrb.gmra.mxu1 %v3424_v38  ;;  %v3294_v38 = vrot.slane %v3292_v20, 5  ;;  %v3159_v20 = vld [vmem:[#allocation2 + $0x54] sm:$0xf] }
 0x394   : > { %3698 = vmatmul.bf16.vlgmr.msrb.gmra.mxu2 %v3425_v33 }
 0x395   : > { %3747 = vmatmul.bf16.vlgmr.msra.gmra.mxu3 %v7081_v5  ;;  %v3295_v14 = vor.u32 %v3294_v38, %v3291_v25 }
 0x397   : > { %v3033_v51 = vpop.f32.mrf.mxu2 }
 0x398   : > { %v3034_v44 = vadd.f32 %v3033_v51, %v2984_v46  ;;  %v3082_v63 = vpop.f32.mrf.mxu3  ;;  %v2986_v22 = vpop.f32.mrf.mxu1  ;;  %v3304_v46 = vrot.slane %v3302_v21, 4 }
 0x39a   : > { %v7086_v11 = vadd.f32 %v3082_v63, %v3034_v44  ;;  %v5751_v44 = vld [vmem:[#allocation4 + $0x218] sm:$0xff]  ;;  %v3296_v63 = vrot.slane %v3295_v14, 4 }
 0x39b   : > { %4301 = vmatpush.bf16.msra.mxu2 %v5751_v44 }
 0x39f   : > { %v3035_v53 = vpop.f32.mrf.mxu2  ;;  %4302 = vmatpush.bf16.msra.mxu2 %v5750_v39  ;;  %v5736_v39 = vld [vmem:[#allocation4 + $0x1a0] sm:$0xff] }
 0x3a0   : > { %v3036_v55 = vadd.f32 %v3035_v53, %v2986_v22  ;;  %v3084_v37 = vpop.f32.mrf.mxu3  ;;  %v2989_v54 = vpop.f32.mrf.mxu1  ;;  %v3310_v22 = vrot.slane %v3308_v2, 5  ;;  %v3326_v53 = vshrl.u32 %v3157_v35, 16 }
 0x3a2   : > { %v7092_v58 = vadd.f32 %v3084_v37, %v3036_v55  ;;  %v3328_v49 = vrot.slane %v3326_v53, 4 }
 0x3a3   : > { %3654 = vmatmul.bf16.gmra.mxu1 %v3425_v33  ;;  %v3300_v33 = vrot.slane %v3298_v59, 5  ;;  %v3160_v59 = vld [vmem:[#allocation2 + $0x58] sm:$0xf] }
 0x3a4   : > { %3703 = vmatmul.bf16.gmra.mxu2 %v7081_v5  ;;  %v3346_v4 = vshll.u32 %v3160_v59, 16 }
 0x3a5   : > { %3752 = vmatmul.bf16.gmra.mxu3 %v7090_v0  ;;  %v3305_v51 = vor.u32 %v3304_v46, %v3300_v33  ;;  %v3301_v24 = vsel %vm6373_vm2, %v3296_v63, %v3300_v33  ;;  %v3340_v33 = vshll.u32 %v3159_v20, 16 }
 0x3a6   : > { %v3418_v56 = vunpack.c.l.b16 %v3301_v24  ;;  %v3348_v2 = vrot.slane %v3346_v4, 5 }
 0x3a7   : > { %v3038_v50 = vpop.f32.mrf.mxu2  ;;  %v3306_v43 = vrot.slane %v3305_v51, 4  ;;  %v3342_v51 = vrot.slane %v3340_v33, 5 }
 0x3a8   : > { %v3039_v62 = vadd.f32 %v3038_v50, %v2989_v54  ;;  %v3087_v41 = vpop.f32.mrf.mxu3  ;;  %v2991_v15 = vpop.f32.mrf.mxu1  ;;  %v3318_v54 = vrot.slane %v3316_v57, 5  ;;  %v5749_v57 = vld [vmem:[#allocation4 + $0x208] sm:$0xff] }
 0x3a9   : > { %v3311_v28 = vsel %vm6373_vm2, %v3306_v43, %v3310_v22  ;;  %v3161_v43 = vld [vmem:[#allocation2 + $0x5c] sm:$0x1]  ;;  %v5739_v22 = vld [vmem:[#allocation4 + $0x1b8] sm:$0xff]  ;;  %4303 = vmatpush.bf16.msra.mxu2 %v5749_v57  ;;  %v3836_v57 = vld [vmem:[#allocation2] sm:$0xe] }
 0x3aa   : > { %v7098_v60 = vadd.f32 %v3087_v41, %v3039_v62  ;;  %v3419_v55 = vunpack.c.l.b16 %v3311_v28  ;;  %v3329_v62 = vor.u32 %v3328_v49, %v3324_v26  ;;  %v3332_v41 = vshll.u32 %v3158_v23, 16  ;;  %4199 = vmatpush.bf16.msra.mxu0 %v5739_v22 }
 0x3ab   : > { %v3356_v24 = vshll.u32 %v3161_v43, 16  ;;  %v3364_v23 = vshll.u32 %v3162_v19, 16  ;;  %v3837_v43 = vld [vmem:[#allocation2 + $0x4] sm:$0xf] }
 0x3ac   : > { %v7115_v7 = vpack.c.b16 %v3419_v55, %v3418_v56  ;;  %v3330_v48 = vrot.slane %v3329_v62, 4  ;;  %v3334_v3 = vrot.slane %v3332_v41, 5 }
 0x3ad   : > { %v3358_v56 = vrot.slane %v3356_v24, 5 }
 0x3af   : > { %v3040_v30 = vpop.f32.mrf.mxu2 }
 0x3b0   : > { %v3041_v47 = vadd.f32 %v3040_v30, %v2991_v15  ;;  %v3089_v45 = vpop.f32.mrf.mxu3  ;;  %v2994_v32 = vpop.f32.mrf.mxu1  ;;  %v3335_v30 = vsel %vm6373_vm2, %v3330_v48, %v3334_v3  ;;  %v3366_v48 = vrot.slane %v3364_v23, 5  ;;  %v5732_v23 = vld [vmem:[#allocation4 + $0x180] sm:$0xff] }
 0x3b2   : > { %v7104_v1 = vadd.f32 %v3089_v45, %v3041_v47  ;;  %v3350_v47 = vshrl.u32 %v3160_v59, 16 }
 0x3b3   : > { %3659 = vmatmul.bf16.gmra.mxu1 %v7081_v5  ;;  %v3313_v5 = vshrl.u32 %v3156_v12, 16 }
 0x3b4   : > { %3708 = vmatmul.bf16.gmra.mxu2 %v7090_v0  ;;  %v3352_v44 = vrot.slane %v3350_v47, 4 }
 0x3b5   : > { %3757 = vmatmul.bf16.gmra.mxu3 %v7102_v8  ;;  %v3315_v37 = vrot.slane %v3313_v5, 4  ;;  %v5738_v5 = vld [vmem:[#allocation4 + $0x1b0] sm:$0xff] }
 0x3b6   : > { %4200 = vmatpush.bf16.msra.mxu0 %v5738_v5  ;;  %v5740_v5 = vld [vmem:[#allocation4 + $0x1c0] sm:$0xff] }
 0x3b7   : > { %v3043_v42 = vpop.f32.mrf.mxu2  ;;  %v3319_v50 = vor.u32 %v3318_v54, %v3315_v37  ;;  %v3163_v37 = vld [vmem:[#allocation2 + $0x64] sm:$0xf] }
 0x3b8   : > { %v3044_v6 = vadd.f32 %v3043_v42, %v2994_v32  ;;  %v3092_v9 = vpop.f32.mrf.mxu3  ;;  %v2996_v52 = vpop.f32.mrf.mxu1  ;;  %v3421_v32 = vunpack.c.l.b16 %v3335_v30  ;;  %v5737_v54 = vld [vmem:[#allocation4 + $0x1a8] sm:$0xff]  ;;  %v3370_v62 = vshll.u32 %v3163_v37, 16  ;;  %v3374_v41 = vshrl.u32 %v3163_v37, 16 }
 0x3b9   : > { %v3320_v15 = vrot.slane %v3319_v50, 4 }
 0x3ba   : > { %v7111_v36 = vadd.f32 %v3092_v9, %v3044_v6  ;;  %4201 = vmatpush.bf16.msra.mxu0 %v5737_v54  ;;  %v3376_v59 = vrot.slane %v3374_v41, 4 }
 0x3bb   : > { %v3325_v38 = vsel %vm6373_vm2, %v3320_v15, %v3324_v26 }
 0x3bc   : > { %v3420_v45 = vunpack.c.l.b16 %v3325_v38 }
 0x3be   : > { %v7128_v6 = vpack.c.b16 %v3421_v32, %v3420_v45  ;;  %4202 = vmatpush.bf16.msra.mxu0 %v5736_v39  ;;  %v5734_v32 = vld [vmem:[#allocation4 + $0x190] sm:$0xff] }
 0x3bf   : > { %v3045_v17 = vpop.f32.mrf.mxu2 }
 0x3c0   : > { %v3046_v31 = vadd.f32 %v3045_v17, %v2996_v52  ;;  %v3094_v34 = vpop.f32.mrf.mxu3  ;;  %v2999_v40 = vpop.f32.mrf.mxu1  ;;  %v3353_v52 = vor.u32 %v3352_v44, %v3348_v2  ;;  %v3361_v17 = vshrl.u32 %v3162_v19, 16 }
 0x3c2   : > { %v7117_v61 = vadd.f32 %v3094_v34, %v3046_v31  ;;  %v3354_v53 = vrot.slane %v3353_v52, 4  ;;  %v5741_v31 = vld [vmem:[#allocation4 + $0x1c8] sm:$0xff]  ;;  %v3363_v15 = vrot.slane %v3361_v17, 4  ;;  %4203 = vmatpush.bf16.msra.mxu0 %v5735_v16 }
 0x3c3   : > { %3664 = vmatmul.bf16.gmra.mxu1 %v7090_v0  ;;  %v3337_v0 = vshrl.u32 %v3159_v20, 16 }
 0x3c4   : > { %3713 = vmatmul.bf16.gmra.mxu2 %v7102_v8  ;;  %v3359_v50 = vsel %vm6373_vm2, %v3354_v53, %v3358_v56  ;;  %4254 = vmatpush.bf16.msra.mxu1 %v5741_v31  ;;  %v5450_v56 = vrot.slane %v3836_v57, 9 }
 0x3c5   : > { %3762 = vmatmul.bf16.gmra.mxu3 %v7115_v7  ;;  %v3339_v14 = vrot.slane %v3337_v0, 4  ;;  %v3423_v20 = vunpack.c.l.b16 %v3359_v50  ;;  %v3367_v0 = vor.u32 %v3366_v48, %v3363_v15 }
 0x3c6   : > { %4204 = vmatpush.bf16.msra.mxu0 %v5734_v32 }
 0x3c7   : > { %v3048_v18 = vpop.f32.mrf.mxu2  ;;  %v3343_v9 = vor.u32 %v3342_v51, %v3339_v14  ;;  %v3368_v14 = vrot.slane %v3367_v0, 4  ;;  %v5748_v51 = vld [vmem:[#allocation4 + $0x200] sm:$0xff]  ;;  %v3841_v0 = vld [vmem:[#allocation2 + $0x14] sm:$0x1] }
 0x3c8   : > { %v3049_v21 = vadd.f32 %v3048_v18, %v2999_v40  ;;  %v3097_v27 = vpop.f32.mrf.mxu3  ;;  %v3001_v25 = vpop.f32.mrf.mxu1  ;;  %v3372_v18 = vrot.slane %v3370_v62, 5  ;;  %4304 = vmatpush.bf16.msra.mxu2 %v5748_v51  ;;  %4255 = vmatpush.bf16.msra.mxu1 %v5740_v5  ;;  %v3840_v62 = vld [vmem:[#allocation2 + $0x10] sm:$0xf] }
 0x3c9   : > { %v3344_v28 = vrot.slane %v3343_v9, 4 }
 0x3ca   : > { %v7124_v46 = vadd.f32 %v3097_v27, %v3049_v21  ;;  %v3164_v27 = vld [vmem:[#allocation2 + $0x68] sm:$0x1]  ;;  %v3377_v47 = vor.u32 %v3376_v59, %v3372_v18 }
 0x3cb   : > { %v3349_v34 = vsel %vm6373_vm2, %v3344_v28, %v3348_v2  ;;  %v3380_v45 = vshll.u32 %v3164_v27, 16  ;;  %v3165_v2 = vld [vmem:[#allocation2 + $0x6c] sm:$0xf]  ;;  %v3838_v28 = vld [vmem:[#allocation2 + $0x8] sm:$0x1]  ;;  %v3905_v27 = vrot.slane %v3840_v62, 5 }
 0x3cc   : > { %v3422_v3 = vunpack.c.l.b16 %v3349_v34  ;;  %v3378_v44 = vrot.slane %v3377_v47, 4  ;;  %v3385_v24 = vshrl.u32 %v3165_v2, 16  ;;  %v3388_v53 = vshll.u32 %v3165_v2, 16 }
 0x3cd   : > { %v3901_v37 = vrot.slane %v3838_v28, 5 }
 0x3ce   : > { %v7141_v30 = vpack.c.b16 %v3423_v20, %v3422_v3  ;;  %v3387_v15 = vrot.slane %v3385_v24, 4  ;;  %v3390_v48 = vrot.slane %v3388_v53, 5  ;;  %v3843_v53 = vld [vmem:[#allocation2 + $0x1c] sm:$0xf] }
 0x3cf   : > { %v3050_v63 = vpop.f32.mrf.mxu2 }
 0x3d0   : > { %v3051_v12 = vadd.f32 %v3050_v63, %v3001_v25  ;;  %v3099_v42 = vpop.f32.mrf.mxu3  ;;  %v3004_v35 = vpop.f32.mrf.mxu1  ;;  %v3382_v63 = vrot.slane %v3380_v45, 5  ;;  %v3391_v45 = vor.u32 %v3390_v48, %v3387_v15 }
 0x3d2   : > { %v7130_v29 = vadd.f32 %v3099_v42, %v3051_v12  ;;  %v3166_v12 = vld [vmem:[#allocation2 + $0x70] sm:$0xf]  ;;  %v5733_v42 = vld [vmem:[#allocation4 + $0x188] sm:$0xff] }
 0x3d3   : > { %3669 = vmatmul.bf16.gmra.mxu1 %v7102_v8  ;;  %4205 = vmatpush.bf16.msra.mxu0 %v5733_v42  ;;  %v3398_v17 = vshrl.u32 %v3166_v12, 16 }
 0x3d4   : > { %3718 = vmatmul.bf16.gmra.mxu2 %v7115_v7 }
 0x3d5   : > { %3767 = vmatmul.bf16.gmra.mxu3 %v7128_v6  ;;  %v3400_v20 = vrot.slane %v3398_v17, 4 }
 0x3d7   : > { %v3053_v55 = vpop.f32.mrf.mxu2  ;;  %4206 = vmatpush.bf16.msra.mxu0 %v5732_v23 }
 0x3d8   : > { %v3054_v26 = vadd.f32 %v3053_v55, %v3004_v35  ;;  %v3102_v49 = vpop.f32.mrf.mxu3  ;;  %v3006_v8 = vpop.f32.mrf.mxu1  ;;  %v3898_v35 = vrot.slane %v3837_v43, 5  ;;  %v3392_v43 = vrot.slane %v3391_v45, 4  ;;  %v3845_v45 = vld [vmem:[#allocation2 + $0x24] sm:$0xe] }
 0x3da   : > { %v7137_v40 = vadd.f32 %v3102_v49, %v3054_v26  ;;  %v3900_v55 = vrot.slane %v3898_v35, 4  ;;  %v3383_v26 = vsel %vm6373_vm2, %v3378_v44, %v3382_v63  ;;  %v3394_v49 = vshll.u32 %v3166_v12, 16 }
 0x3db   : > { %v3899_v31 = vsel %vm6645_vm5, %v5450_v56, %v3898_v35  ;;  %v3441_v39 = vunpack.c.l.b16 %v3383_v26  ;;  %v3907_v44 = vrot.slane %v3905_v27, 4  ;;  %v3908_v63 = vrot.slane %v3841_v0, 5 }
 0x3dc   : > { %v3966_v34 = vunpack.c.l.b16 %v3899_v31  ;;  %v3396_v3 = vrot.slane %v3394_v49, 5  ;;  %v3912_v49 = vrot.slane %v3843_v53, 5  ;;  %v3842_v31 = vld [vmem:[#allocation2 + $0x18] sm:$0xe] }
 0x3de   : > { %v3397_v5 = vsel %vm6373_vm2, %v3392_v43, %v3396_v3  ;;  %v3914_v13 = vrot.slane %v3912_v49, 4 }
 0x3df   : > { %v3055_v21 = vpop.f32.mrf.mxu2  ;;  %v3444_v56 = vunpack.c.l.b16 %v3397_v5 }
 0x3e0   : > { %v3056_v25 = vadd.f32 %v3055_v21, %v3006_v8  ;;  %v3104_v38 = vpop.f32.mrf.mxu3  ;;  %v3009_v33 = vpop.f32.mrf.mxu1  ;;  %v3902_v8 = vsel %vm6645_vm5, %v3900_v55, %v3901_v37  ;;  %v3167_v21 = vld [vmem:[#allocation2 + $0x74] sm:$0x1] }
 0x3e1   : > { %v3967_v50 = vunpack.c.l.b16 %v3902_v8  ;;  %v3404_v51 = vshll.u32 %v3167_v21, 16  ;;  %v3844_v8 = vld [vmem:[#allocation2 + $0x20] sm:$0x1] }
 0x3e2   : > { %v7143_v4 = vadd.f32 %v3104_v38, %v3056_v25  ;;  %v3839_v38 = vld [vmem:[#allocation2 + $0xc] sm:$0xe] }
 0x3e3   : > { %3674 = vmatmul.bf16.gmra.mxu1 %v7115_v7  ;;  %v3373_v7 = vsel %vm6373_vm2, %v3368_v14, %v3372_v18  ;;  %v3982_v18 = vpack.c.b16 %v3967_v50, %v3966_v34  ;;  %v3401_v14 = vor.u32 %v3400_v20, %v3396_v3  ;;  %v5451_v2 = vrot.slane %v3839_v38, 9 }
 0x3e4   : > { %3723 = vmatmul.bf16.gmra.mxu2 %v7128_v6  ;;  %v3440_v41 = vunpack.c.l.b16 %v3373_v7  ;;  %v3406_v12 = vrot.slane %v3404_v51, 5 }
 0x3e5   : > { %3772 = vmatmul.bf16.gmra.mxu3 %v7141_v30  ;;  %4207 = vmatmul.bf16.vlgmr.msra.gmra.mxu0 %v3982_v18  ;;  %v3906_v35 = vsel %vm6645_vm5, %v5451_v2, %v3905_v27 }
 0x3e6   : > { %v3442_v47 = vpack.c.b16 %v3441_v39, %v3440_v41  ;;  %v3968_v28 = vunpack.c.l.b16 %v3906_v35  ;;  %v5452_v41 = vrot.slane %v3842_v31, 9  ;;  %v3915_v39 = vrot.slane %v3844_v8, 5 }
 0x3e7   : > { %v3058_v22 = vpop.f32.mrf.mxu2 }
 0x3e8   : > { %v3059_v9 = vadd.f32 %v3058_v22, %v3009_v33  ;;  %v3107_v52 = vpop.f32.mrf.mxu3  ;;  %v3011_v19 = vpop.f32.mrf.mxu1  ;;  %v3402_v22 = vrot.slane %v3401_v14, 4  ;;  %v3913_v48 = vsel %vm6645_vm5, %v5452_v41, %v3912_v49  ;;  %v3916_v3 = vsel %vm6645_vm5, %v3914_v13, %v3915_v39  ;;  %v3847_v14 = vld [vmem:[#allocation2 + $0x2c] sm:$0x1]  ;;  %v3850_v49 = vld [vmem:[#allocation2 + $0x38] sm:$0x1] }
 0x3e9   : > { %v3970_v27 = vunpack.c.l.b16 %v3913_v48  ;;  %v3922_v43 = vrot.slane %v3847_v14, 5 }
 0x3ea   : > { %v7150_v54 = vadd.f32 %v3107_v52, %v3059_v9  ;;  %v3909_v9 = vsel %vm6645_vm5, %v3907_v44, %v3908_v63  ;;  %v3407_v57 = vsel %vm6373_vm2, %v3402_v22, %v3406_v12  ;;  %v5453_v44 = vrot.slane %v3845_v45, 9 }
 0x3eb   : > { %v3445_v55 = vunpack.c.l.b16 %v3407_v57 }
 0x3ed   : > { %v3446_v50 = vpack.c.b16 %v3445_v55, %v3444_v56 }
 0x3ef   : > { %v3060_v59 = vpop.f32.mrf.mxu2 }
 0x3f0   : > { %v3061_v16 = vadd.f32 %v3060_v59, %v3011_v19  ;;  %v3109_v25 = vpop.f32.mrf.mxu3  ;;  %v3014_v33 = vpop.f32.mrf.mxu1  ;;  %v3969_v19 = vunpack.c.l.b16 %v3909_v9 }
 0x3f2   : > { %v7158_v32 = vadd.f32 %v3109_v25, %v3061_v16  ;;  %v3983_v37 = vpack.c.b16 %v3969_v19, %v3968_v28  ;;  %v3971_v16 = vunpack.c.l.b16 %v3916_v3  ;;  %v3846_v25 = vld [vmem:[#allocation2 + $0x28] sm:$0xf]  ;;  %v3849_v28 = vld [vmem:[#allocation2 + $0x34] sm:$0xf] }
 0x3f3   : > { %3679 = vmatmul.bf16.gmra.mxu1 %v7128_v6  ;;  %v3926_v56 = vrot.slane %v3849_v28, 5 }
 0x3f4   : > { %3728 = vmatmul.bf16.gmra.mxu2 %v7141_v30  ;;  %v3984_v38 = vpack.c.b16 %v3971_v16, %v3970_v27 }
 0x3f5   : > { %3777 = vmatmul.bf16.gmra.mxu3 %v3442_v47  ;;  %4212 = vmatmul.bf16.gmra.mxu0 %v3983_v37  ;;  %v3928_v8 = vrot.slane %v3926_v56, 4 }
 0x3f7   : > { %v3063_v42 = vpop.f32.mrf.mxu2 }
 0x3f8   : > { %v3064_v52 = vadd.f32 %v3063_v42, %v3014_v33  ;;  %v3112_v7 = vpop.f32.mrf.mxu3  ;;  %v3016_v24 = vpop.f32.mrf.mxu1 }
 0x3fa   : > { %v7168_v6 = vadd.f32 %v3112_v7, %v3064_v52 }
 0x3ff   : > { %v3065_v26 = vpop.f32.mrf.mxu2 }
 0x400   : > { %v3066_v17 = vadd.f32 %v3065_v26, %v3016_v24  ;;  %v3114_v23 = vpop.f32.mrf.mxu3  ;;  %v3019_v34 = vpop.f32.mrf.mxu1  ;;  %v3848_v26 = vld [vmem:[#allocation2 + $0x30] sm:$0xe] }
 0x401   : > { %v5454_v31 = vrot.slane %v3848_v26, 9 }
 0x402   : > { %v7172_v62 = vadd.f32 %v3114_v23, %v3066_v17 }
 0x403   : > { %3684 = vmatmul.bf16.gmra.mxu1 %v7141_v30  ;;  %v3919_v30 = vrot.slane %v3846_v25, 5  ;;  %v3927_v41 = vsel %vm6645_vm5, %v5454_v31, %v3926_v56 }
 0x404   : > { %3733 = vmatmul.bf16.gmra.mxu2 %v3442_v47 }
 0x405   : > { %3782 = vmatmul.bf16.gmra.mxu3 %v3446_v50  ;;  %4217 = vmatmul.bf16.gmra.mxu0 %v3984_v38  ;;  %v3921_v63 = vrot.slane %v3919_v30, 4  ;;  %v3920_v12 = vsel %vm6645_vm5, %v5453_v44, %v3919_v30  ;;  %v3851_v30 = vld [vmem:[#allocation2 + $0x3c] sm:$0xe] }
 0x406   : > { %v3972_v24 = vunpack.c.l.b16 %v3920_v12  ;;  %v5455_v14 = vrot.slane %v3851_v30, 9 }
 0x407   : > { %v3068_v15 = vpop.f32.mrf.mxu2  ;;  %v3923_v42 = vsel %vm6645_vm5, %v3921_v63, %v3922_v43 }
 0x408   : > { %v3069_v20 = vadd.f32 %v3068_v15, %v3019_v34  ;;  %v3117_v18 = vpop.f32.mrf.mxu3  ;;  %v3021_v59 = vpop.f32.mrf.mxu1  ;;  %v3973_v5 = vunpack.c.l.b16 %v3923_v42  ;;  %v3929_v34 = vrot.slane %v3850_v49, 5 }
 0x40a   : > { %v7179_v21 = vadd.f32 %v3117_v18, %v3069_v20  ;;  %v3985_v19 = vpack.c.b16 %v3973_v5, %v3972_v24  ;;  %v3930_v13 = vsel %vm6645_vm5, %v3928_v8, %v3929_v34  ;;  %v3974_v20 = vunpack.c.l.b16 %v3927_v41 }
 0x40b   : > { %v3975_v18 = vunpack.c.l.b16 %v3930_v13 }
 0x40d   : > { %v3986_v27 = vpack.c.b16 %v3975_v18, %v3974_v20 }
 0x40f   : > { %v3070_v0 = vpop.f32.mrf.mxu2 }
 0x410   : > { %v3071_v33 = vadd.f32 %v3070_v0, %v3021_v59  ;;  %v3119_v47 = vpop.f32.mrf.mxu3  ;;  %v3650_v51 = vpop.f32.mrf.mxu1 }
 0x412   : > { %v7181_v2 = vadd.f32 %v3119_v47, %v3071_v33  ;;  %v3853_v33 = vld [vmem:[#allocation2 + $0x44] sm:$0x1] }
 0x413   : > { %4256 = vmatmul.bf16.vlgmr.msra.gmra.mxu1 %v3983_v37  ;;  %v3936_v44 = vrot.slane %v3853_v33, 5 }
 0x414   : > { %4305 = vmatmul.bf16.vlgmr.msra.gmra.mxu2 %v3984_v38 }
 0x415   : > { %4222 = vmatmul.bf16.gmra.mxu0 %v3985_v19 }
 0x417   : > { %v3699_v22 = vpop.f32.mrf.mxu2 }
 0x418   : > { %v3700_v35 = vadd.f32 %v3699_v22, %v3650_v51  ;;  %v3748_v9 = vpop.f32.mrf.mxu3  ;;  %v3652_v52 = vpop.f32.mrf.mxu1 }
 0x41a   : > { %v3749_v7 = vadd.f32 %v3748_v9, %v3700_v35 }
 0x41c   : > { %v7188_v57 = vadd.f32 %v3749_v7, %v7086_v11 }
 0x41f   : > { %v3701_v53 = vpop.f32.mrf.mxu2 }
 0x420   : > { %v3702_v55 = vadd.f32 %v3701_v53, %v3652_v52  ;;  %v3750_v37 = vpop.f32.mrf.mxu3  ;;  %v3655_v17 = vpop.f32.mrf.mxu1 }
 0x422   : > { %v3751_v23 = vadd.f32 %v3750_v37, %v3702_v55  ;;  %v3854_v55 = vld [vmem:[#allocation2 + $0x48] sm:$0xe]  ;;  %v3856_v37 = vld [vmem:[#allocation2 + $0x50] sm:$0x1] }
 0x423   : > { %4261 = vmatmul.bf16.gmra.mxu1 %v3984_v38  ;;  %v3943_v31 = vrot.slane %v3856_v37, 5  ;;  %v3862_v37 = vld [vmem:[#allocation2 + $0x68] sm:$0x1] }
 0x424   : > { %v7191_v50 = vadd.f32 %v3751_v23, %v7092_v58  ;;  %4310 = vmatmul.bf16.gmra.mxu2 %v3985_v19  ;;  %v3852_v58 = vld [vmem:[#allocation2 + $0x40] sm:$0xf] }
 0x425   : > { %v3933_v25 = vrot.slane %v3852_v58, 5  ;;  %4227 = vmatmul.bf16.gmra.mxu0 %v3986_v27 }
 0x427   : > { %v3704_v11 = vpop.f32.mrf.mxu2  ;;  %v3935_v51 = vrot.slane %v3933_v25, 4  ;;  %v3934_v43 = vsel %vm6645_vm5, %v5455_v14, %v3933_v25 }
 0x428   : > { %v3705_v39 = vadd.f32 %v3704_v11, %v3655_v17  ;;  %v3753_v15 = vpop.f32.mrf.mxu3  ;;  %v3657_v48 = vpop.f32.mrf.mxu1  ;;  %v3976_v52 = vunpack.c.l.b16 %v3934_v43  ;;  %v5456_v17 = vrot.slane %v3854_v55, 9  ;;  %v3860_v55 = vld [vmem:[#allocation2 + $0x60] sm:$0xe] }
 0x429   : > { %v3937_v22 = vsel %vm6645_vm5, %v3935_v51, %v3936_v44 }
 0x42a   : > { %v3754_v3 = vadd.f32 %v3753_v15, %v3705_v39  ;;  %v3977_v7 = vunpack.c.l.b16 %v3937_v22 }
 0x42c   : > { %v7198_v59 = vadd.f32 %v3754_v3, %v7098_v60  ;;  %v3987_v5 = vpack.c.b16 %v3977_v7, %v3976_v52  ;;  %v3861_v7 = vld [vmem:[#allocation2 + $0x64] sm:$0xf] }
 0x42f   : > { %v3706_v16 = vpop.f32.mrf.mxu2 }
 0x430   : > { %v3707_v38 = vadd.f32 %v3706_v16, %v3657_v48  ;;  %v3755_v0 = vpop.f32.mrf.mxu3  ;;  %v3660_v47 = vpop.f32.mrf.mxu1 }
 0x432   : > { %v3756_v45 = vadd.f32 %v3755_v0, %v3707_v38  ;;  %v3857_v38 = vld [vmem:[#allocation2 + $0x54] sm:$0xe]  ;;  %v3859_v0 = vld [vmem:[#allocation2 + $0x5c] sm:$0x1] }
 0x433   : > { %4266 = vmatmul.bf16.gmra.mxu1 %v3985_v19  ;;  %v3950_v14 = vrot.slane %v3859_v0, 5  ;;  %v3865_v0 = vld [vmem:[#allocation2 + $0x74] sm:$0x1] }
 0x434   : > { %v7201_v63 = vadd.f32 %v3756_v45, %v7104_v1  ;;  %4315 = vmatmul.bf16.gmra.mxu2 %v3986_v27  ;;  %v3855_v1 = vld [vmem:[#allocation2 + $0x4c] sm:$0xf] }
 0x435   : > { %v3940_v19 = vrot.slane %v3855_v1, 5  ;;  %4232 = vmatmul.bf16.gmra.mxu0 %v3987_v5 }
 0x437   : > { %v3709_v60 = vpop.f32.mrf.mxu2  ;;  %v3942_v23 = vrot.slane %v3940_v19, 4  ;;  %v3941_v34 = vsel %vm6645_vm5, %v5456_v17, %v3940_v19 }
 0x438   : > { %v3710_v12 = vadd.f32 %v3709_v60, %v3660_v47  ;;  %v3758_v42 = vpop.f32.mrf.mxu3  ;;  %v3662_v35 = vpop.f32.mrf.mxu1  ;;  %v3978_v48 = vunpack.c.l.b16 %v3941_v34  ;;  %v5457_v47 = vrot.slane %v3857_v38, 9  ;;  %v3863_v38 = vld [vmem:[#allocation2 + $0x6c] sm:$0xe] }
 0x439   : > { %v3944_v11 = vsel %vm6645_vm5, %v3942_v23, %v3943_v31 }
 0x43a   : > { %v3759_v9 = vadd.f32 %v3758_v42, %v3710_v12  ;;  %v3979_v3 = vunpack.c.l.b16 %v3944_v11 }
 0x43c   : > { %v7208_v24 = vadd.f32 %v3759_v9, %v7111_v36  ;;  %v3988_v18 = vpack.c.b16 %v3979_v3, %v3978_v48  ;;  %v3864_v48 = vld [vmem:[#allocation2 + $0x70] sm:$0xf] }
 0x43f   : > { %v3711_v28 = vpop.f32.mrf.mxu2 }
 0x440   : > { %v3712_v53 = vadd.f32 %v3711_v28, %v3662_v35  ;;  %v3760_v56 = vpop.f32.mrf.mxu3  ;;  %v3665_v26 = vpop.f32.mrf.mxu1 }
 0x442   : > { %v3761_v49 = vadd.f32 %v3760_v56, %v3712_v53  ;;  %v3954_v53 = vrot.slane %v3861_v7, 5 }
 0x443   : > { %4271 = vmatmul.bf16.gmra.mxu1 %v3986_v27 }
 0x444   : > { %v7211_v8 = vadd.f32 %v3761_v49, %v7117_v61  ;;  %4320 = vmatmul.bf16.gmra.mxu2 %v3987_v5  ;;  %v3858_v61 = vld [vmem:[#allocation2 + $0x58] sm:$0xf]  ;;  %v5458_v49 = vrot.slane %v3860_v55, 9  ;;  %v3956_v17 = vrot.slane %v3954_v53, 4 }
 0x445   : > { %v3947_v27 = vrot.slane %v3858_v61, 5  ;;  %4237 = vmatmul.bf16.gmra.mxu0 %v3988_v18 }
 0x446   : > { %v3955_v11 = vsel %vm6645_vm5, %v5458_v49, %v3954_v53 }
 0x447   : > { %v3714_v36 = vpop.f32.mrf.mxu2  ;;  %v3949_v45 = vrot.slane %v3947_v27, 4  ;;  %v3948_v44 = vsel %vm6645_vm5, %v5457_v47, %v3947_v27  ;;  %v3964_v47 = vrot.slane %v3865_v0, 5 }
 0x448   : > { %v3715_v41 = vadd.f32 %v3714_v36, %v3665_v26  ;;  %v3763_v13 = vpop.f32.mrf.mxu3  ;;  %v3667_v39 = vpop.f32.mrf.mxu1  ;;  %v3980_v35 = vunpack.c.l.b16 %v3948_v44 }
 0x449   : > { %v3951_v60 = vsel %vm6645_vm5, %v3949_v45, %v3950_v14 }
 0x44a   : > { %v3764_v15 = vadd.f32 %v3763_v13, %v3715_v41  ;;  %v3981_v9 = vunpack.c.l.b16 %v3951_v60 }
 0x44c   : > { %v7218_v20 = vadd.f32 %v3764_v15, %v7124_v46 }
 0x44f   : > { %v3716_v58 = vpop.f32.mrf.mxu2 }
 0x450   : > { %v3717_v16 = vadd.f32 %v3716_v58, %v3667_v39  ;;  %v3765_v25 = vpop.f32.mrf.mxu3  ;;  %v3670_v30 = vpop.f32.mrf.mxu1 }
 0x452   : > { %v3766_v33 = vadd.f32 %v3765_v25, %v3717_v16  ;;  %v3961_v16 = vrot.slane %v3864_v48, 5 }
 0x453   : > { %4276 = vmatmul.bf16.gmra.mxu1 %v3987_v5 }
 0x454   : > { %v7221_v51 = vadd.f32 %v3766_v33, %v7130_v29  ;;  %4325 = vmatmul.bf16.gmra.mxu2 %v3988_v18  ;;  %v3989_v29 = vpack.c.b16 %v3981_v9, %v3980_v35  ;;  %v5459_v33 = vrot.slane %v3863_v38, 9 }
 0x456   : > { %4242 = vmatmul.bf16.gmra.mxu0 %v3989_v29 }
 0x457   : > { %v3719_v46 = vpop.f32.mrf.mxu2 }
 0x458   : > { %v3720_v43 = vadd.f32 %v3719_v46, %v3670_v30  ;;  %v3768_v22 = vpop.f32.mrf.mxu3  ;;  %v3672_v12 = vpop.f32.mrf.mxu1 }
 0x45a   : > { %v3769_v42 = vadd.f32 %v3768_v22, %v3720_v43  ;;  %v3962_v43 = vsel %vm6645_vm5, %v5459_v33, %v3961_v16 }
 0x45c   : > { %v7228_v52 = vadd.f32 %v3769_v42, %v7137_v40  ;;  %v3957_v40 = vrot.slane %v3862_v37, 5  ;;  %v4002_v42 = vunpack.c.l.b16 %v3962_v43 }
 0x45e   : > { %v3958_v41 = vsel %vm6645_vm5, %v3956_v17, %v3957_v40 }
 0x45f   : > { %v3721_v1 = vpop.f32.mrf.mxu2  ;;  %v3999_v15 = vunpack.c.l.b16 %v3958_v41 }
 0x460   : > { %v3722_v5 = vadd.f32 %v3721_v1, %v3672_v12  ;;  %v3770_v28 = vpop.f32.mrf.mxu3  ;;  %v3675_v19 = vpop.f32.mrf.mxu1 }
 0x462   : > { %v3771_v56 = vadd.f32 %v3770_v28, %v3722_v5  ;;  %v4208_v14 = vpop.f32.mrf.mxu0 }
 0x463   : > { %4281 = vmatmul.bf16.gmra.mxu1 %v3988_v18 }
 0x464   : > { %v7231_v26 = vadd.f32 %v3771_v56, %v7143_v4  ;;  %4330 = vmatmul.bf16.gmra.mxu2 %v3989_v29  ;;  %v3998_v4 = vunpack.c.l.b16 %v3955_v11 }
 0x466   : > { %v4000_v58 = vpack.c.b16 %v3999_v15, %v3998_v4  ;;  %v5813_v15 = vld [vmem:[%s6273_s20 + $0x18] sm:$0xff]  }
 0x467   : > { %v3724_v23 = vpop.f32.mrf.mxu2 }
 0x468   : > { %v3725_v31 = vadd.f32 %v3724_v23, %v3675_v19  ;;  %v3773_v36 = vpop.f32.mrf.mxu3  ;;  %v3677_v34 = vpop.f32.mrf.mxu1 }
 0x46a   : > { %v3774_v13 = vadd.f32 %v3773_v36, %v3725_v31  ;;  %v4210_v28 = vpop.f32.mrf.mxu0 }
 0x46c   : > { %v7238_v39 = vadd.f32 %v3774_v13, %v7150_v54  ;;  %v3963_v54 = vrot.slane %v3961_v16, 4  ;;  %v7271_v16 = vld [vmem:[%s7409_s6] ss:$0 sm:$0xff] }
 0x46e   : > { %v3965_v22 = vsel %vm6645_vm5, %v3963_v54, %v3964_v47 }
 0x46f   : > { %v3726_v3 = vpop.f32.mrf.mxu2  ;;  %v4003_v35 = vunpack.c.l.b16 %v3965_v22 }
 0x470   : > { %v3727_v61 = vadd.f32 %v3726_v3, %v3677_v34  ;;  %v3775_v18 = vpop.f32.mrf.mxu3  ;;  %v3680_v27 = vpop.f32.mrf.mxu1 }
 0x471   : > { %v4004_v1 = vpack.c.b16 %v4003_v35, %v4002_v42 }
 0x472   : > { %v3776_v25 = vadd.f32 %v3775_v18, %v3727_v61  ;;  %v4213_v49 = vpop.f32.mrf.mxu0  ;;  %v5560_v61 = vld [vmem:[%s6273_s20 + $0x20] sm:$0x1]  ;;  %v5759_v18 = vunpack.c.l.bf16 %v5813_v15 }
 0x473   : > { %4286 = vmatmul.bf16.gmra.mxu1 %v3989_v29 }
 0x474   : > { %v7241_v30 = vadd.f32 %v3776_v25, %v7158_v32  ;;  %4335 = vmatmul.bf16.gmra.mxu2 %v4000_v58  ;;  %v4527_v38 = vrot.slane %v5759_v18, 1 }
 0x477   : > { %v3729_v45 = vpop.f32.mrf.mxu2 }
 0x478   : > { %v3730_v46 = vadd.f32 %v3729_v45, %v3680_v27  ;;  %v3778_v44 = vpop.f32.mrf.mxu3  ;;  %v3682_v60 = vpop.f32.mrf.mxu1  ;;  %v4480_v27 = vunpack.c.l.bf16 %v5560_v61 }
 0x47a   : > { %v3779_v12 = vadd.f32 %v3778_v44, %v3730_v46  ;;  %v4215_v41 = vpop.f32.mrf.mxu0  ;;  %v4530_v47 = vrot.slane %v4480_v27, 1 }
 0x47c   : > { %v7248_v32 = vadd.f32 %v3779_v12, %v7168_v6 }
 0x47f   : > { %v3731_v9 = vpop.f32.mrf.mxu2 }
 0x480   : > { %v3732_v29 = vadd.f32 %v3731_v9, %v3682_v60  ;;  %v3780_v7 = vpop.f32.mrf.mxu3  ;;  %v3685_v5 = vpop.f32.mrf.mxu1 }
 0x482   : > { %v3781_v19 = vadd.f32 %v3780_v7, %v3732_v29  ;;  %v4218_v33 = vpop.f32.mrf.mxu0  ;;  %v5561_v7 = vld [vmem:[%s6273_s20 + $0x24] sm:$0xff]  }
 0x483   : > { %4291 = vmatmul.bf16.gmra.mxu1 %v4000_v58  ;;  %v5760_v58 = vunpack.c.h.bf16 %v5813_v15 }
 0x484   : > { %v7251_v53 = vadd.f32 %v3781_v19, %v7172_v62  ;;  %4340 = vmatmul.bf16.gmra.mxu2 %v4004_v1 }
 0x485   : > { %v4528_v0 = vrot.slane %v5760_v58, 1 }
 0x487   : > { %v3734_v10 = vpop.f32.mrf.mxu2  ;;  %v4529_v44 = vsel %vm4526_vm15, %v4527_v38, %v4528_v0  ;;  %v4531_v22 = vsel %vm4526_vm15, %v4528_v0, %v4530_v47  ;;  %v5814_v38 = vld [vmem:[%s6273_s20 + $0x30] sm:$0xff]   ;;  %v5566_v47 = vld [vmem:[%s6273_s20 + $0x38] sm:$0x1] }
 0x488   : > { %v3735_v56 = vadd.f32 %v3734_v10, %v3685_v5  ;;  %v3783_v55 = vpop.f32.mrf.mxu3  ;;  %v3687_v6 = vpop.f32.mrf.mxu1  ;;  %v5563_v10 = vld [vmem:[%s6273_s20 + $0x2c] sm:$0x1] }
 0x48a   : > { %v3784_v37 = vadd.f32 %v3783_v55, %v3735_v56  ;;  %v4220_v5 = vpop.f32.mrf.mxu0  ;;  %v4481_v56 = vunpack.c.l.bf16 %v5561_v7  ;;  %v4482_v55 = vunpack.c.h.bf16 %v5561_v7 }
 0x48c   : > { %v7254_v17 = vadd.f32 %v3784_v37, %v7179_v21  ;;  %v7264_v21 = vld [vmem:[%s7408_s5] ss:$0 sm:$0xff]  ;;  %v4483_v37 = vunpack.c.l.bf16 %v5563_v10 }
 0x48f   : > { %v3736_v40 = vpop.f32.mrf.mxu2 }
 0x490   : > { %v3737_v23 = vadd.f32 %v3736_v40, %v3687_v6  ;;  %v3785_v31 = vpop.f32.mrf.mxu3  ;;  %v4257_v36 = vpop.f32.mrf.mxu1 }
 0x491   : > { %v4258_v11 = vadd.f32 %v4257_v36, %v4208_v14 }
 0x492   : > { %v3786_v34 = vadd.f32 %v3785_v31, %v3737_v23  ;;  %v4532_v23 = vrot.slane %v4481_v56, 1  ;;  %v4533_v31 = vrot.slane %v4482_v55, 1 }
 0x494   : > { %v7257_v62 = vadd.f32 %v3786_v34, %v7181_v2  ;;  %v4534_v15 = vsel %vm4526_vm15, %v4532_v23, %v4533_v31 }
 0x497   : > { %v4306_v13 = vpop.f32.mrf.mxu2 }
 0x498   : > { %v4307_v4 = vadd.f32 %v4306_v13, %v4258_v11  ;;  %v4259_v48 = vpop.f32.mrf.mxu1  ;;  %v4535_v11 = vrot.slane %v4483_v37, 1 }
 0x499   : > { %v4260_v25 = vadd.f32 %v4259_v48, %v4210_v28  ;;  %v4223_v48 = vpop.f32.mrf.mxu0 }
 0x49a   : > { %v4362_v3 = vadd.f32 %v4307_v4, %v7188_v57 }
 0x49c   : > { %v4414_v2 = vmul.f32 %v7264_v21, %v4362_v3 }
 0x49e   : > { %v4434_v14 = vadd.f32 %v7271_v16, %v4414_v2 }
 0x49f   : > { %v4308_v57 = vpop.f32.mrf.mxu2 }
 0x4a0   : > { %v4309_v54 = vadd.f32 %v4308_v57, %v4260_v25  ;;  %v4262_v45 = vpop.f32.mrf.mxu1  ;;  %v4583_v12 = vadd.f32 %v4529_v44, %v4434_v14  ;;  %v5764_v14 = vunpack.c.h.bf16 %v5814_v38 }
 0x4a1   : > { %v4263_v43 = vadd.f32 %v4262_v45, %v4213_v49  ;;  %v5763_v45 = vunpack.c.l.bf16 %v5814_v38  ;;  %v4225_v44 = vpop.f32.mrf.mxu0 }
 0x4a2   : > { %v4363_v46 = vadd.f32 %v4309_v54, %v7191_v50  ;;  %v4599_v28 = vmax.f32 %v4583_v12, 0.0  ;;  %v4538_v12 = vrot.slane %v5764_v14, 1 }
 0x4a4   : > { %v4415_v60 = vmul.f32 %v7264_v21, %v4363_v46 }
 0x4a6   : > { %v4435_v42 = vadd.f32 %v7271_v16, %v4415_v60 }
 0x4a7   : > { %v4311_v35 = vpop.f32.mrf.mxu2 }
 0x4a8   : > { %v4584_v9 = vadd.f32 %v4531_v22, %v4435_v42  ;;  %v4312_v29 = vadd.f32 %v4311_v35, %v4263_v43  ;;  %v4264_v1 = vpop.f32.mrf.mxu1  ;;  %v4537_v22 = vrot.slane %v5763_v45, 1 }
 0x4a9   : > { %v4265_v40 = vadd.f32 %v4264_v1, %v4215_v41  ;;  %v4536_v41 = vsel %vm4526_vm15, %v4533_v31, %v4535_v11  ;;  %v4228_v55 = vpop.f32.mrf.mxu0 }
 0x4aa   : > { %v4600_v50 = vmax.f32 %v4584_v9, 0.0  ;;  %v4364_v19 = vadd.f32 %v4312_v29, %v7198_v59  ;;  %v4539_v1 = vsel %vm4526_vm15, %v4537_v22, %v4538_v12 }
 0x4ac   : > { %v5776_v6 = vpack.c.bf16 %v4600_v50, %v4599_v28  ;;  %v4416_v49 = vmul.f32 %v7264_v21, %v4364_v19 }
 0x4ae   : > { %5777 = vst [vmem:[%s7060_s19] sm:$0xff] %v5776_v6   ;;  %v4436_v4 = vadd.f32 %v7271_v16, %v4416_v49  ;;  %v5567_v49 = vld [vmem:[%s6273_s20 + $0x3c] sm:$0xff]  }
 0x4af   : > { %v4313_v36 = vpop.f32.mrf.mxu2  ;;  %v4488_v11 = vunpack.c.h.bf16 %v5567_v49 }
 0x4b0   : > { %v4314_v34 = vadd.f32 %v4313_v36, %v4265_v40  ;;  %v4267_v13 = vpop.f32.mrf.mxu1  ;;  %v4585_v18 = vadd.f32 %v4534_v15, %v4436_v4  ;;  %v5569_v36 = vld [vmem:[%s6273_s20 + $0x44] sm:$0x1] }
 0x4b1   : > { %v4268_v61 = vadd.f32 %v4267_v13, %v4218_v33  ;;  %v4486_v33 = vunpack.c.l.bf16 %v5566_v47  ;;  %v4489_v4 = vunpack.c.l.bf16 %v5569_v36 }
 0x4b2   : > { %v4365_v59 = vadd.f32 %v4314_v34, %v7201_v63  ;;  %v4601_v57 = vmax.f32 %v4585_v18, 0.0  ;;  %v4487_v34 = vunpack.c.l.bf16 %v5567_v49 }
 0x4b3   : > { %v4540_v9 = vrot.slane %v4486_v33, 1  ;;  %v4545_v18 = vrot.slane %v4489_v4, 1 }
 0x4b4   : > { %v4417_v3 = vmul.f32 %v7264_v21, %v4365_v59 }
 0x4b6   : > { %v4437_v58 = vadd.f32 %v7271_v16, %v4417_v3  ;;  %v4543_v3 = vrot.slane %v4488_v11, 1 }
 0x4b7   : > { %v4316_v27 = vpop.f32.mrf.mxu2 }
 0x4b8   : > { %v4586_v2 = vadd.f32 %v4536_v41, %v4437_v58  ;;  %v4317_v25 = vadd.f32 %v4316_v27, %v4268_v61  ;;  %v4269_v0 = vpop.f32.mrf.mxu1  ;;  %v4230_v27 = vpop.f32.mrf.mxu0 }
 0x4b9   : > { %v4270_v43 = vadd.f32 %v4269_v0, %v4220_v5  ;;  %v4541_v5 = vsel %vm4526_vm15, %v4538_v12, %v4540_v9 }
 0x4ba   : > { %v4602_v63 = vmax.f32 %v4586_v2, 0.0  ;;  %v4366_v54 = vadd.f32 %v4317_v25, %v7208_v24 }
 0x4bc   : > { %v5781_v46 = vpack.c.bf16 %v4602_v63, %v4601_v57  ;;  %v4418_v60 = vmul.f32 %v7264_v21, %v4366_v54  ;;  %v4546_v57 = vsel %vm4526_vm15, %v4543_v3, %v4545_v18 }
 0x4be   : > { %5817 = vst [vmem:[%s7060_s19 + $0x8] sm:$0xff] %v5781_v46   ;;  %v4438_v7 = vadd.f32 %v7271_v16, %v4418_v60  ;;  %v5815_v46 = vld [vmem:[%s6273_s20 + $0x48] sm:$0xff]  }
 0x4bf   : > { %v4318_v42 = vpop.f32.mrf.mxu2  ;;  %v5767_v22 = vunpack.c.l.bf16 %v5815_v46  ;;  %v5768_v12 = vunpack.c.h.bf16 %v5815_v46 }
 0x4c0   : > { %v4319_v35 = vadd.f32 %v4318_v42, %v4270_v43  ;;  %v4272_v29 = vpop.f32.mrf.mxu1  ;;  %v4587_v19 = vadd.f32 %v4539_v1, %v4438_v7  ;;  %v5572_v43 = vld [vmem:[%s6273_s20 + $0x50] sm:$0x1]  ;;  %v4233_v42 = vpop.f32.mrf.mxu0 }
 0x4c1   : > { %v4273_v50 = vadd.f32 %v4272_v29, %v4223_v48  ;;  %v4542_v48 = vrot.slane %v4487_v34, 1  ;;  %v4492_v9 = vunpack.c.l.bf16 %v5572_v43  ;;  %v4548_v1 = vrot.slane %v5768_v12, 1  ;;  %v5573_v34 = vld [vmem:[%s6273_s20 + $0x54] sm:$0xff]  }
 0x4c2   : > { %v4367_v24 = vadd.f32 %v4319_v35, %v7211_v8  ;;  %v4603_v23 = vmax.f32 %v4587_v19, 0.0 }
 0x4c3   : > { %v4544_v25 = vsel %vm4526_vm15, %v4542_v48, %v4543_v3  ;;  %v4494_v48 = vunpack.c.h.bf16 %v5573_v34 }
 0x4c4   : > { %v4419_v28 = vmul.f32 %v7264_v21, %v4367_v24  ;;  %v4547_v24 = vrot.slane %v5767_v22, 1 }
 0x4c6   : > { %v4439_v10 = vadd.f32 %v7271_v16, %v4419_v28 }
 0x4c7   : > { %v4321_v56 = vpop.f32.mrf.mxu2 }
 0x4c8   : > { %v4588_v6 = vadd.f32 %v4541_v5, %v4439_v10  ;;  %v4322_v37 = vadd.f32 %v4321_v56, %v4273_v50  ;;  %v4274_v40 = vpop.f32.mrf.mxu1  ;;  %v4550_v5 = vrot.slane %v4492_v9, 1  ;;  %v4549_v56 = vsel %vm4526_vm15, %v4547_v24, %v4548_v1  ;;  %v4235_v49 = vpop.f32.mrf.mxu0 }
 0x4c9   : > { %v4275_v15 = vadd.f32 %v4274_v40, %v4225_v44 }
 0x4ca   : > { %v4604_v8 = vmax.f32 %v4588_v6, 0.0  ;;  %v4368_v31 = vadd.f32 %v4322_v37, %v7218_v20  ;;  %v4551_v37 = vsel %vm4526_vm15, %v4548_v1, %v4550_v5 }
 0x4cc   : > { %4384 = vst [vmem:[#allocation3 + $0x78] sm:$0xff] %v4368_v31  ;;  %v5786_v13 = vpack.c.bf16 %v4604_v8, %v4603_v23  ;;  %v4420_v59 = vmul.f32 %v7264_v21, %v4368_v31 }
 0x4ce   : > { %5818 = vst [vmem:[%s7060_s19 + $0x10] sm:$0xff] %v5786_v13   ;;  %v4440_v20 = vadd.f32 %v7271_v16, %v4420_v59  ;;  %v5575_v59 = vld [vmem:[%s6273_s20 + $0x5c] sm:$0x1] }
 0x4cf   : > { %v4323_v61 = vpop.f32.mrf.mxu2 }
 0x4d0   : > { %v4324_v41 = vadd.f32 %v4323_v61, %v4275_v15  ;;  %v4277_v58 = vpop.f32.mrf.mxu1  ;;  %v4589_v63 = vadd.f32 %v4544_v25, %v4440_v20  ;;  %v4493_v15 = vunpack.c.l.bf16 %v5573_v34  ;;  %v4495_v61 = vunpack.c.l.bf16 %v5575_v59  ;;  %v4238_v20 = vpop.f32.mrf.mxu0  ;;  %v5581_v59 = vld [vmem:[%s6273_s20 + $0x74] sm:$0x1] }
 0x4d1   : > { %v4278_v0 = vadd.f32 %v4277_v58, %v4228_v55 }
 0x4d2   : > { %v4369_v2 = vadd.f32 %v4324_v41, %v7221_v51  ;;  %v4605_v44 = vmax.f32 %v4589_v63, 0.0  ;;  %v4552_v58 = vrot.slane %v4493_v15, 1 }
 0x4d4   : > { %4385 = vst [vmem:[#allocation3 + $0x80] sm:$0xff] %v4369_v2  ;;  %v4421_v38 = vmul.f32 %v7264_v21, %v4369_v2 }
 0x4d6   : > { %v4441_v54 = vadd.f32 %v7271_v16, %v4421_v38  ;;  %v4555_v38 = vrot.slane %v4495_v61, 1 }
 0x4d7   : > { %v4326_v47 = vpop.f32.mrf.mxu2 }
 0x4d8   : > { %v4590_v45 = vadd.f32 %v4546_v57, %v4441_v54  ;;  %v4327_v14 = vadd.f32 %v4326_v47, %v4278_v0  ;;  %v4279_v33 = vpop.f32.mrf.mxu1  ;;  %v4240_v43 = vpop.f32.mrf.mxu0 }
 0x4d9   : > { %v4280_v7 = vadd.f32 %v4279_v33, %v4230_v27  ;;  %v4553_v27 = vrot.slane %v4494_v48, 1 }
 0x4da   : > { %v4606_v51 = vmax.f32 %v4590_v45, 0.0  ;;  %v4370_v60 = vadd.f32 %v4327_v14, %v7228_v52 }
 0x4db   : > { %v4554_v63 = vsel %vm4526_vm15, %v4552_v58, %v4553_v27  ;;  %v4556_v45 = vsel %vm4526_vm15, %v4553_v27, %v4555_v38 }
 0x4dc   : > { %4386 = vst [vmem:[#allocation3 + $0x8] sm:$0xff] %v4370_v60  ;;  %v5791_v35 = vpack.c.bf16 %v4606_v51, %v4605_v44  ;;  %v4422_v29 = vmul.f32 %v7264_v21, %v4370_v60  ;;  %v5816_v60 = vld [vmem:[%s6273_s20 + $0x60] sm:$0xff]  }
 0x4dd   : > { %v5771_v9 = vunpack.c.l.bf16 %v5816_v60 }
 0x4de   : > { %5819 = vst [vmem:[%s7060_s19 + $0x18] sm:$0xff] %v5791_v35   ;;  %v4442_v52 = vadd.f32 %v7271_v16, %v4422_v29  ;;  %v5578_v35 = vld [vmem:[%s6273_s20 + $0x68] sm:$0x1]  ;;  %v5772_v29 = vunpack.c.h.bf16 %v5816_v60 }
 0x4df   : > { %v4328_v28 = vpop.f32.mrf.mxu2  ;;  %v4498_v24 = vunpack.c.l.bf16 %v5578_v35 }
 0x4e0   : > { %v4329_v50 = vadd.f32 %v4328_v28, %v4280_v7  ;;  %v4282_v19 = vpop.f32.mrf.mxu1  ;;  %v4591_v40 = vadd.f32 %v4549_v56, %v4442_v52  ;;  %v4558_v5 = vrot.slane %v5772_v29, 1 }
 0x4e1   : > { %v4283_v6 = vadd.f32 %v4282_v19, %v4233_v42 }
 0x4e2   : > { %v4371_v10 = vadd.f32 %v4329_v50, %v7231_v26  ;;  %v4607_v26 = vmax.f32 %v4591_v40, 0.0  ;;  %v4557_v50 = vrot.slane %v5771_v9, 1 }
 0x4e4   : > { %4387 = vst [vmem:[#allocation3 + $0x88] sm:$0xff] %v4371_v10  ;;  %v4423_v55 = vmul.f32 %v7264_v21, %v4371_v10  ;;  %v4560_v10 = vrot.slane %v4498_v24, 1 }
 0x4e6   : > { %v4443_v23 = vadd.f32 %v7271_v16, %v4423_v55 }
 0x4e7   : > { %v4331_v8 = vpop.f32.mrf.mxu2 }
 0x4e8   : > { %v4592_v31 = vadd.f32 %v4551_v37, %v4443_v23  ;;  %v4332_v36 = vadd.f32 %v4331_v8, %v4283_v6  ;;  %v4284_v11 = vpop.f32.mrf.mxu1  ;;  %v4559_v6 = vsel %vm4526_vm15, %v4557_v50, %v4558_v5  ;;  %v4243_v37 = vpop.f32.mrf.mxu0  ;;  %v4561_v23 = vsel %vm4526_vm15, %v4558_v5, %v4560_v10 }
 0x4e9   : > { %v4285_v18 = vadd.f32 %v4284_v11, %v4235_v49 }
 0x4ea   : > { %v4608_v13 = vmax.f32 %v4592_v31, 0.0  ;;  %v4372_v4 = vadd.f32 %v4332_v36, %v7238_v39 }
 0x4ec   : > { %4388 = vst [vmem:[#allocation3 + $0x28] sm:$0xff] %v4372_v4  ;;  %v5796_v3 = vpack.c.bf16 %v4608_v13, %v4607_v26  ;;  %v4424_v41 = vmul.f32 %v7264_v21, %v4372_v4  ;;  %v5579_v26 = vld [vmem:[%s6273_s20 + $0x6c] sm:$0xff]   ;;  %s5586_s20 = sshll.u32 %s4660_s4, 2 }
 0x4ed   : > { %v4499_v15 = vunpack.c.l.bf16 %v5579_v26  ;;  %v4500_v48 = vunpack.c.h.bf16 %v5579_v26  ;;  %s4662_s23 = scalar_lea.hbm %s7410_s7, %s5586_s20 }
 0x4ee   : > { %5820 = vst [vmem:[%s7060_s19 + $0x20] sm:$0xff] %v5796_v3   ;;  %v4444_v39 = vadd.f32 %v7271_v16, %v4424_v41  ;;  %s4665_s14 = sshll.u32 %s4662_s23, 4  ;;  %s4666_s14 = int_to_ptr.hbm [resolvable:$true] %s4665_s14 }
 0x4ef   : > { %v4333_v2 = vpop.f32.mrf.mxu2  ;;  %s5977_s12 = sshra.s32 %s4666_s14, 4  ;;  %s5978_s12 = int_to_ptr.hbm [resolvable:$true] %s5977_s12 }
 0x4f0   : > { %v4334_v25 = vadd.f32 %v4333_v2, %v4285_v18  ;;  %v4287_v0 = vpop.f32.mrf.mxu1  ;;  %v4593_v14 = vadd.f32 %v4554_v63, %v4444_v39  ;;  %v4245_v41 = vpop.f32.mrf.mxu0  ;;  %v4501_v18 = vunpack.c.l.bf16 %v5581_v59  ;;  %v4563_v2 = vrot.slane %v4500_v48, 1  ;;  %s5979_s9 = scalar_lea.hbm %s5978_s12, 64  ;;  %p5984_p9 = scmp.lt.s32.totalorder %s5978_s12, %s7410_s7 }
 0x4f1   : > { %v4288_v47 = vadd.f32 %v4287_v0, %v4238_v20  ;;  %v4562_v20 = vrot.slane %v4499_v15, 1  ;;  %p5980_p5 = scmp.ne.s32.totalorder %s5978_s12, %s5979_s9  ;;  %p5985_p10 = scmp.lt.s32.totalorder %s5983_s18, %s5979_s9 }
 0x4f2   : > { %v4373_v57 = vadd.f32 %v4334_v25, %v7241_v30  ;;  %v4609_v30 = vmax.f32 %v4593_v14, 0.0  ;;  %v4565_v38 = vrot.slane %v4501_v18, 1 }
 0x4f3   : > { %p5981_p6 = pnand %p5980_p5, %p6162_p3  ;;  %p5986_p11 = por %p5985_p10, %p5984_p9 }
 0x4f4   : > { %4389 = vst [vmem:[#allocation3 + $0x40] sm:$0xff] %v4373_v57  ;;  %v4425_v54 = vmul.f32 %v7264_v21, %v4373_v57  ;;  %v4564_v57 = vsel %vm4526_vm15, %v4562_v20, %v4563_v2 }
 0x4f5   : > { %p5982_p7 = pneg %p5981_p6 }
 0x4f6   : > { %v4445_v46 = vadd.f32 %v7271_v16, %v4425_v54  ;;  %v4566_v54 = vsel %vm4526_vm15, %v4563_v2, %v4565_v38 }
 0x4f7   : > { %v4336_v33 = vpop.f32.mrf.mxu2  ;;  %p5987_p12 = pnand %p5986_p11, %p5982_p7 }
 0x4f8   : > { %v4594_v44 = vadd.f32 %v4556_v45, %v4445_v46  ;;  %v4337_v51 = vadd.f32 %v4336_v33, %v4288_v47  ;;  %v4289_v22 = vpop.f32.mrf.mxu1 }
 0x4f9   : > { %v4290_v28 = vadd.f32 %v4289_v22, %v4240_v43 }
 0x4fa   : > { %v4610_v12 = vmax.f32 %v4594_v44, 0.0  ;;  %v4374_v42 = vadd.f32 %v4337_v51, %v7248_v32 }
 0x4fc   : > { %4390 = vst [vmem:[#allocation3 + $0x58] sm:$0xff] %v4374_v42  ;;  %v5801_v7 = vpack.c.bf16 %v4610_v12, %v4609_v30  ;;  %v4426_v1 = vmul.f32 %v7264_v21, %v4374_v42 }
 0x4fe   : > { %5821 = vst [vmem:[%s7060_s19 + $0x28] sm:$0xff] %v5801_v7   ;;  %v4446_v55 = vadd.f32 %v7271_v16, %v4426_v1 }
 0x4ff   : > { %v4338_v19 = vpop.f32.mrf.mxu2 }
 0x500   : > { %v4339_v52 = vadd.f32 %v4338_v19, %v4290_v28  ;;  %v4292_v56 = vpop.f32.mrf.mxu1  ;;  %v4595_v8 = vadd.f32 %v4559_v6, %v4446_v55 }
 0x501   : > { %v4293_v40 = vadd.f32 %v4292_v56, %v4243_v37 }
 0x502   : > { %v4375_v32 = vadd.f32 %v4339_v52, %v7251_v53  ;;  %v4611_v53 = vmax.f32 %v4595_v8, 0.0 }
 0x504   : > { %4391 = vst [vmem:[#allocation3 + $0x10] sm:$0xff] %v4375_v32  ;;  %v4427_v49 = vmul.f32 %v7264_v21, %v4375_v32 }
 0x506   : > { %v4447_v31 = vadd.f32 %v7271_v16, %v4427_v49 }
 0x507   : > { %v4341_v36 = vpop.f32.mrf.mxu2 }
 0x508   : > { %v4596_v34 = vadd.f32 %v4561_v23, %v4447_v31  ;;  %v4342_v11 = vadd.f32 %v4341_v36, %v4293_v40  ;;  %v4294_v3 = vpop.f32.mrf.mxu1 }
 0x509   : > { %v4295_v27 = vadd.f32 %v4294_v3, %v4245_v41 }
 0x50a   : > { %v4612_v13 = vmax.f32 %v4596_v34, 0.0  ;;  %v4376_v4 = vadd.f32 %v4342_v11, %v7254_v17 }
 0x50c   : > { %4392 = vst [vmem:[#allocation3 + $0x98] sm:$0xff] %v4376_v4  ;;  %v5806_v61 = vpack.c.bf16 %v4612_v13, %v4611_v53  ;;  %v4428_v58 = vmul.f32 %v7264_v21, %v4376_v4 }
 0x50e   : > { %5822 = vst [vmem:[%s7060_s19 + $0x30] sm:$0xff] %v5806_v61   ;;  %v4448_v0 = vadd.f32 %v7271_v16, %v4428_v58 }
 0x50f   : > { %v4343_v25 = vpop.f32.mrf.mxu2 }
 0x510   : > { %v4344_v17 = vadd.f32 %v4343_v25, %v4295_v27  ;;  %v4597_v47 = vadd.f32 %v4564_v57, %v4448_v0 }
 0x512   : > { %v4377_v39 = vadd.f32 %v4344_v17, %v7257_v62  ;;  %v4613_v62 = vmax.f32 %v4597_v47, 0.0 }
 0x514   : > { %4393 = vst [vmem:[#allocation3 + $0x60] sm:$0xff] %v4377_v39  ;;  %v4429_v63 = vmul.f32 %v7264_v21, %v4377_v39 }
 0x516   : > { %v4449_v45 = vadd.f32 %v7271_v16, %v4429_v63 }
 0x518   : > { %v4598_v14 = vadd.f32 %v4566_v54, %v4449_v45 }
 0x51a   : > { %v4614_v46 = vmax.f32 %v4598_v14, 0.0 }
 0x51c   : > { %v5811_v33 = vpack.c.bf16 %v4614_v46, %v4613_v62 }
 0x51e   : > { %5823 = vst [vmem:[%s7060_s19 + $0x38] sm:$0xff] %v5811_v33  }
 0x51f   : > { %5990 = shalt.err (!%p5987_p12)
}
 0x520   : > { %s6068_s19 = smov 64   ;;  %s6069_s27 = smov 4  }
 0x521   : > { %5845 = dma.vmem_to_hbm [thread:$0]  (%p6162_p3), %s4664_s22, 1024, %s4666_s14, %s4648_s21, %s6068_s19, %s6068_s19, %s6069_s27  }
 0x522 PF: > { %p5857_p13 = scmp.ge.s32.totalorder %s6061_s8, 2  ;;  %s4680_s28 = sand.u32 1, %s6033_s24  }
 0x523   : > { %s4681_s23 = scalar_lea.sflag [#allocation6], %s4680_s28 }
 0x524   : > { %p5852_p0 = pnand %p5857_p13, %p6171_p8 }
 0x526   : > { %p5853_p1 = pneg %p5852_p0 }
 0x528   : > { %6028 = dma.done.wait (%p5853_p1), %s4681_s23, 1024  }
 0x529   : > { %6030 = vsyncadd (%p5853_p1), %s4681_s23, 4294966272  ;;  %s21_s8 = sadd.s32 1, %s6061_s8   ;;  %s7435_s15 = sld [smem:[#allocation10_spill]] }
 0x52a   : > { %p18_p2 = scmp.ge.s32.totalorder %s21_s8, 6   ;;  %s7436_s22 = sld [smem:[#allocation11_spill]] }
 0x52b   : > { %s7437_s24 = smov %s6037_s25  ;;  %s7438_s25 = smov %s6041_s26 }
 0x52c   : > { %s7439_s26 = smov %s6192_s10  ;;  %s7440_s27 = smov %s6053_s29 }
 0x52d   : > { %s7441_s28 = smov %s6057_s30  ;;  %20 = sbr.rel (!%p18_p2) target bundleno = 8 (0x8), region = 103 }
 0x52f   : > { %s7442_s29 = smov %s7435_s15 }
 0x530   : > { %s7443_s30 = smov %s7436_s22 }
 0x532   :  { %4687 = vsyncpa [#allocation5], 1 }
 0x533   :  { %4689 = vsyncpa [#allocation5 + $0x1], 1 }
 0x534   :  { %4690 = vsyncpa [#allocation6], 1 }
 0x535   :  { %4692 = vsyncpa [#allocation6 + $0x1], 1 }

</bundles_post_ra>
